<compile_context>
chip_gen: v6e
topology: v6e:2x2x1
jax: 0.10.0
libtpu: 0.0.40
codegen_flags: <defaults>
</compile_context>

<pallas_src>
import functools

import jax
import jax.numpy as jnp
from jax.experimental import pallas as pl
from jax.experimental.pallas import tpu as pltpu

_LANES = 128


def _identity_block_kernel(*refs, tile_h, img_h, conv1x1):
    f32, bf16 = jnp.float32, jnp.bfloat16
    if conv1x1:
        (x_ref, w1_ref, b1_ref, w2_ref, b2_ref, w3_ref, b3_ref, out_ref) = refs
        sc_ref = None
    else:
        (x_ref, sc_ref, w1_ref, b1_ref, w2_ref, b2_ref, w3_ref,
         b3_ref, out_ref) = refs

    TH = tile_h
    rows = TH + 2                                   # tile rows + 1-row halo each side
    _, _, W, cin_p = x_ref.shape                    # x block: (1, H+2, W, cin_p) bf16
    cp = w3_ref.shape[0]                            # lane-padded out channels
    cw = w1_ref.shape[1]                            # cp (or 2*cp when shortcut fused)

    r = pl.program_id(1)
    row0 = pl.multiple_of(r * TH, TH)               # start row in the H-padded image

    # ---- (TH+2)-row halo slab of this image (image resident in VMEM, bf16) --------
    x_slab = x_ref[0, pl.ds(row0, rows), :, :]      # (rows, W, cin_p) bf16
    x2 = x_slab.reshape(rows * W, cin_p)

    # ---- conv1 (1x1, BN scale folded into weights) [+ fused projection shortcut] --
    fused = jnp.dot(x2, w1_ref[...], preferred_element_type=f32) + b1_ref[...]
    if conv1x1:
        f3 = fused.reshape(rows, W, cw)
        sc = f3[1:TH + 1, :, cp:].reshape(TH * W, cp)   # BN(conv1x1(x)); extracted early
        h1 = jnp.maximum(f3[:, :, :cp], 0.0)            # (rows, W, cp) f32
    else:
        sc = sc_ref[0, :, :, :].reshape(TH * W, cp)     # exact f32 identity shortcut
        h1 = jnp.maximum(fused, 0.0).reshape(rows, W, cp)

    # rows that fall in the 3x3 conv's zero padding (outside the image) must be zero
    gi = jax.lax.broadcasted_iota(jnp.int32, (rows, 1, 1), 0) + row0
    row_ok = jnp.logical_and(gi >= 1, gi <= img_h)
    h1 = jnp.where(row_ok, h1, 0.0)

    # ---- conv2 (3x3, pad=1): one K = 9*cp MXU matmul -------------------------------
    # kx shifts via XLU rolls + column boundary masks; ky taps via cheap leading-axis
    # slices; all 9 taps concatenated on the lane axis in bf16.
    col = jax.lax.broadcasted_iota(jnp.int32, (1, W, 1), 1)
    center = h1.astype(bf16)
    left = jnp.where(col > 0, pltpu.roll(h1, shift=1, axis=1), 0.0).astype(bf16)
    right = jnp.where(col < W - 1, pltpu.roll(h1, shift=W - 1, axis=1), 0.0).astype(bf16)
    taps = (left, center, right)                    # kx = 0, 1, 2
    win = jnp.concatenate(
        [taps[kx][ky:ky + TH] for ky in range(3) for kx in range(3)], axis=-1)
    h2 = jnp.dot(win.reshape(TH * W, 9 * cp), w2_ref[...],
                 preferred_element_type=f32) + b2_ref[...]
    h2 = jnp.maximum(h2, 0.0)

    # ---- conv3 (1x1) + bias ----------------------------------------------------------
    h3 = jnp.dot(h2.astype(bf16), w3_ref[...], preferred_element_type=f32) + b3_ref[...]

    # ---- shortcut + residual add + ReLU ------------------------------------------------
    out = jnp.maximum(sc + h3, 0.0)
    out_ref[...] = out.reshape(1, TH, W, cp).astype(out_ref.dtype)


def _round_up(x, m):
    return (x + m - 1) // m * m


def _choose_tile_h(H, W, cp, cin_p, conv1x1):
    """Pick a divisor of H targeting >= 512 matmul rows per tile, capped so the
    in-kernel temporaries stay within a conservative VMEM budget."""
    divs = [d for d in range(1, H + 1) if H % d == 0]
    target = max(8, -(-512 // W))                   # ceil(512 / W)
    larger = [d for d in divs if d >= target]
    tile = larger[0] if larger else divs[-1]
    cw = 2 * cp if conv1x1 else cp

    def temp_bytes(th):
        rows = th + 2
        return (rows * W * cin_p * 2 + rows * W * cw * 4 + 3 * rows * W * cp * 4
                + th * W * 9 * cp * 2 + 3 * th * W * cp * 4)

    while tile > divs[0] and temp_bytes(tile) > 8 * (1 << 20):
        tile = max(d for d in divs if d < tile)
    return tile


def _vmem_limit_bytes(H, W, cin_p, cp, cw, tile_h, conv1x1):
    rows = tile_h + 2
    blocks = 2 * (H + 2) * W * cin_p * 2            # bf16 image block, double-buffered
    blocks += 0 if conv1x1 else 2 * tile_h * W * cp * 4   # f32 shortcut tile
    blocks += 2 * tile_h * W * cp * 4               # output tile
    blocks += 2 * (cin_p * cw * 2 + 9 * cp * cp * 2 + cp * cp * 2 + 3 * cw * 4)
    temps = (rows * W * cw * 4 + 3 * rows * W * cp * 4
             + tile_h * W * 9 * cp * 2 + 3 * tile_h * W * cp * 4)
    est = blocks + temps
    return int(min(96 * (1 << 20), max(32 * (1 << 20), 2 * est)))


def identity_block_forward(x_nhwc, params, conv1x1=False, tile_h=None):
    """x_nhwc: (N, H, W, Cin) float32.  Returns (N, H, W, Cout) float32."""
    N, H, W, Cin = x_nhwc.shape
    Cout = params["w1"].shape[1]
    if not conv1x1:
        assert Cin == Cout, "identity shortcut requires in_ch == out_ch"

    f32, bf16 = jnp.float32, jnp.bfloat16
    cin_p = _round_up(max(Cin, _LANES), _LANES)
    cp = _round_up(max(Cout, _LANES), _LANES)
    if tile_h is None:
        tile_h = _choose_tile_h(H, W, cp, cin_p, conv1x1)
    assert H % tile_h == 0
    n_row_tiles = H // tile_h

    # Input image: bf16 (the MXU operand dtype), halo-padded H, lane-padded channels.
    # TODO(synk): for very large H*W*Cin, switch this whole-image-resident block to a
    # per-row-tile halo fetch (manual make_async_copy double buffer) so the resident
    # footprint stays bounded on v7x's 64 MiB / v5e's 16 MiB scoped VMEM.
    x_img = jnp.pad(x_nhwc, ((0, 0), (1, 1), (0, 0), (0, cin_p - Cin))).astype(bf16)

    def pad_mat(w, r, c):
        return jnp.pad(w, ((0, r - w.shape[0]), (0, c - w.shape[1])))

    def pad_vec(v, c):
        return jnp.pad(v, ((0, 0), (0, c - v.shape[1])))

    # BN scales folded into the conv weights (per output channel) before the bf16 cast.
    w1p = pad_mat(params["w1"] * params["s1"], cin_p, cp)
    b1p = pad_vec(params["b1"], cp)
    if conv1x1:
        wsp = pad_mat(params["ws"] * params["ss"], cin_p, cp)
        bsp = pad_vec(params["bs"], cp)
        w1f = jnp.concatenate([w1p, wsp], axis=1)   # fuse shortcut into the conv1 matmul
        b1f = jnp.concatenate([b1p, bsp], axis=1)
    else:
        w1f, b1f = w1p, b1p
    cw = w1f.shape[1]

    w2s = params["w2"] * params["s2"].reshape(1, 1, 1, -1)      # (3,3,Cout,Cout) HWIO
    w2p = jnp.pad(w2s, ((0, 0), (0, 0), (0, cp - Cout), (0, cp - Cout)))
    w2f = w2p.reshape(9 * cp, cp)                   # (ky, kx, ci) flattened, ky-major
    b2p = pad_vec(params["b2"], cp)
    w3p = pad_mat(params["w3"] * params["s3"], cp, cp)
    b3p = pad_vec(params["b3"], cp)

    consts = [w1f.astype(bf16), b1f, w2f.astype(bf16), b2p, w3p.astype(bf16), b3p]
    if conv1x1:
        args = [x_img] + consts
        extra_specs = []
    else:
        # Small per-tile f32 input keeps the identity shortcut exact (the bf16 image
        # feeds only the conv path).
        x_sc = jnp.pad(x_nhwc, ((0, 0), (0, 0), (0, 0), (0, cp - Cin)))
        args = [x_img, x_sc] + consts
        extra_specs = [pl.BlockSpec((1, tile_h, W, cp), lambda n, r: (n, r, 0, 0))]

    img_spec = pl.BlockSpec((1, H + 2, W, cin_p), lambda n, r: (n, 0, 0, 0))
    out_spec = pl.BlockSpec((1, tile_h, W, cp), lambda n, r: (n, r, 0, 0))

    kernel = functools.partial(_identity_block_kernel, tile_h=tile_h, img_h=H,
                               conv1x1=conv1x1)
    vmem_limit = _vmem_limit_bytes(H, W, cin_p, cp, cw, tile_h, conv1x1)

    def const_spec(shape, pm):
        nd = len(shape)
        idx = lambda n, r, _nd=nd: (0,) * _nd
        if pm is None:
            return pl.BlockSpec(shape, idx)
        return pl.BlockSpec(shape, idx, pipeline_mode=pm)

    def build(pm):
        in_specs = [img_spec] + extra_specs + [const_spec(a.shape, pm) for a in consts]
        return pl.pallas_call(
            kernel,
            out_shape=jax.ShapeDtypeStruct((N, H, W, cp), f32),
            grid_spec=pltpu.PrefetchScalarGridSpec(
                num_scalar_prefetch=0,
                grid=(N, n_row_tiles),
                in_specs=in_specs,
                out_specs=out_spec,
            ),
            compiler_params=pltpu.CompilerParams(
                dimension_semantics=("parallel", "parallel"),
                vmem_limit_bytes=vmem_limit),
        )

    try:
        # Constant-index weight/bias blocks are fetched once; single-buffer them so the
        # default double-buffering does not double their VMEM footprint.
        out = build(pl.Buffered(1))(*args)
    except Exception:
        # Fallback for jax versions without BlockSpec.pipeline_mode support.
        out = build(None)(*args)

    return out if cp == Cout else out[..., :Cout]


def init_params(key, in_ch, out_ch, conv1x1=False, eps=1e-5):
    """Deterministic synthetic params; BN (eval mode) + conv bias folded to scale/bias."""
    keys = iter(jax.random.split(key, 32))

    def conv_w(cin, cout, kh, kw):
        fan_in = float(cin * kh * kw)
        return jax.random.normal(next(keys), (kh, kw, cin, cout),
                                 jnp.float32) / jnp.sqrt(fan_in)

    def conv_b(cout):
        return 0.1 * jax.random.normal(next(keys), (cout,), jnp.float32)

    def bn_fold(c, conv_bias):
        gamma = 1.0 + 0.1 * jax.random.normal(next(keys), (c,), jnp.float32)
        beta = 0.1 * jax.random.normal(next(keys), (c,), jnp.float32)
        mean = 0.1 * jax.random.normal(next(keys), (c,), jnp.float32)
        var = jnp.abs(1.0 + 0.1 * jax.random.normal(next(keys), (c,), jnp.float32))
        scale = gamma / jnp.sqrt(var + eps)
        bias = (conv_bias - mean) * scale + beta
        return scale.reshape(1, c), bias.reshape(1, c)

    p = {}
    p["w1"] = conv_w(in_ch, out_ch, 1, 1).reshape(in_ch, out_ch)
    p["s1"], p["b1"] = bn_fold(out_ch, conv_b(out_ch))
    p["w2"] = conv_w(out_ch, out_ch, 3, 3)                 # (3,3,Cout,Cout) HWIO
    p["s2"], p["b2"] = bn_fold(out_ch, conv_b(out_ch))
    p["w3"] = conv_w(out_ch, out_ch, 1, 1).reshape(out_ch, out_ch)
    p["s3"], p["b3"] = bn_fold(out_ch, conv_b(out_ch))
    if conv1x1:
        p["ws"] = conv_w(in_ch, out_ch, 1, 1).reshape(in_ch, out_ch)
        p["ss"], p["bs"] = bn_fold(out_ch, conv_b(out_ch))
    return p


def ref_forward(x, p, conv1x1=False):
    """Pure-JAX reference mirroring the kernel's scale-folded bf16-operand /
    f32-accumulation scheme."""
    dn = ("NHWC", "HWIO", "NHWC")

    def conv(h, w, s, pad):
        ws = (w * s.reshape((1,) * (w.ndim - 1) + (-1,))).astype(jnp.bfloat16)
        return jax.lax.conv_general_dilated(
            h.astype(jnp.bfloat16), ws, (1, 1), pad,
            dimension_numbers=dn, preferred_element_type=jnp.float32)

    h = conv(x, p["w1"][None, None], p["s1"], "VALID") + p["b1"]
    h = jnp.maximum(h, 0.0)
    h = conv(h, p["w2"], p["s2"], "SAME") + p["b2"]
    h = jnp.maximum(h, 0.0)
    h = conv(h, p["w3"][None, None], p["s3"], "VALID") + p["b3"]
    if conv1x1:
        sc = conv(x, p["ws"][None, None], p["ss"], "VALID") + p["bs"]
    else:
        sc = x
    return jnp.maximum(sc + h, 0.0)


if __name__ == "__main__":
    key = jax.random.PRNGKey(0)
    k_x1, k_p1, k_x2, k_p2 = jax.random.split(key, 4)

    # Case 1: identity shortcut (conv1x1=False), in_ch == out_ch.
    N, C, H, W = 2, 8, 16, 16
    x_nchw = jax.random.normal(k_x1, (N, C, H, W), jnp.float32)   # PyTorch layout
    x_nhwc = jnp.transpose(x_nchw, (0, 2, 3, 1))                  # kernel layout
    params = init_params(k_p1, C, C, conv1x1=False)
    out = identity_block_forward(x_nhwc, params, conv1x1=False)
    out = jax.block_until_ready(out)
    assert out.shape == (N, H, W, C)
    assert bool(jnp.isfinite(out).all())
    ref = ref_forward(x_nhwc, params, conv1x1=False)
    err = float(jnp.max(jnp.abs(out - ref)))
    assert err < 1e-2, f"identity-shortcut max abs err {err}"

    # Case 2: projection shortcut (conv1x1=True), in_ch != out_ch.
    in_ch, out_ch = 4, 8
    x2_nchw = jax.random.normal(k_x2, (N, in_ch, H, W), jnp.float32)
    x2_nhwc = jnp.transpose(x2_nchw, (0, 2, 3, 1))
    params2 = init_params(k_p2, in_ch, out_ch, conv1x1=True)
    out2 = identity_block_forward(x2_nhwc, params2, conv1x1=True)
    out2 = jax.block_until_ready(out2)
    assert out2.shape == (N, H, W, out_ch)
    ref2 = ref_forward(x2_nhwc, params2, conv1x1=True)
    err2 = float(jnp.max(jnp.abs(out2 - ref2)))
    assert err2 < 1e-2, f"projection-shortcut max abs err {err2}"

    print("KERNEL_OK")
</pallas_src>

<mosaic_0001>
module attributes {stable_mosaic.version = 11 : i64} {
  func.func @_identity_block_kernel(%arg0: i32, %arg1: i32, %arg2: memref<1x18x16x128xbf16, #tpu.memory_space<vmem>>, %arg3: memref<1x16x16x128xf32, #tpu.memory_space<vmem>>, %arg4: memref<128x128xbf16, #tpu.memory_space<vmem>>, %arg5: memref<1x128xf32, #tpu.memory_space<vmem>>, %arg6: memref<1152x128xbf16, #tpu.memory_space<vmem>>, %arg7: memref<1x128xf32, #tpu.memory_space<vmem>>, %arg8: memref<128x128xbf16, #tpu.memory_space<vmem>>, %arg9: memref<1x128xf32, #tpu.memory_space<vmem>>, %arg10: memref<1x16x16x128xf32, #tpu.memory_space<vmem>>) attributes {dimension_semantics = [#tpu.dimension_semantics<parallel>, #tpu.dimension_semantics<parallel>], iteration_bounds = array<i64: 2, 1>, scalar_prefetch = 0 : i64, scratch_operands = 0 : i64, tpu.core_type = #tpu.core_type<tc>, window_params = [{transform_indices = @transform_0, window_bounds = array<i64: 1, 18, 16, 128>}, {transform_indices = @transform_1, window_bounds = array<i64: 1, 16, 16, 128>}, {pipeline_mode = #tpu.pipeline_mode<synchronous>, transform_indices = @transform_2, window_bounds = array<i64: 128, 128>}, {pipeline_mode = #tpu.pipeline_mode<synchronous>, transform_indices = @transform_3, window_bounds = array<i64: 1, 128>}, {pipeline_mode = #tpu.pipeline_mode<synchronous>, transform_indices = @transform_4, window_bounds = array<i64: 1152, 128>}, {pipeline_mode = #tpu.pipeline_mode<synchronous>, transform_indices = @transform_5, window_bounds = array<i64: 1, 128>}, {pipeline_mode = #tpu.pipeline_mode<synchronous>, transform_indices = @transform_6, window_bounds = array<i64: 128, 128>}, {pipeline_mode = #tpu.pipeline_mode<synchronous>, transform_indices = @transform_7, window_bounds = array<i64: 1, 128>}, {transform_indices = @transform_8, window_bounds = array<i64: 1, 16, 16, 128>}]} {
    %c16_i32 = arith.constant 16 : i32
    %0 = arith.muli %arg1, %c16_i32 : i32
    %1 = tpu.assume_multiple %0, 16 : i32
    %c0 = arith.constant 0 : index
    %2 = arith.index_cast %1 : i32 to index
    %c0_0 = arith.constant 0 : index
    %c0_1 = arith.constant 0 : index
    %3 = vector.load %arg2[%c0, %2, %c0_0, %c0_1] : memref<1x18x16x128xbf16, #tpu.memory_space<vmem>>, vector<1x18x16x128xbf16>
    %4 = vector.shape_cast %3 : vector<1x18x16x128xbf16> to vector<18x16x128xbf16>
    %5 = vector.shape_cast %4 : vector<18x16x128xbf16> to vector<288x128xbf16>
    %c0_2 = arith.constant 0 : index
    %c0_3 = arith.constant 0 : index
    %6 = vector.load %arg4[%c0_2, %c0_3] : memref<128x128xbf16, #tpu.memory_space<vmem>>, vector<128x128xbf16>
    %cst = arith.constant dense<0.000000e+00> : vector<288x128xf32>
    %7 = tpu.matmul %5, %6, %cst {dimension_numbers = #tpu.dot_dimension_numbers<[1], [0], [0], [1], [0, 0, 1, 1], [], []>} : vector<288x128xbf16>, vector<128x128xbf16>, vector<288x128xf32> -> vector<288x128xf32>
    %c0_4 = arith.constant 0 : index
    %c0_5 = arith.constant 0 : index
    %8 = vector.load %arg5[%c0_4, %c0_5] : memref<1x128xf32, #tpu.memory_space<vmem>>, vector<1x128xf32>
    %9 = vector.broadcast %8 : vector<1x128xf32> to vector<288x128xf32>
    %10 = arith.addf %7, %9 : vector<288x128xf32>
    %c0_6 = arith.constant 0 : index
    %c0_7 = arith.constant 0 : index
    %c0_8 = arith.constant 0 : index
    %c0_9 = arith.constant 0 : index
    %11 = vector.load %arg3[%c0_6, %c0_7, %c0_8, %c0_9] : memref<1x16x16x128xf32, #tpu.memory_space<vmem>>, vector<1x16x16x128xf32>
    %12 = vector.shape_cast %11 : vector<1x16x16x128xf32> to vector<16x16x128xf32>
    %13 = vector.shape_cast %12 : vector<16x16x128xf32> to vector<256x128xf32>
    %cst_10 = arith.constant 0.000000e+00 : f32
    %14 = vector.broadcast %cst_10 : f32 to vector<288x128xf32>
    %15 = arith.maximumf %10, %14 : vector<288x128xf32>
    %16 = vector.shape_cast %15 : vector<288x128xf32> to vector<18x16x128xf32>
    %17 = tpu.iota {dimensions = array<i32: 0>} : vector<18x1x1xi32>
    %18 = vector.broadcast %1 : i32 to vector<18x1x1xi32>
    %19 = arith.addi %17, %18 : vector<18x1x1xi32>
    %c1_i32 = arith.constant 1 : i32
    %20 = vector.broadcast %c1_i32 : i32 to vector<18x1x1xi32>
    %21 = arith.cmpi sge, %19, %20 : vector<18x1x1xi32>
    %c16_i32_11 = arith.constant 16 : i32
    %22 = vector.broadcast %c16_i32_11 : i32 to vector<18x1x1xi32>
    %23 = arith.cmpi sle, %19, %22 : vector<18x1x1xi32>
    %24 = arith.andi %21, %23 : vector<18x1x1xi1>
    %cst_12 = arith.constant 0.000000e+00 : f32
    %25 = vector.shape_cast %24 : vector<18x1x1xi1> to vector<18x1x1xi1>
    %26 = vector.broadcast %25 : vector<18x1x1xi1> to vector<18x16x128xi1>
    %27 = vector.broadcast %cst_12 : f32 to vector<18x16x128xf32>
    %28 = arith.select %26, %16, %27 : vector<18x16x128xi1>, vector<18x16x128xf32>
    %29 = tpu.iota {dimensions = array<i32: 1>} : vector<1x16x1xi32>
    %30 = arith.truncf %28 : vector<18x16x128xf32> to vector<18x16x128xbf16>
    %c0_i32 = arith.constant 0 : i32
    %31 = vector.broadcast %c0_i32 : i32 to vector<1x16x1xi32>
    %32 = arith.cmpi sgt, %29, %31 : vector<1x16x1xi32>
    %c1_i32_13 = arith.constant 1 : i32
    %33 = tpu.dynamic_rotate %28 by %c1_i32_13 dim 1 : vector<18x16x128xf32>, i32 -> vector<18x16x128xf32>
    %cst_14 = arith.constant 0.000000e+00 : f32
    %34 = vector.shape_cast %32 : vector<1x16x1xi1> to vector<1x16x1xi1>
    %35 = vector.broadcast %34 : vector<1x16x1xi1> to vector<18x16x128xi1>
    %36 = vector.broadcast %cst_14 : f32 to vector<18x16x128xf32>
    %37 = arith.select %35, %33, %36 : vector<18x16x128xi1>, vector<18x16x128xf32>
    %38 = arith.truncf %37 : vector<18x16x128xf32> to vector<18x16x128xbf16>
    %c15_i32 = arith.constant 15 : i32
    %39 = vector.broadcast %c15_i32 : i32 to vector<1x16x1xi32>
    %40 = arith.cmpi slt, %29, %39 : vector<1x16x1xi32>
    %c15_i32_15 = arith.constant 15 : i32
    %41 = tpu.dynamic_rotate %28 by %c15_i32_15 dim 1 : vector<18x16x128xf32>, i32 -> vector<18x16x128xf32>
    %cst_16 = arith.constant 0.000000e+00 : f32
    %42 = vector.shape_cast %40 : vector<1x16x1xi1> to vector<1x16x1xi1>
    %43 = vector.broadcast %42 : vector<1x16x1xi1> to vector<18x16x128xi1>
    %44 = vector.broadcast %cst_16 : f32 to vector<18x16x128xf32>
    %45 = arith.select %43, %41, %44 : vector<18x16x128xi1>, vector<18x16x128xf32>
    %46 = arith.truncf %45 : vector<18x16x128xf32> to vector<18x16x128xbf16>
    %47 = vector.extract_strided_slice %38 {offsets = [0, 0, 0], sizes = [16, 16, 128], strides = [1, 1, 1]} : vector<18x16x128xbf16> to vector<16x16x128xbf16>
    %48 = vector.extract_strided_slice %30 {offsets = [0, 0, 0], sizes = [16, 16, 128], strides = [1, 1, 1]} : vector<18x16x128xbf16> to vector<16x16x128xbf16>
    %49 = vector.extract_strided_slice %46 {offsets = [0, 0, 0], sizes = [16, 16, 128], strides = [1, 1, 1]} : vector<18x16x128xbf16> to vector<16x16x128xbf16>
    %50 = vector.extract_strided_slice %38 {offsets = [1, 0, 0], sizes = [16, 16, 128], strides = [1, 1, 1]} : vector<18x16x128xbf16> to vector<16x16x128xbf16>
    %51 = vector.extract_strided_slice %30 {offsets = [1, 0, 0], sizes = [16, 16, 128], strides = [1, 1, 1]} : vector<18x16x128xbf16> to vector<16x16x128xbf16>
    %52 = vector.extract_strided_slice %46 {offsets = [1, 0, 0], sizes = [16, 16, 128], strides = [1, 1, 1]} : vector<18x16x128xbf16> to vector<16x16x128xbf16>
    %53 = vector.extract_strided_slice %38 {offsets = [2, 0, 0], sizes = [16, 16, 128], strides = [1, 1, 1]} : vector<18x16x128xbf16> to vector<16x16x128xbf16>
    %54 = vector.extract_strided_slice %30 {offsets = [2, 0, 0], sizes = [16, 16, 128], strides = [1, 1, 1]} : vector<18x16x128xbf16> to vector<16x16x128xbf16>
    %55 = vector.extract_strided_slice %46 {offsets = [2, 0, 0], sizes = [16, 16, 128], strides = [1, 1, 1]} : vector<18x16x128xbf16> to vector<16x16x128xbf16>
    %56 = tpu.concatenate %47, %48, %49, %50, %51, %52, %53, %54, %55 in 2 : vector<16x16x128xbf16>, vector<16x16x128xbf16>, vector<16x16x128xbf16>, vector<16x16x128xbf16>, vector<16x16x128xbf16>, vector<16x16x128xbf16>, vector<16x16x128xbf16>, vector<16x16x128xbf16>, vector<16x16x128xbf16> -> vector<16x16x1152xbf16>
    %57 = vector.shape_cast %56 : vector<16x16x1152xbf16> to vector<256x1152xbf16>
    %c0_17 = arith.constant 0 : index
    %c0_18 = arith.constant 0 : index
    %58 = vector.load %arg6[%c0_17, %c0_18] : memref<1152x128xbf16, #tpu.memory_space<vmem>>, vector<1152x128xbf16>
    %cst_19 = arith.constant dense<0.000000e+00> : vector<256x128xf32>
    %59 = tpu.matmul %57, %58, %cst_19 {dimension_numbers = #tpu.dot_dimension_numbers<[1], [0], [0], [1], [0, 0, 1, 1], [], []>} : vector<256x1152xbf16>, vector<1152x128xbf16>, vector<256x128xf32> -> vector<256x128xf32>
    %c0_20 = arith.constant 0 : index
    %c0_21 = arith.constant 0 : index
    %60 = vector.load %arg7[%c0_20, %c0_21] : memref<1x128xf32, #tpu.memory_space<vmem>>, vector<1x128xf32>
    %61 = vector.broadcast %60 : vector<1x128xf32> to vector<256x128xf32>
    %62 = arith.addf %59, %61 : vector<256x128xf32>
    %cst_22 = arith.constant 0.000000e+00 : f32
    %63 = vector.broadcast %cst_22 : f32 to vector<256x128xf32>
    %64 = arith.maximumf %62, %63 : vector<256x128xf32>
    %65 = arith.truncf %64 : vector<256x128xf32> to vector<256x128xbf16>
    %c0_23 = arith.constant 0 : index
    %c0_24 = arith.constant 0 : index
    %66 = vector.load %arg8[%c0_23, %c0_24] : memref<128x128xbf16, #tpu.memory_space<vmem>>, vector<128x128xbf16>
    %cst_25 = arith.constant dense<0.000000e+00> : vector<256x128xf32>
    %67 = tpu.matmul %65, %66, %cst_25 {dimension_numbers = #tpu.dot_dimension_numbers<[1], [0], [0], [1], [0, 0, 1, 1], [], []>} : vector<256x128xbf16>, vector<128x128xbf16>, vector<256x128xf32> -> vector<256x128xf32>
    %c0_26 = arith.constant 0 : index
    %c0_27 = arith.constant 0 : index
    %68 = vector.load %arg9[%c0_26, %c0_27] : memref<1x128xf32, #tpu.memory_space<vmem>>, vector<1x128xf32>
    %69 = vector.broadcast %68 : vector<1x128xf32> to vector<256x128xf32>
    %70 = arith.addf %67, %69 : vector<256x128xf32>
    %71 = arith.addf %13, %70 : vector<256x128xf32>
    %cst_28 = arith.constant 0.000000e+00 : f32
    %72 = vector.broadcast %cst_28 : f32 to vector<256x128xf32>
    %73 = arith.maximumf %71, %72 : vector<256x128xf32>
    %74 = vector.shape_cast %73 : vector<256x128xf32> to vector<1x16x16x128xf32>
    %c0_29 = arith.constant 0 : index
    %c0_30 = arith.constant 0 : index
    %c0_31 = arith.constant 0 : index
    %c0_32 = arith.constant 0 : index
    %75 = vector.load %arg10[%c0_29, %c0_30, %c0_31, %c0_32] : memref<1x16x16x128xf32, #tpu.memory_space<vmem>>, vector<1x16x16x128xf32>
    tpu.vector_store %arg10[%c0_29, %c0_30, %c0_31, %c0_32], %74 {strides = array<i32>} : memref<1x16x16x128xf32, #tpu.memory_space<vmem>>, vector<1x16x16x128xf32>,
    return
  }
  func.func @transform_0(%arg0: i32, %arg1: i32) -> (i32, i32, i32, i32) {
    %c0_i32 = arith.constant 0 : i32
    %c0_i32_0 = arith.constant 0 : i32
    %c0_i32_1 = arith.constant 0 : i32
    %c0_i32_2 = arith.constant 0 : i32
    return %arg0, %c0_i32, %c0_i32_0, %c0_i32_1 : i32, i32, i32, i32
  }
  func.func @transform_1(%arg0: i32, %arg1: i32) -> (i32, i32, i32, i32) {
    %c0_i32 = arith.constant 0 : i32
    %c0_i32_0 = arith.constant 0 : i32
    %c0_i32_1 = arith.constant 0 : i32
    return %arg0, %arg1, %c0_i32, %c0_i32_0 : i32, i32, i32, i32
  }
  func.func @transform_2(%arg0: i32, %arg1: i32) -> (i32, i32) {
    %c0_i32 = arith.constant 0 : i32
    %c0_i32_0 = arith.constant 0 : i32
    %c0_i32_1 = arith.constant 0 : i32
    return %c0_i32, %c0_i32_0 : i32, i32
  }
  func.func @transform_3(%arg0: i32, %arg1: i32) -> (i32, i32) {
    %c0_i32 = arith.constant 0 : i32
    %c0_i32_0 = arith.constant 0 : i32
    %c0_i32_1 = arith.constant 0 : i32
    return %c0_i32, %c0_i32_0 : i32, i32
  }
  func.func @transform_4(%arg0: i32, %arg1: i32) -> (i32, i32) {
    %c0_i32 = arith.constant 0 : i32
    %c0_i32_0 = arith.constant 0 : i32
    %c0_i32_1 = arith.constant 0 : i32
    return %c0_i32, %c0_i32_0 : i32, i32
  }
  func.func @transform_5(%arg0: i32, %arg1: i32) -> (i32, i32) {
    %c0_i32 = arith.constant 0 : i32
    %c0_i32_0 = arith.constant 0 : i32
    %c0_i32_1 = arith.constant 0 : i32
    return %c0_i32, %c0_i32_0 : i32, i32
  }
  func.func @transform_6(%arg0: i32, %arg1: i32) -> (i32, i32) {
    %c0_i32 = arith.constant 0 : i32
    %c0_i32_0 = arith.constant 0 : i32
    %c0_i32_1 = arith.constant 0 : i32
    return %c0_i32, %c0_i32_0 : i32, i32
  }
  func.func @transform_7(%arg0: i32, %arg1: i32) -> (i32, i32) {
    %c0_i32 = arith.constant 0 : i32
    %c0_i32_0 = arith.constant 0 : i32
    %c0_i32_1 = arith.constant 0 : i32
    return %c0_i32, %c0_i32_0 : i32, i32
  }
  func.func @transform_8(%arg0: i32, %arg1: i32) -> (i32, i32, i32, i32) {
    %c0_i32 = arith.constant 0 : i32
    %c0_i32_0 = arith.constant 0 : i32
    %c0_i32_1 = arith.constant 0 : i32
    return %arg0, %arg1, %c0_i32, %c0_i32_0 : i32, i32, i32, i32
  }
}

module attributes {stable_mosaic.version = 11 : i64} {
  func.func @_identity_block_kernel(%arg0: i32, %arg1: i32, %arg2: memref<1x18x16x128xbf16, #tpu.memory_space<vmem>>, %arg3: memref<1x16x16x128xf32, #tpu.memory_space<vmem>>, %arg4: memref<128x128xbf16, #tpu.memory_space<vmem>>, %arg5: memref<1x128xf32, #tpu.memory_space<vmem>>, %arg6: memref<1152x128xbf16, #tpu.memory_space<vmem>>, %arg7: memref<1x128xf32, #tpu.memory_space<vmem>>, %arg8: memref<128x128xbf16, #tpu.memory_space<vmem>>, %arg9: memref<1x128xf32, #tpu.memory_space<vmem>>, %arg10: memref<1x16x16x128xf32, #tpu.memory_space<vmem>>) attributes {dimension_semantics = [#tpu.dimension_semantics<parallel>, #tpu.dimension_semantics<parallel>], iteration_bounds = array<i64: 2, 1>, scalar_prefetch = 0 : i64, scratch_operands = 0 : i64, tpu.core_type = #tpu.core_type<tc>, window_params = [{transform_indices = @transform_0, window_bounds = array<i64: 1, 18, 16, 128>}, {transform_indices = @transform_1, window_bounds = array<i64: 1, 16, 16, 128>}, {pipeline_mode = #tpu.pipeline_mode<synchronous>, transform_indices = @transform_2, window_bounds = array<i64: 128, 128>}, {pipeline_mode = #tpu.pipeline_mode<synchronous>, transform_indices = @transform_3, window_bounds = array<i64: 1, 128>}, {pipeline_mode = #tpu.pipeline_mode<synchronous>, transform_indices = @transform_4, window_bounds = array<i64: 1152, 128>}, {pipeline_mode = #tpu.pipeline_mode<synchronous>, transform_indices = @transform_5, window_bounds = array<i64: 1, 128>}, {pipeline_mode = #tpu.pipeline_mode<synchronous>, transform_indices = @transform_6, window_bounds = array<i64: 128, 128>}, {pipeline_mode = #tpu.pipeline_mode<synchronous>, transform_indices = @transform_7, window_bounds = array<i64: 1, 128>}, {transform_indices = @transform_8, window_bounds = array<i64: 1, 16, 16, 128>}]} {
    %c16_i32 = arith.constant 16 : i32
    %0 = arith.muli %arg1, %c16_i32 : i32
    %1 = tpu.assume_multiple %0, 16 : i32
    %c0 = arith.constant 0 : index
    %2 = arith.index_cast %1 : i32 to index
    %c0_0 = arith.constant 0 : index
    %c0_1 = arith.constant 0 : index
    %3 = vector.load %arg2[%c0, %2, %c0_0, %c0_1] : memref<1x18x16x128xbf16, #tpu.memory_space<vmem>>, vector<1x18x16x128xbf16>
    %4 = vector.shape_cast %3 : vector<1x18x16x128xbf16> to vector<18x16x128xbf16>
    %5 = vector.shape_cast %4 : vector<18x16x128xbf16> to vector<288x128xbf16>
    %c0_2 = arith.constant 0 : index
    %c0_3 = arith.constant 0 : index
    %6 = vector.load %arg4[%c0_2, %c0_3] : memref<128x128xbf16, #tpu.memory_space<vmem>>, vector<128x128xbf16>
    %cst = arith.constant dense<0.000000e+00> : vector<288x128xf32>
    %7 = tpu.matmul %5, %6, %cst {dimension_numbers = #tpu.dot_dimension_numbers<[1], [0], [0], [1], [0, 0, 1, 1], [], []>} : vector<288x128xbf16>, vector<128x128xbf16>, vector<288x128xf32> -> vector<288x128xf32>
    %c0_4 = arith.constant 0 : index
    %c0_5 = arith.constant 0 : index
    %8 = vector.load %arg5[%c0_4, %c0_5] : memref<1x128xf32, #tpu.memory_space<vmem>>, vector<1x128xf32>
    %9 = vector.broadcast %8 : vector<1x128xf32> to vector<288x128xf32>
    %10 = arith.addf %7, %9 : vector<288x128xf32>
    %c0_6 = arith.constant 0 : index
    %c0_7 = arith.constant 0 : index
    %c0_8 = arith.constant 0 : index
    %c0_9 = arith.constant 0 : index
    %11 = vector.load %arg3[%c0_6, %c0_7, %c0_8, %c0_9] : memref<1x16x16x128xf32, #tpu.memory_space<vmem>>, vector<1x16x16x128xf32>
    %12 = vector.shape_cast %11 : vector<1x16x16x128xf32> to vector<16x16x128xf32>
    %13 = vector.shape_cast %12 : vector<16x16x128xf32> to vector<256x128xf32>
    %cst_10 = arith.constant 0.000000e+00 : f32
    %14 = vector.broadcast %cst_10 : f32 to vector<288x128xf32>
    %15 = arith.maximumf %10, %14 : vector<288x128xf32>
    %16 = vector.shape_cast %15 : vector<288x128xf32> to vector<18x16x128xf32>
    %17 = tpu.iota {dimensions = array<i32: 0>} : vector<18x1x1xi32>
    %18 = vector.broadcast %1 : i32 to vector<18x1x1xi32>
    %19 = arith.addi %17, %18 : vector<18x1x1xi32>
    %c1_i32 = arith.constant 1 : i32
    %20 = vector.broadcast %c1_i32 : i32 to vector<18x1x1xi32>
    %21 = arith.cmpi sge, %19, %20 : vector<18x1x1xi32>
    %c16_i32_11 = arith.constant 16 : i32
    %22 = vector.broadcast %c16_i32_11 : i32 to vector<18x1x1xi32>
    %23 = arith.cmpi sle, %19, %22 : vector<18x1x1xi32>
    %24 = arith.andi %21, %23 : vector<18x1x1xi1>
    %cst_12 = arith.constant 0.000000e+00 : f32
    %25 = vector.shape_cast %24 : vector<18x1x1xi1> to vector<18x1x1xi1>
    %26 = vector.broadcast %25 : vector<18x1x1xi1> to vector<18x16x128xi1>
    %27 = vector.broadcast %cst_12 : f32 to vector<18x16x128xf32>
    %28 = arith.select %26, %16, %27 : vector<18x16x128xi1>, vector<18x16x128xf32>
    %29 = tpu.iota {dimensions = array<i32: 1>} : vector<1x16x1xi32>
    %30 = arith.truncf %28 : vector<18x16x128xf32> to vector<18x16x128xbf16>
    %c0_i32 = arith.constant 0 : i32
    %31 = vector.broadcast %c0_i32 : i32 to vector<1x16x1xi32>
    %32 = arith.cmpi sgt, %29, %31 : vector<1x16x1xi32>
    %c1_i32_13 = arith.constant 1 : i32
    %33 = tpu.dynamic_rotate %28 by %c1_i32_13 dim 1 : vector<18x16x128xf32>, i32 -> vector<18x16x128xf32>
    %cst_14 = arith.constant 0.000000e+00 : f32
    %34 = vector.shape_cast %32 : vector<1x16x1xi1> to vector<1x16x1xi1>
    %35 = vector.broadcast %34 : vector<1x16x1xi1> to vector<18x16x128xi1>
    %36 = vector.broadcast %cst_14 : f32 to vector<18x16x128xf32>
    %37 = arith.select %35, %33, %36 : vector<18x16x128xi1>, vector<18x16x128xf32>
    %38 = arith.truncf %37 : vector<18x16x128xf32> to vector<18x16x128xbf16>
    %c15_i32 = arith.constant 15 : i32
    %39 = vector.broadcast %c15_i32 : i32 to vector<1x16x1xi32>
    %40 = arith.cmpi slt, %29, %39 : vector<1x16x1xi32>
    %c15_i32_15 = arith.constant 15 : i32
    %41 = tpu.dynamic_rotate %28 by %c15_i32_15 dim 1 : vector<18x16x128xf32>, i32 -> vector<18x16x128xf32>
    %cst_16 = arith.constant 0.000000e+00 : f32
    %42 = vector.shape_cast %40 : vector<1x16x1xi1> to vector<1x16x1xi1>
    %43 = vector.broadcast %42 : vector<1x16x1xi1> to vector<18x16x128xi1>
    %44 = vector.broadcast %cst_16 : f32 to vector<18x16x128xf32>
    %45 = arith.select %43, %41, %44 : vector<18x16x128xi1>, vector<18x16x128xf32>
    %46 = arith.truncf %45 : vector<18x16x128xf32> to vector<18x16x128xbf16>
    %47 = vector.extract_strided_slice %38 {offsets = [0, 0, 0], sizes = [16, 16, 128], strides = [1, 1, 1]} : vector<18x16x128xbf16> to vector<16x16x128xbf16>
    %48 = vector.extract_strided_slice %30 {offsets = [0, 0, 0], sizes = [16, 16, 128], strides = [1, 1, 1]} : vector<18x16x128xbf16> to vector<16x16x128xbf16>
    %49 = vector.extract_strided_slice %46 {offsets = [0, 0, 0], sizes = [16, 16, 128], strides = [1, 1, 1]} : vector<18x16x128xbf16> to vector<16x16x128xbf16>
    %50 = vector.extract_strided_slice %38 {offsets = [1, 0, 0], sizes = [16, 16, 128], strides = [1, 1, 1]} : vector<18x16x128xbf16> to vector<16x16x128xbf16>
    %51 = vector.extract_strided_slice %30 {offsets = [1, 0, 0], sizes = [16, 16, 128], strides = [1, 1, 1]} : vector<18x16x128xbf16> to vector<16x16x128xbf16>
    %52 = vector.extract_strided_slice %46 {offsets = [1, 0, 0], sizes = [16, 16, 128], strides = [1, 1, 1]} : vector<18x16x128xbf16> to vector<16x16x128xbf16>
    %53 = vector.extract_strided_slice %38 {offsets = [2, 0, 0], sizes = [16, 16, 128], strides = [1, 1, 1]} : vector<18x16x128xbf16> to vector<16x16x128xbf16>
    %54 = vector.extract_strided_slice %30 {offsets = [2, 0, 0], sizes = [16, 16, 128], strides = [1, 1, 1]} : vector<18x16x128xbf16> to vector<16x16x128xbf16>
    %55 = vector.extract_strided_slice %46 {offsets = [2, 0, 0], sizes = [16, 16, 128], strides = [1, 1, 1]} : vector<18x16x128xbf16> to vector<16x16x128xbf16>
    %56 = tpu.concatenate %47, %48, %49, %50, %51, %52, %53, %54, %55 in 2 : vector<16x16x128xbf16>, vector<16x16x128xbf16>, vector<16x16x128xbf16>, vector<16x16x128xbf16>, vector<16x16x128xbf16>, vector<16x16x128xbf16>, vector<16x16x128xbf16>, vector<16x16x128xbf16>, vector<16x16x128xbf16> -> vector<16x16x1152xbf16>
    %57 = vector.shape_cast %56 : vector<16x16x1152xbf16> to vector<256x1152xbf16>
    %c0_17 = arith.constant 0 : index
    %c0_18 = arith.constant 0 : index
    %58 = vector.load %arg6[%c0_17, %c0_18] : memref<1152x128xbf16, #tpu.memory_space<vmem>>, vector<1152x128xbf16>
    %cst_19 = arith.constant dense<0.000000e+00> : vector<256x128xf32>
    %59 = tpu.matmul %57, %58, %cst_19 {dimension_numbers = #tpu.dot_dimension_numbers<[1], [0], [0], [1], [0, 0, 1, 1], [], []>} : vector<256x1152xbf16>, vector<1152x128xbf16>, vector<256x128xf32> -> vector<256x128xf32>
    %c0_20 = arith.constant 0 : index
    %c0_21 = arith.constant 0 : index
    %60 = vector.load %arg7[%c0_20, %c0_21] : memref<1x128xf32, #tpu.memory_space<vmem>>, vector<1x128xf32>
    %61 = vector.broadcast %60 : vector<1x128xf32> to vector<256x128xf32>
    %62 = arith.addf %59, %61 : vector<256x128xf32>
    %cst_22 = arith.constant 0.000000e+00 : f32
    %63 = vector.broadcast %cst_22 : f32 to vector<256x128xf32>
    %64 = arith.maximumf %62, %63 : vector<256x128xf32>
    %65 = arith.truncf %64 : vector<256x128xf32> to vector<256x128xbf16>
    %c0_23 = arith.constant 0 : index
    %c0_24 = arith.constant 0 : index
    %66 = vector.load %arg8[%c0_23, %c0_24] : memref<128x128xbf16, #tpu.memory_space<vmem>>, vector<128x128xbf16>
    %cst_25 = arith.constant dense<0.000000e+00> : vector<256x128xf32>
    %67 = tpu.matmul %65, %66, %cst_25 {dimension_numbers = #tpu.dot_dimension_numbers<[1], [0], [0], [1], [0, 0, 1, 1], [], []>} : vector<256x128xbf16>, vector<128x128xbf16>, vector<256x128xf32> -> vector<256x128xf32>
    %c0_26 = arith.constant 0 : index
    %c0_27 = arith.constant 0 : index
    %68 = vector.load %arg9[%c0_26, %c0_27] : memref<1x128xf32, #tpu.memory_space<vmem>>, vector<1x128xf32>
    %69 = vector.broadcast %68 : vector<1x128xf32> to vector<256x128xf32>
    %70 = arith.addf %67, %69 : vector<256x128xf32>
    %71 = arith.addf %13, %70 : vector<256x128xf32>
    %cst_28 = arith.constant 0.000000e+00 : f32
    %72 = vector.broadcast %cst_28 : f32 to vector<256x128xf32>
    %73 = arith.maximumf %71, %72 : vector<256x128xf32>
    %74 = vector.shape_cast %73 : vector<256x128xf32> to vector<1x16x16x128xf32>
    %c0_29 = arith.constant 0 : index
    %c0_30 = arith.constant 0 : index
    %c0_31 = arith.constant 0 : index
    %c0_32 = arith.constant 0 : index
    %75 = vector.load %arg10[%c0_29, %c0_30, %c0_31, %c0_32] : memref<1x16x16x128xf32, #tpu.memory_space<vmem>>, vector<1x16x16x128xf32>
    tpu.vector_store %arg10[%c0_29, %c0_30, %c0_31, %c0_32], %74 {strides = array<i32>} : memref<1x16x16x128xf32, #tpu.memory_space<vmem>>, vector<1x16x16x128xf32>,
    return
  }
  func.func @transform_0(%arg0: i32, %arg1: i32) -> (i32, i32, i32, i32) {
    %c0_i32 = arith.constant 0 : i32
    %c0_i32_0 = arith.constant 0 : i32
    %c0_i32_1 = arith.constant 0 : i32
    %c0_i32_2 = arith.constant 0 : i32
    return %arg0, %c0_i32, %c0_i32_0, %c0_i32_1 : i32, i32, i32, i32
  }
  func.func @transform_1(%arg0: i32, %arg1: i32) -> (i32, i32, i32, i32) {
    %c0_i32 = arith.constant 0 : i32
    %c0_i32_0 = arith.constant 0 : i32
    %c0_i32_1 = arith.constant 0 : i32
    return %arg0, %arg1, %c0_i32, %c0_i32_0 : i32, i32, i32, i32
  }
  func.func @transform_2(%arg0: i32, %arg1: i32) -> (i32, i32) {
    %c0_i32 = arith.constant 0 : i32
    %c0_i32_0 = arith.constant 0 : i32
    %c0_i32_1 = arith.constant 0 : i32
    return %c0_i32, %c0_i32_0 : i32, i32
  }
  func.func @transform_3(%arg0: i32, %arg1: i32) -> (i32, i32) {
    %c0_i32 = arith.constant 0 : i32
    %c0_i32_0 = arith.constant 0 : i32
    %c0_i32_1 = arith.constant 0 : i32
    return %c0_i32, %c0_i32_0 : i32, i32
  }
  func.func @transform_4(%arg0: i32, %arg1: i32) -> (i32, i32) {
    %c0_i32 = arith.constant 0 : i32
    %c0_i32_0 = arith.constant 0 : i32
    %c0_i32_1 = arith.constant 0 : i32
    return %c0_i32, %c0_i32_0 : i32, i32
  }
  func.func @transform_5(%arg0: i32, %arg1: i32) -> (i32, i32) {
    %c0_i32 = arith.constant 0 : i32
    %c0_i32_0 = arith.constant 0 : i32
    %c0_i32_1 = arith.constant 0 : i32
    return %c0_i32, %c0_i32_0 : i32, i32
  }
  func.func @transform_6(%arg0: i32, %arg1: i32) -> (i32, i32) {
    %c0_i32 = arith.constant 0 : i32
    %c0_i32_0 = arith.constant 0 : i32
    %c0_i32_1 = arith.constant 0 : i32
    return %c0_i32, %c0_i32_0 : i32, i32
  }
  func.func @transform_7(%arg0: i32, %arg1: i32) -> (i32, i32) {
    %c0_i32 = arith.constant 0 : i32
    %c0_i32_0 = arith.constant 0 : i32
    %c0_i32_1 = arith.constant 0 : i32
    return %c0_i32, %c0_i32_0 : i32, i32
  }
  func.func @transform_8(%arg0: i32, %arg1: i32) -> (i32, i32, i32, i32) {
    %c0_i32 = arith.constant 0 : i32
    %c0_i32_0 = arith.constant 0 : i32
    %c0_i32_1 = arith.constant 0 : i32
    return %arg0, %arg1, %c0_i32, %c0_i32_0 : i32, i32, i32, i32
  }
}

</mosaic_0001>

<bundles_post_ra>
// kernel: tpu_custom_call.1
= control target key start
LH: loop header
LB: loop body
LE: loop exit
PB: predicated region body
PF: predicated region fallthrough
CT: control target
= control target key end

     0   :  { %s6222_s0 = inlined_call_operand.hbm [shape: bf16[2,18,16,128], index: 0, kind: input, shape index: {}]   ;;  %s6223_s1 = inlined_call_operand.hbm [shape: f32[2,16,16,128], index: 1, kind: input, shape index: {}]   ;;  %s6224_s2 = inlined_call_operand.hbm [shape: bf16[128,128], index: 2, kind: input, shape index: {}]   ;;  %s6225_s3 = inlined_call_operand.vmem [shape: f32[1,128], index: 3, kind: input, shape index: {}]   ;;  %s6226_s4 = inlined_call_operand.hbm [shape: bf16[1152,128], index: 4, kind: input, shape index: {}]   ;;  %s6227_s5 = inlined_call_operand.vmem [shape: f32[1,128], index: 5, kind: input, shape index: {}]   ;;  %s6228_s6 = inlined_call_operand.hbm [shape: bf16[128,128], index: 6, kind: input, shape index: {}]   ;;  %s6229_s7 = inlined_call_operand.vmem [shape: f32[1,128], index: 7, kind: input, shape index: {}]   ;;  %s6230_s8 = inlined_call_operand.hbm [shape: f32[2,16,16,128], index: 8, kind: output, shape index: {}]  }
   0x1   :  { %6245 = sst [smem:[#allocation27_spill]] %s6222_s0 }
   0x2   :  { %6246 = sst [smem:[#allocation28_spill]] %s6224_s2 }
   0x3   :  { %6247 = sst [smem:[#allocation29_spill]] %s6226_s4 }
   0x4   :  { %6248 = sst [smem:[#allocation30_spill]] %s6228_s6 }
   0x5   :  { %13 = vsyncpa [#allocation3], 0 }
   0x6   :  { %15 = vsyncpa [#allocation3 + $0x1], 0 }
   0x7   :  { %16 = vsyncpa [#allocation6], 0 }
   0x8   :  { %18 = vsyncpa [#allocation6 + $0x1], 0 }
   0x9   :  { %19 = vsyncpa [#allocation9], 0 }
   0xa   :  { %20 = vsyncpa [#allocation4], 0 }
   0xb   :  { %22 = vsyncpa [#allocation4 + $0x1], 0  ;;  %s4856_s27 = smov 0   ;;  %s4858_s28 = smov 0  }
   0xc   :  { %s4860_s29 = smov 0   ;;  %s4862_s30 = smov 0  }
   0xd   :  { %s4864_s9 = smov 0   ;;  %s4866_s10 = smov 0  }
   0xe LB: > { %6249 = sst [smem:[#allocation17_spill]] %s4774_s27  ;;  %s4887_s11 = sadd.s32 4294967295, %s4794_s10   ;;  %s4794_s10 = sphi %s4866_s10, %s28_s10   ;;  %s4790_s9 = sphi %s4864_s9, %s6294_s9   ;;  %s4786_s30 = sphi %s4862_s30, %s6293_s30   ;;  %s4782_s29 = sphi %s4860_s29, %s6289_s29   ;;  %s4778_s28 = sphi %s4858_s28, %s6292_s28   ;;  %s4774_s27 = sphi %s4856_s27, %s6291_s27  }
   0xf   : > { %6250 = sst [smem:[#allocation18_spill]] %s4782_s29  ;;  %s3246_s12 = sadd.s32 4294967294, %s4794_s10  }
  0x10   : > { %6251 = sst [smem:[#allocation19_spill]] %s4794_s10  ;;  %p60_p0 = scmp.ne.s32.totalorder %s4778_s28, %s4774_s27 }
  0x11   : > { %p6231_p1 = scmp.eq.s32.totalorder %s4887_s11, 0  ;;  %p240_p2 = scmp.eq.s32.totalorder %s4887_s11, 1 }
  0x12   : > { %p246_p3 = scmp.eq.s32.totalorder %s3246_s12, 1  ;;  %p3247_p5 = scmp.ge.s32.totalorder %s4794_s10, 1 }
  0x13   : > { %p4896_p4 = por %p6231_p1, %p60_p0  ;;  %p253_p7 = scmp.lt.s32.totalorder %s4794_s10, 3 }
  0x14   : > { %p4901_p6 = por %p246_p3, %p60_p0  ;;  %s4796_s16 = smov [#allocation7]  }
  0x15   : > { %p4906_p8 = pnand %p3247_p5, %p253_p7  ;;  %s265_s17 = sshll.u32 %s4796_s16, 4  ;;  %s266_s17 = int_to_ptr.vmem [resolvable:$true] %s265_s17 }
  0x16   : > { %s6253_s14 = scalar_select %p4901_p6, 1, 0 }
  0x17   : > { %p4373_p9 = pneg %p4906_p8  ;;  %s4797_s19 = smov [#allocation8]  }
  0x18   : > { %6254 = sst [smem:[#allocation20_spill]] %s6253_s14  ;;  %s281_s20 = sshll.u32 %s4797_s19, 4  ;;  %s282_s20 = int_to_ptr.vmem [resolvable:$true] %s281_s20 }
  0x19   : > { %p4915_p11 = pnand %p4373_p9, %p6231_p1  ;;  %s4798_s21 = smov [#allocation10]  }
  0x1a   : > { %s297_s22 = sshll.u32 %s4798_s21, 4  ;;  %s4579_s23 = scalar_lea.vmem %s266_s17, 1024  ;;  %s298_s22 = int_to_ptr.vmem [resolvable:$true] %s297_s22 }
  0x1b   : > { %p4570_p12 = pneg %p4915_p11  ;;  %p4580_p13 = scmp.ne.s32.totalorder %s266_s17, %s4579_s23 }
  0x1c   : > { %p4587_p5 = scmp.lt.s32.totalorder %s266_s17, %s266_s17  ;;  %p4588_p7 = scmp.lt.s32.totalorder %s4579_s23, %s4579_s23 }
  0x1d   : > { %p4582_p0 = pnand %p4580_p13, %p4570_p12 }
  0x1e   : > { %p4589_p9 = por %p4588_p7, %p4587_p5 }
  0x1f   : > { %p4583_p3 = pneg %p4582_p0 }
  0x21   : > { %p4590_p10 = pnand %p4589_p9, %p4583_p3 }
  0x23   : > { %4593 = shalt.err (!%p4590_p10)
}
  0x24   : > { %s6232_s24 = smov 64   ;;  %s6233_s25 = smov 4  }
  0x25   : > { %s6257_s2 = sld [smem:[#allocation28_spill]]  ;;  %s4605_s16 = scalar_lea.vmem %s282_s20, 9216 }
  0x26   : > { %p4606_p13 = scmp.ne.s32.totalorder %s282_s20, %s4605_s16  ;;  %p4613_p3 = scmp.lt.s32.totalorder %s282_s20, %s282_s20 }
  0x27   : > { %p4614_p10 = scmp.lt.s32.totalorder %s4605_s16, %s4605_s16 }
  0x28   : > { %p4608_p0 = pnand %p4606_p13, %p4570_p12 }
  0x29   : > { %p4615_p7 = por %p4614_p10, %p4613_p3 }
  0x2a   : > { %p4609_p5 = pneg %p4608_p0 }
  0x2b   : > { %4376 = dma.hbm_to_vmem [thread:$0]  (!%p4915_p11), %s6257_s2, 1024, %s266_s17, [#allocation6], %s6232_s24, %s6232_s24, %s6233_s25  }
  0x2c   : > { %p4616_p9 = pnand %p4615_p7, %p4609_p5 }
  0x2e   : > { %4619 = shalt.err (!%p4616_p9)
}
  0x2f   : > { %s6258_s4 = sld [smem:[#allocation29_spill]]  ;;  %s4631_s17 = scalar_lea.vmem %s298_s22, 1024 }
  0x30   : > { %p4632_p1 = scmp.ne.s32.totalorder %s298_s22, %s4631_s17  ;;  %p4639_p3 = scmp.lt.s32.totalorder %s298_s22, %s298_s22 }
  0x31   : > { %p4640_p5 = scmp.lt.s32.totalorder %s4631_s17, %s4631_s17 }
  0x32   : > { %p4634_p13 = pnand %p4632_p1, %p4570_p12 }
  0x33   : > { %p4641_p10 = por %p4640_p5, %p4639_p3 }
  0x34   : > { %p4635_p0 = pneg %p4634_p13 }
  0x35   : > { %4379 = dma.hbm_to_vmem [thread:$0]  (!%p4915_p11), %s6258_s4, 9216, %s282_s20, [#allocation9], %s6232_s24, %s6232_s24, %s6233_s25  }
  0x36   : > { %p4642_p7 = pnand %p4641_p10, %p4635_p0 }
  0x38   : > { %4645 = shalt.err (!%p4642_p7)
}
  0x39   : > { %s6259_s6 = sld [smem:[#allocation30_spill]]  ;;  %s47_s20 = sadd.s32 1, %s4782_s29 }
  0x3a   : > { %s40_s18 = sadd.s32 1, %s4790_s9  ;;  %p54_p1 = scmp.ne.s32.totalorder %s4782_s29, %s4778_s28 }
  0x3b   : > { %p42_p12 = scmp.ge.s32.totalorder %s40_s18, 2  ;;  %p55_p9 = scmp.eq.s32.totalorder %s4794_s10, 0 }
  0x3c   : > { %p4961_p13 = por %p240_p2, %p54_p1  ;;  %p4397_p0 = scmp.lt.s32.totalorder %s4794_s10, 2 }
  0x3d   : > { %s6296_s18 = smov (%p42_p12, %s40_s18), 0  ;;  %p56_p3 = por %p55_p9, %p54_p1 }
  0x3e   : > { %6261 = sst [smem:[#allocation21_spill]] %s6296_s18  ;;  %s4969_s16 = sand.u32 1, %s4782_s29  }
  0x3f   : > { %4382 = dma.hbm_to_vmem [thread:$0]  (!%p4915_p11), %s6259_s6, 1024, %s298_s22, [#allocation9], %s6232_s24, %s6232_s24, %s6233_s25  }
  0x40   : > { %s44_s22 = ssub.s32 %s4790_s9, %s6296_s18  ;;  %s4352_s19 = smul.u32 144, %s4969_s16 }
  0x41   : > { %p45_p11 = scmp.eq.s32.totalorder %s44_s22, 0  ;;  %s4353_s21 = smul.u32 2304, %s4790_s9 }
  0x42   : > { %p4975_p5 = pnand %p4397_p0, %p56_p3  ;;  %s6264_s0 = sld [smem:[#allocation27_spill]] }
  0x43   : > { %s4980_s23 = scalar_select %p45_p11, %s4782_s29, %s47_s20  }
  0x44   : > { %s318_s2 = scalar_lea.vmem [#allocation2], %s4352_s19  ;;  %s335_s6 = sand.u32 1, %s4794_s10  }
  0x45   : > { %6263 = sst [smem:[#allocation22_spill]] %s4980_s23  ;;  %s325_s4 = sshll.u32 %s318_s2, 4  ;;  %s326_s4 = int_to_ptr.vmem [resolvable:$true] %s325_s4 }
  0x46   : > { %s315_s18 = scalar_lea.sflag [#allocation3], %s4969_s16  ;;  %p4648_p2 = pneg %p4975_p5 }
  0x47   : > { %s4659_s22 = scalar_lea.vmem %s326_s4, 2304  ;;  %s4801_s14 = smov [#allocation2]  }
  0x48   : > { %s324_s25 = scalar_lea.hbm %s6264_s0, %s4353_s21  ;;  %p4660_p10 = scmp.ne.s32.totalorder %s326_s4, %s4659_s22 }
  0x49   : > { %s4664_s20 = sshll.u32 %s4801_s14, 4  ;;  %s4665_s20 = int_to_ptr.vmem [resolvable:$false] %s4664_s20 }
  0x4a   : > { %p4662_p7 = pnand %p4660_p10, %p4648_p2  ;;  %s4666_s23 = scalar_lea.vmem %s4665_s20, 4608 }
  0x4b   : > { %p4667_p12 = scmp.lt.s32.totalorder %s326_s4, %s4665_s20  ;;  %p4668_p9 = scmp.lt.s32.totalorder %s4666_s23, %s4659_s22 }
  0x4c   : > { %p4663_p1 = pneg %p4662_p7 }
  0x4d   : > { %p4669_p0 = por %p4668_p9, %p4667_p12 }
  0x4f   : > { %p4670_p3 = pnand %p4669_p0, %p4663_p1 }
  0x51   : > { %4673 = shalt.err (!%p4670_p3)
}
  0x52   : > { %s6265_s2 = smov 4   ;;  %s6266_s24 = smov 64  }
  0x53   : > { %4386 = dma.hbm_to_vmem [thread:$0]  (!%p4975_p5), %s324_s25, 2304, %s326_s4, %s315_s18, %s6266_s24, %s6266_s24, %s6265_s2  }
  0x54   : > { %s3253_s19 = sshll.u32 %s4969_s16, 8  ;;  %s3664_s21 = sshll.u32 %s4790_s9, 12 }
  0x55   : > { %s348_s0 = scalar_lea.hbm %s6223_s1, %s3664_s21  ;;  %s339_s20 = scalar_lea.vmem [#allocation5], %s3253_s19 }
  0x56   : > { %s349_s23 = sshll.u32 %s339_s20, 4  ;;  %s336_s22 = scalar_lea.sflag [#allocation6], %s335_s6  ;;  %s350_s23 = int_to_ptr.vmem [resolvable:$true] %s349_s23 }
  0x57   : > { %s4687_s29 = scalar_lea.vmem %s350_s23, 4096  ;;  %s4802_s10 = smov [#allocation5]  }
  0x58   : > { %p4688_p11 = scmp.ne.s32.totalorder %s350_s23, %s4687_s29  ;;  %s4692_s27 = sshll.u32 %s4802_s10, 4  ;;  %s4693_s27 = int_to_ptr.vmem [resolvable:$false] %s4692_s27 }
  0x59   : > { %s4694_s4 = scalar_lea.vmem %s4693_s27, 8192  ;;  %p4695_p1 = scmp.lt.s32.totalorder %s350_s23, %s4693_s27 }
  0x5a   : > { %p4690_p10 = pnand %p4688_p11, %p4648_p2  ;;  %p4696_p12 = scmp.lt.s32.totalorder %s4694_s4, %s4687_s29 }
  0x5c   : > { %p4691_p7 = pneg %p4690_p10  ;;  %p4697_p9 = por %p4696_p12, %p4695_p1 }
  0x5e   : > { %p4698_p0 = pnand %p4697_p9, %p4691_p7 }
  0x60   : > { %4701 = shalt.err (!%p4698_p0)
}
  0x61   : > { %s4803_s25 = smov 128   ;;  %s4804_s18 = smov 8  }
  0x62   : > { %4389 = dma.hbm_to_vmem [thread:$0]  (!%p4975_p5), %s348_s0, 4096, %s350_s23, %s336_s22, %s4803_s25, %s4803_s25, %s4804_s18  }
  0x63   : > { %361 = sbr.rel (%p4906_p8) target bundleno = 1099 (0x44b), region = 52 }
  0x68   : > { %s5010_s6 = sand.u32 1, %s4778_s28  }
  0x69   : > { %s4354_s10 = smul.u32 144, %s5010_s6  ;;  %s364_s27 = scalar_lea.sflag [#allocation3], %s5010_s6 }
  0x6b   : > { %s5014_s29 = scalar_lea.vmem [#allocation2], %s4354_s10 }
  0x6c   : > { %4753 = dma.done.wait (%p4896_p4), %s364_s27, 2304  }
  0x6d   : > { %4755 = vsyncadd (%p4896_p4), %s364_s27, 4294964992  ;;  %s372_s0 = sand.u32 1, %s4887_s11   ;;  %s3257_s15 = sshll.u32 %s5010_s6, 8 }
  0x6e   : > { %s373_s16 = scalar_lea.sflag [#allocation6], %s372_s0  ;;  %s5024_s17 = scalar_lea.vmem [#allocation5], %s3257_s15 }
  0x6f   : > { %4757 = dma.done.wait (%p4896_p4), %s373_s16, 4096  }
  0x70   : > { %4759 = vsyncadd (%p4896_p4), %s373_s16, 4294963200  ;;  %p6267_p8 = scmp.eq.s32.totalorder %s4887_s11, 0 }
  0x72   : > { %4761 = dma.done.wait (%p6267_p8), [#allocation6], 1024   ;;  %p6268_p5 = pmov %p6267_p8 }
  0x74   : > { %4763 = vsyncadd (%p6268_p5), [#allocation6], 4294966272  ;;  %p6269_p2 = pmov %p6268_p5 }
  0x76   : > { %4765 = dma.done.wait (%p6269_p2), [#allocation9], 10240   ;;  %p6270_p3 = pmov %p6269_p2 }
  0x77   : > { %v4462_v0 = vld [vmem:[#allocation7 + $0x38] sm:$0xff]   ;;  %v4463_v1 = vld [vmem:[#allocation7 + $0x30] sm:$0xff]   ;;  %v4464_v2 = vld [vmem:[#allocation7 + $0x28] sm:$0xff]   ;;  %v1037_v55 = vlaneseq  ;;  %v4805_v58 = vmov 0.0   ;;  %v6240_v61 = vmov 0.0|0.0   ;;  %vm4807_vm1 = vmmov 1  }
  0x78   : > { %4767 = vsyncadd (%p6270_p3), [#allocation9], 4294957056  ;;  %4188 = vmatprep.subr.bf16.mxu0 %v4462_v0  ;;  %v4465_v3 = vld [vmem:[#allocation7 + $0x20] sm:$0xff]   ;;  %v4466_v5 = vld [vmem:[#allocation7 + $0x18] sm:$0xff]   ;;  %v1060_v59 = vrot.slane %v4805_v58, 7  ;;  %1939 = vmatprep.mubr.bf16.mxu1 %v6240_v61  ;;  %s6076_s26 = scalar_lea.vmem [#allocation11], %s3257_s15 }
  0x79   : > { %4189 = vmatpush3.bf16.msra.mxu0 %v4462_v0  ;;  %v4470_v4 = vld [vmem:[%s5014_s29] sm:$0xff]   ;;  %v4468_v7 = vld [vmem:[#allocation7 + $0x8] sm:$0xff]   ;;  %v4488_v9 = vld [vmem:[#allocation8 + $0xf8] sm:$0xff]   ;;  %v5056_v57 = vshrl.u32 %v1037_v55, 7  ;;  %s3665_s14 = sshll.u32 %s4786_s30, 12  ;;  %s3105_s20 = sshll.u32 %s6076_s26, 4  ;;  %s6172_s20 = int_to_ptr.vmem [resolvable:$true] %s3105_s20 }
  0x7a   : > { %4190 = vmatprep.subr.bf16.mxu0 %v4463_v1  ;;  %4204 = vmatprep.mubr.bf16.mxu0 %v4470_v4  ;;  %v4467_v6 = vld [vmem:[#allocation7 + $0x10] sm:$0xff]   ;;  %v4469_v8 = vld [vmem:[#allocation7] sm:$0xff]   ;;  %v4471_v10 = vld [vmem:[%s5014_s29 + $0x8] sm:$0xff]   ;;  %v5059_v60 = vpack.c.bf16 %v1060_v59, %v1060_v59  ;;  %s6170_s4 = scalar_lea.hbm %s6230_s8, %s3665_s14  ;;  %s3089_s25 = scalar_lea.sflag [#allocation4], %s5010_s6 }
  0x7b   : > { %v4472_v11 = vld [vmem:[%s5014_s29 + $0x10] sm:$0xff]   ;;  %v4489_v12 = vld [vmem:[#allocation8 + $0xb8] sm:$0xff]   ;;  %v4492_v15 = vld [vmem:[#allocation8 + $0xe8] sm:$0xff]   ;;  %vm1058_vm0 = vcmp.gt.s32.totalorder %v5056_v57, 0  ;;  %vm1096_vm5 = vcmp.lt.s32.totalorder %v5056_v57, 1  ;;  %vm1229_vm6 = vcmp.lt.s32.totalorder %v5056_v57, 7 }
  0x7c   : > { %v4490_v13 = vld [vmem:[#allocation8 + $0xf0] sm:$0xff]   ;;  %v4496_v16 = vld [vmem:[#allocation8 + $0x78] sm:$0xff]   ;;  %v4493_v22 = vld [vmem:[#allocation8 + $0xa8] sm:$0xff]   ;;  %6271 = vst [vmem:[#allocation23_spill] sm:$0xff] %v5059_v60  ;;  %s4702_s18 = scalar_lea.vmem %s6172_s20, 4096  ;;  %s4808_s30 = smov [#allocation11]  }
  0x7d   : > { %4191 = vmatpush3.bf16.msra.mxu0 %v4463_v1  ;;  %v4491_v14 = vld [vmem:[#allocation8 + $0xb0] sm:$0xff]   ;;  %v4497_v17 = vld [vmem:[#allocation8 + $0x38] sm:$0xff]   ;;  %3692 = vmatprep.subr.bf16.mxu1 %v4496_v16  ;;  %v4494_v23 = vld [vmem:[#allocation8 + $0xe0] sm:$0xff]   ;;  %v1039_v1 = vadd.s32 8, %v5056_v57  ;;  %p4703_p4 = scmp.ne.s32.totalorder %s6172_s20, %s4702_s18  ;;  %s4706_s10 = sshll.u32 %s4808_s30, 4  ;;  %s4707_s10 = int_to_ptr.vmem [resolvable:$false] %s4706_s10 }
  0x7e   : > { %4192 = vmatprep.subr.bf16.mxu0 %v4464_v2  ;;  %v4473_v18 = vld [vmem:[%s5014_s29 + $0x18] sm:$0xff]   ;;  %v4498_v19 = vld [vmem:[#allocation8 + $0x70] sm:$0xff]   ;;  %3693 = vmatpush3.bf16.msra.mxu1 %v4497_v17  ;;  %v4504_v26 = vld [vmem:[#allocation8 + $0x60] sm:$0xff]   ;;  %s4708_s27 = scalar_lea.vmem %s4707_s10, 8192  ;;  %p4709_p7 = scmp.lt.s32.totalorder %s6172_s20, %s4707_s10 }
  0x7f   : > { %v4474_v20 = vld [vmem:[%s5014_s29 + $0x20] sm:$0xff]   ;;  %3694 = vmatprep.subr.bf16.mxu1 %v4498_v19  ;;  %v4502_v24 = vld [vmem:[#allocation8 + $0x68] sm:$0xff]   ;;  %v4500_v29 = vld [vmem:[#allocation8 + $0xd8] sm:$0xff]   ;;  %vm1192_vm3 = vcmp.lt.s32.totalorder %v1039_v1, 15  ;;  %p4704_p11 = pnand %p4703_p4, %p4961_p13  ;;  %p4710_p1 = scmp.lt.s32.totalorder %s4708_s27, %s4702_s18 }
  0x80   : > { %v4499_v21 = vld [vmem:[#allocation8 + $0x30] sm:$0xff]   ;;  %v4503_v25 = vld [vmem:[#allocation8 + $0x28] sm:$0xff]   ;;  %v4495_v27 = vld [vmem:[#allocation8 + $0xa0] sm:$0xff]  }
  0x81   : > { %4193 = vmatpush3.bf16.msra.mxu0 %v4464_v2  ;;  %v4475_v28 = vld [vmem:[%s5014_s29 + $0x28] sm:$0xff]   ;;  %v4476_v30 = vld [vmem:[%s5014_s29 + $0x30] sm:$0xff]   ;;  %v4477_v39 = vld [vmem:[%s5014_s29 + $0x38] sm:$0xff]   ;;  %p4705_p10 = pneg %p4704_p11  ;;  %p4711_p12 = por %p4710_p1, %p4709_p7 }
  0x82   : > { %4194 = vmatprep.subr.bf16.mxu0 %v4465_v3  ;;  %3695 = vmatpush3.bf16.msra.mxu1 %v4499_v21  ;;  %v4505_v31 = vld [vmem:[#allocation8 + $0x20] sm:$0xff]   ;;  %v4507_v32 = vld [vmem:[#allocation8 + $0x58] sm:$0xff]   ;;  %v4506_v34 = vld [vmem:[#allocation8 + $0xd0] sm:$0xff]  }
  0x83   : > { %3696 = vmatprep.subr.bf16.mxu1 %v4502_v24  ;;  %v4501_v33 = vld [vmem:[#allocation8 + $0x98] sm:$0xff]   ;;  %v4508_v35 = vld [vmem:[#allocation8 + $0x90] sm:$0xff]   ;;  %v4512_v40 = vld [vmem:[#allocation8 + $0x48] sm:$0xff]   ;;  %p4712_p9 = pnand %p4711_p12, %p4705_p10 }
  0x84   : > { %v4509_v36 = vld [vmem:[#allocation8 + $0x18] sm:$0xff]   ;;  %v4510_v37 = vld [vmem:[#allocation8 + $0x50] sm:$0xff]   ;;  %v4513_v41 = vld [vmem:[#allocation8 + $0xc8] sm:$0xff]  }
  0x85   : > { %4195 = vmatpush3.bf16.msra.mxu0 %v4465_v3  ;;  %v4511_v38 = vld [vmem:[#allocation8 + $0x10] sm:$0xff]   ;;  %v4515_v43 = vld [vmem:[#allocation8 + $0x88] sm:$0xff]   ;;  %v4516_v54 = vld [vmem:[#allocation8 + $0x40] sm:$0xff]  }
  0x86   : > { %4196 = vmatprep.subr.bf16.mxu0 %v4466_v5  ;;  %3697 = vmatpush3.bf16.msra.mxu1 %v4503_v25  ;;  %v4478_v42 = vld [vmem:[%s5014_s29 + $0x40] sm:$0xff]   ;;  %v4514_v44 = vld [vmem:[#allocation8 + $0x8] sm:$0xff]   ;;  %v4480_v46 = vld [vmem:[%s5014_s29 + $0x50] sm:$0xff]  }
  0x87   : > { %3698 = vmatprep.subr.bf16.mxu1 %v4504_v26  ;;  %v4479_v45 = vld [vmem:[%s5014_s29 + $0x48] sm:$0xff]   ;;  %v4481_v47 = vld [vmem:[%s5014_s29 + $0x58] sm:$0xff]   ;;  %v4482_v48 = vld [vmem:[%s5014_s29 + $0x60] sm:$0xff]  }
  0x88   : > { %v4483_v49 = vld [vmem:[%s5014_s29 + $0x68] sm:$0xff]   ;;  %v4484_v50 = vld [vmem:[%s5014_s29 + $0x70] sm:$0xff]   ;;  %v4485_v51 = vld [vmem:[%s5014_s29 + $0x78] sm:$0xff]  }
  0x89   : > { %4197 = vmatpush3.bf16.msra.mxu0 %v4466_v5  ;;  %v4486_v52 = vld [vmem:[%s5014_s29 + $0x80] sm:$0xff]   ;;  %v4487_v53 = vld [vmem:[%s5014_s29 + $0x88] sm:$0xff]   ;;  %vm5062_vm2 = vmpackc.low %vm4807_vm1, %vm1058_vm0 }
  0x8a   : > { %4198 = vmatprep.subr.bf16.mxu0 %v4467_v6  ;;  %3699 = vmatpush3.bf16.msra.mxu1 %v4505_v31  ;;  %v4517_v56 = vld [vmem:[#allocation8] sm:$0xff]   ;;  %vm5070_vm4 = vmpackc.low %vm1192_vm3, %vm4807_vm1  ;;  %v4520_v3 = vld [vmem:[#allocation8 + $0x1f8] sm:$0xff]  }
  0x8b   : > { %3700 = vmatprep.subr.bf16.mxu1 %v4507_v32  ;;  %v4518_v63 = vld [vmem:[#allocation8 + $0xc0] sm:$0xff]   ;;  %v4524_v4 = vld [vmem:[#allocation8 + $0x178] sm:$0xff]   ;;  %v4548_v21 = vld [vmem:[#allocation8 + $0x108] sm:$0xff]  }
  0x8c   : > { %v4519_v0 = vld [vmem:[#allocation8 + $0x80] sm:$0xff]   ;;  %v4526_v5 = vld [vmem:[#allocation8 + $0x138] sm:$0xff]  }
  0x8d   : > { %4199 = vmatpush3.bf16.msra.mxu0 %v4467_v6  ;;  %v4528_v6 = vld [vmem:[#allocation8 + $0x170] sm:$0xff]   ;;  %v5077_v16 = vld [vmem:[%s6225_s3] ss:$0 sm:$0xff] }
  0x8e   : > { %4200 = vmatprep.subr.bf16.mxu0 %v4468_v7  ;;  %3701 = vmatpush3.bf16.msra.mxu1 %v4509_v36  ;;  %v4551_v26 = vld [vmem:[#allocation8 + $0x100] sm:$0xff]  }
  0x8f   : > { %3702 = vmatprep.subr.bf16.mxu1 %v4510_v37  ;;  %v4555_v57 = vld [vmem:[#allocation8 + $0x220] sm:$0xff]  }
  0x91   : > { %4201 = vmatpush3.bf16.msra.mxu0 %v4468_v7  ;;  %v4530_v7 = vld [vmem:[#allocation8 + $0x130] sm:$0xff]  }
  0x92   : > { %4202 = vmatprep.subr.bf16.mxu0 %v4469_v8  ;;  %3703 = vmatpush3.bf16.msra.mxu1 %v4511_v38 }
  0x93   : > { %3704 = vmatprep.subr.bf16.mxu1 %v4512_v40 }
  0x95   : > { %4203 = vmatpush3.bf16.msra.mxu0 %v4469_v8  ;;  %v4532_v8 = vld [vmem:[#allocation8 + $0x168] sm:$0xff]  }
  0x96   : > { %3804 = vmatprep.subr.bf16.mxu0 %v4488_v9  ;;  %3705 = vmatpush3.bf16.msra.mxu1 %v4514_v44  ;;  %v4534_v9 = vld [vmem:[#allocation8 + $0x128] sm:$0xff]   ;;  %v4522_v44 = vld [vmem:[#allocation8 + $0x1f0] sm:$0xff]  }
  0x97   : > { %3706 = vmatprep.subr.bf16.mxu1 %v4516_v54 }
  0x98   : > { %4205 = vmatmul.mubr.bf16.vlgmr.msra.gmra.mxu0 %v4471_v10  ;;  %v4536_v10 = vld [vmem:[#allocation8 + $0x160] sm:$0xff]  }
  0x99   : > { %4208 = vmatprep.mubr.bf16.mxu0 %v4472_v11  ;;  %3805 = vmatpush3.bf16.msra.mxu0 %v4489_v12  ;;  %v4538_v11 = vld [vmem:[#allocation8 + $0x120] sm:$0xff]   ;;  %v4540_v12 = vld [vmem:[#allocation8 + $0x158] sm:$0xff]  }
  0x9a   : > { %3806 = vmatprep.subr.bf16.mxu0 %v4490_v13  ;;  %3707 = vmatpush3.bf16.msra.mxu1 %v4517_v56  ;;  %v4542_v13 = vld [vmem:[#allocation8 + $0x118] sm:$0xff]  }
  0x9b   : > { %3916 = vmatprep.subr.bf16.mxu1 %v4524_v4  ;;  %v5112_v56 = vld [vmem:[#allocation8 + $0x238] sm:$0xff]  }
  0x9d   : > { %3807 = vmatpush3.bf16.msra.mxu0 %v4491_v14  ;;  %3364 = vmatmul.mubr.msk.bf16.vlgmr.msra.gmra.mxu1 %vm5062_vm2, %v5059_v60  ;;  %v4544_v14 = vld [vmem:[#allocation8 + $0x150] sm:$0xff]  }
  0x9e   : > { %3808 = vmatprep.subr.bf16.mxu0 %v4492_v15  ;;  %3917 = vmatpush3.bf16.msra.mxu1 %v4526_v5  ;;  %v4545_v15 = vld [vmem:[#allocation8 + $0x110] sm:$0xff]   ;;  %v4527_v5 = vld [vmem:[#allocation8 + $0x1a8] sm:$0xff]  }
  0x9f   : > { %3918 = vmatprep.subr.bf16.mxu1 %v4528_v6 }
  0xa0   : > { %4209 = vmatmul.mubr.bf16.gmra.mxu0 %v4473_v18 }
  0xa1   : > { %4212 = vmatprep.mubr.bf16.mxu0 %v4474_v20  ;;  %3809 = vmatpush3.bf16.msra.mxu0 %v4493_v22  ;;  %v4546_v20 = vld [vmem:[#allocation8 + $0x148] sm:$0xff]  }
  0xa2   : > { %3810 = vmatprep.subr.bf16.mxu0 %v4494_v23  ;;  %3919 = vmatpush3.bf16.msra.mxu1 %v4530_v7  ;;  %v4550_v23 = vld [vmem:[#allocation8 + $0x140] sm:$0xff]  }
  0xa3   : > { %3920 = vmatprep.subr.bf16.mxu1 %v4532_v8  ;;  %v4529_v8 = vld [vmem:[#allocation8 + $0x1e0] sm:$0xff]  }
  0xa5   : > { %3811 = vmatpush3.bf16.msra.mxu0 %v4495_v27 }
  0xa6   : > { %3812 = vmatprep.subr.bf16.mxu0 %v4500_v29  ;;  %3921 = vmatpush3.bf16.msra.mxu1 %v4534_v9  ;;  %v1193_v29 = vrot.slane %v4805_v58, 1 }
  0xa7   : > { %3922 = vmatprep.subr.bf16.mxu1 %v4536_v10 }
  0xa8   : > { %4213 = vmatmul.mubr.bf16.gmra.mxu0 %v4475_v28 }
  0xa9   : > { %4216 = vmatprep.mubr.bf16.mxu0 %v4476_v30  ;;  %3813 = vmatpush3.bf16.msra.mxu0 %v4501_v33 }
  0xaa   : > { %3814 = vmatprep.subr.bf16.mxu0 %v4506_v34  ;;  %3923 = vmatpush3.bf16.msra.mxu1 %v4538_v11 }
  0xab   : > { %3924 = vmatprep.subr.bf16.mxu1 %v4540_v12 }
  0xad   : > { %3815 = vmatpush3.bf16.msra.mxu0 %v4508_v35  ;;  %v5088_v35 = vpack.c.bf16 %v1193_v29, %v1193_v29 }
  0xae   : > { %3816 = vmatprep.subr.bf16.mxu0 %v4513_v41  ;;  %3925 = vmatpush3.bf16.msra.mxu1 %v4542_v13  ;;  %v4521_v41 = vld [vmem:[#allocation8 + $0x1b8] sm:$0xff]  }
  0xaf   : > { %3926 = vmatprep.subr.bf16.mxu1 %v4544_v14  ;;  %6276 = vst [vmem:[#allocation24_spill] sm:$0xff] %v5088_v35 }
  0xb0   : > { %4217 = vmatmul.mubr.bf16.gmra.mxu0 %v4477_v39 }
  0xb1   : > { %4220 = vmatprep.mubr.bf16.mxu0 %v4478_v42  ;;  %3817 = vmatpush3.bf16.msra.mxu0 %v4515_v43 }
  0xb2   : > { %3818 = vmatprep.subr.bf16.mxu0 %v4518_v63  ;;  %3927 = vmatpush3.bf16.msra.mxu1 %v4545_v15 }
  0xb3   : > { %3928 = vmatprep.subr.bf16.mxu1 %v4546_v20  ;;  %v4531_v20 = vld [vmem:[#allocation8 + $0x1a0] sm:$0xff]  }
  0xb5   : > { %3819 = vmatpush3.bf16.msra.mxu0 %v4519_v0 }
  0xb6   : > { %4028 = vmatprep.subr.bf16.mxu0 %v4520_v3  ;;  %3929 = vmatpush3.bf16.msra.mxu1 %v4548_v21 }
  0xb7   : > { %3930 = vmatprep.subr.bf16.mxu1 %v4550_v23 }
  0xb8   : > { %4221 = vmatmul.mubr.bf16.gmra.mxu0 %v4479_v45 }
  0xb9   : > { %4224 = vmatprep.mubr.bf16.mxu0 %v4480_v46 }
  0xba   : > { %3931 = vmatpush3.bf16.msra.mxu1 %v4551_v26 }
  0xbb   : > { %4336 = vmatprep.subr.bf16.mxu1 %v5112_v56 }
  0xc0   : > { %4225 = vmatmul.mubr.bf16.gmra.mxu0 %v4481_v47 }
  0xc1   : > { %4228 = vmatprep.mubr.bf16.mxu0 %v4482_v48 }
  0xc8   : > { %4229 = vmatmul.mubr.bf16.gmra.mxu0 %v4483_v49 }
  0xc9   : > { %4232 = vmatprep.mubr.bf16.mxu0 %v4484_v50  ;;  %v4523_v50 = vld [vmem:[#allocation8 + $0x1b0] sm:$0xff]  }
  0xd0   : > { %4233 = vmatmul.mubr.bf16.gmra.mxu0 %v4485_v51 }
  0xd1   : > { %4236 = vmatprep.mubr.bf16.mxu0 %v4486_v52 }
  0xd8   : > { %4237 = vmatmul.mubr.bf16.gmra.mxu0 %v4487_v53  ;;  %v4525_v53 = vld [vmem:[#allocation8 + $0x1e8] sm:$0xff]  }
 0x158   : > { %v4206_v17 = vpop.f32.mrf.mxu0 }
 0x159   : > { %v691_v18 = vadd.f32 %v4206_v17, %v5077_v16 }
 0x15a   : > { %v682_v19 = vpop.f32.mrf.mxu0 }
 0x15b   : > { %v5080_v24 = vmax.f32 %v691_v18, 0.0 }
 0x15c   : > { %v4207_v22 = vpop.f32.mrf.mxu0 }
 0x15d   : > { %v694_v25 = vadd.f32 %v4207_v22, %v5077_v16  ;;  %v1061_v31 = vrot.slane %v5080_v24, 7  ;;  %v1194_v0 = vrot.slane %v5080_v24, 1 }
 0x15e   : > { %v685_v27 = vpop.f32.mrf.mxu0 }
 0x15f   : > { %v860_v28 = vmax.f32 %v694_v25, 0.0  ;;  %v4533_v25 = vld [vmem:[#allocation8 + $0x1d8] sm:$0xff]  }
 0x160   : > { %v4210_v30 = vpop.f32.mrf.mxu0 }
 0x161   : > { %v1079_v32 = vrot.slane %v860_v28, 7  ;;  %v5086_v33 = vpack.c.bf16 %v860_v28, %v5080_v24  ;;  %v707_v42 = vadd.f32 %v4210_v30, %v5077_v16  ;;  %v1212_v54 = vrot.slane %v860_v28, 1 }
 0x162   : > { %v698_v34 = vpop.f32.mrf.mxu0 }
 0x163   : > { %1947 = vmatprep.mubr.bf16.mxu1 %v5086_v33  ;;  %v1098_v36 = vsel %vm1096_vm5, %v1061_v31, %v1079_v32  ;;  %v1116_v37 = vsel %vm1096_vm5, %v1079_v32, %v1061_v31  ;;  %v699_v38 = vadd.f32 %v5077_v16, %v698_v34  ;;  %v5110_v51 = vmax.f32 %v707_v42, 0.0 }
 0x164   : > { %v4211_v39 = vpop.f32.mrf.mxu0  ;;  %v3366_v40 = vpack.c.bf16 %v1098_v36, %v1116_v37  ;;  %v1231_v12 = vsel %vm1229_vm6, %v1194_v0, %v1212_v54  ;;  %v1249_v13 = vsel %vm1229_vm6, %v1212_v54, %v1194_v0  ;;  %v4535_v36 = vld [vmem:[#allocation8 + $0x198] sm:$0xff]   ;;  %v4541_v54 = vld [vmem:[#allocation8 + $0x1c8] sm:$0xff]  }
 0x165   : > { %v710_v43 = vadd.f32 %v4211_v39, %v5077_v16  ;;  %v5108_v48 = vmax.f32 %v699_v38, 0.0  ;;  %v1063_v6 = vrot.slane %v5110_v51, 7  ;;  %v5151_v24 = vpack.c.bf16 %v1249_v13, %v1231_v12  ;;  %v4537_v39 = vld [vmem:[#allocation8 + $0x1d0] sm:$0xff]   ;;  %v4549_v13 = vld [vmem:[#allocation8 + $0x180] sm:$0xff]  }
 0x166   : > { %v701_v45 = vpop.f32.mrf.mxu0  ;;  %3367 = vmatmul.mubr.msk.bf16.gmra.mxu1 %vm5062_vm2, %v3366_v40  ;;  %3412 = vmatprep.mubr.msk.bf16.mxu0 %vm5062_vm2, %v3366_v40  ;;  %v1196_v0 = vrot.slane %v5110_v51, 1 }
 0x167   : > { %v5102_v46 = vmax.f32 %v710_v43, 0.0  ;;  %v702_v47 = vadd.f32 %v5077_v16, %v701_v45  ;;  %3415 = vmatmul.mubr.msk.bf16.vlgmr.msra.gmra.mxu0 %vm5070_vm4, %v5088_v35  ;;  %v1062_v1 = vrot.slane %v5108_v48, 7  ;;  %v1195_v32 = vrot.slane %v5108_v48, 1 }
 0x168   : > { %4029 = vmatpush3.bf16.msra.mxu0 %v4521_v41  ;;  %v4214_v49 = vpop.f32.mrf.mxu0 }
 0x169   : > { %v862_v52 = vmax.f32 %v702_v47, 0.0  ;;  %4030 = vmatprep.subr.bf16.mxu0 %v4522_v44  ;;  %v1081_v58 = vrot.slane %v5102_v46, 7  ;;  %v5149_v23 = vpack.c.bf16 %v5102_v46, %v5110_v51  ;;  %v723_v29 = vadd.f32 %v4214_v49, %v5077_v16 }
 0x16a   : > { %v714_v55 = vpop.f32.mrf.mxu0 }
 0x16b   : > { %v1080_v59 = vrot.slane %v862_v52, 7  ;;  %v715_v63 = vadd.f32 %v5077_v16, %v714_v55  ;;  %v5120_v3 = vpack.c.bf16 %v862_v52, %v5108_v48  ;;  %v1100_v15 = vsel %vm1096_vm5, %v1063_v6, %v1081_v58  ;;  %v4539_v48 = vld [vmem:[#allocation8 + $0x190] sm:$0xff]  }
 0x16c   : > { %v4215_v4 = vpop.f32.mrf.mxu0  ;;  %4031 = vmatpush3.bf16.msra.mxu0 %v4523_v50  ;;  %v1118_v17 = vsel %vm1096_vm5, %v1081_v58, %v1063_v6  ;;  %v1213_v26 = vrot.slane %v862_v52, 1  ;;  %v5180_v43 = vmax.f32 %v723_v29, 0.0  ;;  %v1214_v55 = vrot.slane %v5102_v46, 1  ;;  %v4547_v6 = vld [vmem:[#allocation8 + $0x1c0] sm:$0xff]  }
 0x16d   : > { %v5123_v7 = vmax.f32 %v715_v63, 0.0  ;;  %4032 = vmatprep.subr.bf16.mxu0 %v4525_v53  ;;  %1955 = vmatprep.mubr.bf16.mxu1 %v5120_v3  ;;  %v1099_v10 = vsel %vm1096_vm5, %v1062_v1, %v1080_v59  ;;  %v1117_v11 = vsel %vm1096_vm5, %v1080_v59, %v1062_v1  ;;  %v5159_v27 = vpack.c.bf16 %v1100_v15, %v1118_v17  ;;  %v4543_v1 = vld [vmem:[#allocation8 + $0x188] sm:$0xff]  }
 0x16e   : > { %v717_v9 = vpop.f32.mrf.mxu0  ;;  %v5140_v18 = vpack.c.bf16 %v1099_v10, %v1117_v11  ;;  %v726_v30 = vadd.f32 %v4215_v4, %v5077_v16  ;;  %v1232_v40 = vsel %vm1229_vm6, %v1195_v32, %v1213_v26  ;;  %v1250_v41 = vsel %vm1229_vm6, %v1213_v26, %v1195_v32 }
 0x16f   : > { %v718_v14 = vadd.f32 %v5077_v16, %v717_v9  ;;  %v1064_v21 = vrot.slane %v5123_v7, 7  ;;  %v5192_v50 = vpack.c.bf16 %v1250_v41, %v1232_v40  ;;  %v1065_v59 = vrot.slane %v5180_v43, 7 }
 0x170   : > { %v5142_v19 = vpop.f32.mrf.mxu0  ;;  %4033 = vmatpush3.bf16.msra.mxu0 %v4527_v5  ;;  %3370 = vmatmul.mubr.msk.bf16.gmra.mxu1 %vm5062_vm2, %v5140_v18  ;;  %v5182_v44 = vmax.f32 %v726_v30, 0.0  ;;  %v1251_v51 = vsel %vm1229_vm6, %v1214_v55, %v1196_v0 }
 0x171   : > { %v5145_v22 = vmax.f32 %v718_v14, 0.0  ;;  %4034 = vmatprep.subr.bf16.mxu0 %v4529_v8  ;;  %3418 = vmatprep.mubr.msk.bf16.mxu0 %vm5062_vm2, %v5140_v18  ;;  %v1233_v8 = vsel %vm1229_vm6, %v1196_v0, %v1214_v55  ;;  %v739_v29 = vadd.f32 %v5142_v19, %v5077_v16 }
 0x172   : > { %v730_v28 = vpop.f32.mrf.mxu0  ;;  %1963 = vmatprep.mubr.bf16.mxu1 %v5149_v23  ;;  %3421 = vmatmul.mubr.msk.bf16.gmra.mxu0 %vm5070_vm4, %v5151_v24  ;;  %v1083_v63 = vrot.slane %v5182_v44, 7  ;;  %v5230_v17 = vpack.c.bf16 %v5182_v44, %v5180_v43 }
 0x173   : > { %v1082_v31 = vrot.slane %v5145_v22, 7  ;;  %3424 = vmatprep.mubr.msk.bf16.mxu0 %vm5062_vm2, %v5159_v27  ;;  %v5190_v49 = vpack.c.bf16 %v5145_v22, %v5123_v7  ;;  %v731_v52 = vadd.f32 %v5077_v16, %v730_v28 }
 0x174   : > { %v4219_v34 = vpop.f32.mrf.mxu0  ;;  %4035 = vmatpush3.bf16.msra.mxu0 %v4531_v20  ;;  %v1102_v10 = vsel %vm1096_vm5, %v1065_v59, %v1083_v63  ;;  %v1120_v11 = vsel %vm1096_vm5, %v1083_v63, %v1065_v59  ;;  %v5232_v20 = vpack.c.bf16 %v1251_v51, %v1233_v8 }
 0x175   : > { %v1101_v37 = vsel %vm1096_vm5, %v1064_v21, %v1082_v31  ;;  %v1119_v38 = vsel %vm1096_vm5, %v1082_v31, %v1064_v21  ;;  %4036 = vmatprep.subr.bf16.mxu0 %v4533_v25  ;;  %v5212_v4 = vmax.f32 %v731_v52, 0.0  ;;  %v1197_v21 = vrot.slane %v5123_v7, 1 }
 0x176   : > { %v733_v42 = vpop.f32.mrf.mxu0  ;;  %v5184_v45 = vpack.c.bf16 %v1101_v37, %v1119_v38  ;;  %v1215_v25 = vrot.slane %v5145_v22, 1  ;;  %v5239_v26 = vpack.c.bf16 %v1102_v10, %v1120_v11  ;;  %v742_v30 = vadd.f32 %v4219_v34, %v5077_v16 }
 0x177   : > { %v734_v53 = vadd.f32 %v5077_v16, %v733_v42  ;;  %v1066_v14 = vrot.slane %v5212_v4, 7  ;;  %v1198_v52 = vrot.slane %v5180_v43, 1 }
 0x178   : > { %v5186_v47 = vpop.f32.mrf.mxu0  ;;  %4037 = vmatpush3.bf16.msra.mxu0 %v4535_v36  ;;  %3373 = vmatmul.mubr.msk.bf16.gmra.mxu1 %vm5062_vm2, %v5159_v27  ;;  %v1234_v31 = vsel %vm1229_vm6, %v1197_v21, %v1215_v25  ;;  %v1252_v32 = vsel %vm1229_vm6, %v1215_v25, %v1197_v21  ;;  %v5264_v36 = vmax.f32 %v739_v29, 0.0  ;;  %v5266_v37 = vmax.f32 %v742_v30, 0.0 }
 0x179   : > { %4038 = vmatprep.subr.bf16.mxu0 %v4537_v39  ;;  %1971 = vmatprep.mubr.bf16.mxu1 %v5190_v49  ;;  %v5214_v5 = vmax.f32 %v734_v53, 0.0  ;;  %v5276_v41 = vpack.c.bf16 %v1252_v32, %v1234_v31  ;;  %v1216_v53 = vrot.slane %v5182_v44, 1  ;;  %v755_v29 = vadd.f32 %v5186_v47, %v5077_v16 }
 0x17a   : > { %v746_v58 = vpop.f32.mrf.mxu0  ;;  %3427 = vmatmul.mubr.msk.bf16.gmra.mxu0 %vm5070_vm4, %v5192_v50  ;;  %v1067_v55 = vrot.slane %v5264_v36, 7  ;;  %v1085_v59 = vrot.slane %v5266_v37, 7  ;;  %v5318_v11 = vpack.c.bf16 %v5266_v37, %v5264_v36 }
 0x17b   : > { %3430 = vmatprep.mubr.msk.bf16.mxu0 %vm5062_vm2, %v5184_v45  ;;  %v1084_v15 = vrot.slane %v5214_v5, 7  ;;  %v5274_v40 = vpack.c.bf16 %v5214_v5, %v5212_v4  ;;  %v747_v42 = vadd.f32 %v5077_v16, %v746_v58  ;;  %v1235_v63 = vsel %vm1229_vm6, %v1198_v52, %v1216_v53 }
 0x17c   : > { %v5210_v46 = vpop.f32.mrf.mxu0  ;;  %4039 = vmatpush3.bf16.msra.mxu0 %v4539_v48  ;;  %v1253_v0 = vsel %vm1229_vm6, %v1216_v53, %v1198_v52  ;;  %v1122_v8 = vsel %vm1096_vm5, %v1085_v59, %v1067_v55  ;;  %v5354_v31 = vmax.f32 %v755_v29, 0.0 }
 0x17d   : > { %4040 = vmatprep.subr.bf16.mxu0 %v4541_v54  ;;  %v1103_v22 = vsel %vm1096_vm5, %v1066_v14, %v1084_v15  ;;  %v1121_v19 = vsel %vm1096_vm5, %v1084_v15, %v1066_v14  ;;  %v5298_v44 = vmax.f32 %v747_v42, 0.0  ;;  %v1199_v14 = vrot.slane %v5212_v4, 1 }
 0x17e   : > { %v749_v9 = vpop.f32.mrf.mxu0  ;;  %v5268_v38 = vpack.c.bf16 %v1103_v22, %v1121_v19  ;;  %v1217_v15 = vrot.slane %v5214_v5, 1  ;;  %v758_v30 = vadd.f32 %v5210_v46, %v5077_v16  ;;  %v1200_v42 = vrot.slane %v5264_v36, 1 }
 0x17f   : > { %v750_v48 = vadd.f32 %v5077_v16, %v749_v9  ;;  %v1068_v9 = vrot.slane %v5298_v44, 7 }
 0x180   : > { %v5224_v12 = vpop.f32.mrf.mxu0  ;;  %4041 = vmatpush3.bf16.msra.mxu0 %v4543_v1  ;;  %3376 = vmatmul.mubr.msk.bf16.gmra.mxu1 %vm5062_vm2, %v5184_v45  ;;  %v1236_v46 = vsel %vm1229_vm6, %v1199_v14, %v1217_v15  ;;  %v1254_v22 = vsel %vm1229_vm6, %v1217_v15, %v1199_v14  ;;  %v5356_v32 = vmax.f32 %v758_v30, 0.0  ;;  %v3708_v30 = vpop.f32.mrf.mxu1 }
 0x181   : > { %4042 = vmatprep.subr.bf16.mxu0 %v4547_v6  ;;  %1979 = vmatprep.mubr.bf16.mxu1 %v5230_v17  ;;  %v5300_v58 = vmax.f32 %v750_v48, 0.0  ;;  %v1104_v6 = vsel %vm1096_vm5, %v1067_v55, %v1085_v59  ;;  %v1218_v55 = vrot.slane %v5266_v37, 1 }
 0x182   : > { %v5241_v28 = vpop.f32.mrf.mxu0  ;;  %3433 = vmatmul.mubr.msk.bf16.gmra.mxu0 %vm5070_vm4, %v5232_v20  ;;  %v5327_v21 = vpack.c.bf16 %v1104_v6, %v1122_v8  ;;  %v1069_v6 = vrot.slane %v5354_v31, 7 }
 0x183   : > { %3436 = vmatprep.mubr.msk.bf16.mxu0 %vm5062_vm2, %v5239_v26  ;;  %v1086_v10 = vrot.slane %v5300_v58, 7  ;;  %v763_v52 = vadd.f32 %v5077_v16, %v5241_v28  ;;  %v5366_v59 = vpack.c.bf16 %v5300_v58, %v5298_v44  ;;  %v1087_v28 = vrot.slane %v5356_v32, 7 }
 0x184   : > { %v5253_v7 = vpop.f32.mrf.mxu0  ;;  %4043 = vmatpush3.bf16.msra.mxu0 %v4549_v13  ;;  %v5320_v13 = vpack.c.bf16 %v1253_v0, %v1235_v63  ;;  %v5368_v63 = vpack.c.bf16 %v1254_v22, %v1236_v46  ;;  %v1255_v14 = vsel %vm1229_vm6, %v1218_v55, %v1200_v42 }
 0x185   : > { %4240 = vmatprep.subr.bf16.mxu0 %v5112_v56  ;;  %v1105_v5 = vsel %vm1096_vm5, %v1068_v9, %v1086_v10  ;;  %v1123_v47 = vsel %vm1096_vm5, %v1086_v10, %v1068_v9  ;;  %v1237_v10 = vsel %vm1229_vm6, %v1200_v42, %v1218_v55  ;;  %v3709_v42 = vpop.f32.mrf.mxu1 }
 0x186   : > { %v765_v34 = vpop.f32.mrf.mxu0  ;;  %v5359_v48 = vpack.c.bf16 %v1105_v5, %v1123_v47  ;;  %v1106_v5 = vsel %vm1096_vm5, %v1069_v6, %v1087_v28  ;;  %v1124_v47 = vsel %vm1096_vm5, %v1087_v28, %v1069_v6  ;;  %v1201_v6 = vrot.slane %v5298_v44, 1 }
 0x187   : > { %v766_v0 = vadd.f32 %v5077_v16, %v765_v34  ;;  %v5384_v34 = vmax.f32 %v763_v52, 0.0  ;;  %v5402_v52 = vpack.c.bf16 %v5356_v32, %v5354_v31  ;;  %v1219_v28 = vrot.slane %v5300_v58, 1 }
 0x188   : > { %v5270_v39 = vpop.f32.mrf.mxu0  ;;  %3379 = vmatmul.mubr.msk.bf16.gmra.mxu1 %vm5062_vm2, %v5239_v26 }
 0x189   : > { %1987 = vmatprep.mubr.bf16.mxu1 %v5274_v40  ;;  %v5386_v9 = vmax.f32 %v766_v0, 0.0  ;;  %v1070_v22 = vrot.slane %v5384_v34, 7 }
 0x18a   : > { %v5285_v54 = vpop.f32.mrf.mxu0  ;;  %3439 = vmatmul.mubr.msk.bf16.gmra.mxu0 %vm5070_vm4, %v5276_v41 }
 0x18b   : > { %3442 = vmatprep.mubr.msk.bf16.mxu0 %vm5062_vm2, %v5268_v38  ;;  %v1088_v55 = vrot.slane %v5386_v9, 7 }
 0x18c   : > { %v5296_v43 = vpop.f32.mrf.mxu0 }
 0x18e   : > { %v5306_v1 = vpop.f32.mrf.mxu0 }
 0x190   : > { %v5312_v51 = vpop.f32.mrf.mxu0  ;;  %3382 = vmatmul.mubr.msk.bf16.gmra.mxu1 %vm5062_vm2, %v5268_v38 }
 0x191   : > { %1995 = vmatprep.mubr.bf16.mxu1 %v5318_v11 }
 0x192   : > { %v5329_v25 = vpop.f32.mrf.mxu0  ;;  %3445 = vmatmul.mubr.msk.bf16.gmra.mxu0 %vm5070_vm4, %v5320_v13 }
 0x193   : > { %3448 = vmatprep.mubr.msk.bf16.mxu0 %vm5062_vm2, %v5327_v21  ;;  %v795_v60 = vadd.f32 %v5077_v16, %v5329_v25 }
 0x194   : > { %v5342_v4 = vpop.f32.mrf.mxu0 }
 0x195   : > { %v885_v25 = vmax.f32 %v795_v60, 0.0 }
 0x196   : > { %v5352_v19 = vpop.f32.mrf.mxu0 }
 0x198   : > { %v4238_v53 = vpop.f32.mrf.mxu0  ;;  %3385 = vmatmul.mubr.msk.bf16.gmra.mxu1 %vm5062_vm2, %v5327_v21 }
 0x199   : > { %2003 = vmatprep.mubr.bf16.mxu1 %v5366_v59  ;;  %v5404_v53 = vpack.c.bf16 %v1255_v14, %v1237_v10  ;;  %v771_v10 = vadd.f32 %v5224_v12, %v5077_v16  ;;  %v774_v14 = vadd.f32 %v5253_v7, %v5077_v16  ;;  %v1107_v12 = vsel %vm1096_vm5, %v1070_v22, %v1088_v55 }
 0x19a   : > { %v810_v36 = vpop.f32.mrf.mxu0  ;;  %3451 = vmatmul.mubr.msk.bf16.gmra.mxu0 %vm5070_vm4, %v5368_v63  ;;  %v1125_v7 = vsel %vm1096_vm5, %v1088_v55, %v1070_v22  ;;  %v5453_v22 = vpack.c.bf16 %v5386_v9, %v5384_v34 }
 0x19b   : > { %v811_v37 = vadd.f32 %v5077_v16, %v810_v36  ;;  %3454 = vmatprep.mubr.msk.bf16.mxu0 %vm5062_vm2, %v5359_v48  ;;  %v880_v61 = vmax.f32 %v774_v14, 0.0  ;;  %v5449_v35 = vpack.c.bf16 %v1107_v12, %v1125_v7 }
 0x19c   : > { %v4239_v8 = vpop.f32.mrf.mxu0 }
 0x19d   : > { %v5392_v15 = vmax.f32 %v811_v37, 0.0  ;;  %v5410_v37 = vadd.f32 %v3709_v42, %v3708_v30  ;;  %v5417_v8 = vpack.c.bf16 %v1106_v5, %v1124_v47  ;;  %v1238_v5 = vsel %vm1229_vm6, %v1201_v6, %v1219_v28 }
 0x19e   : > { %v813_v29 = vpop.f32.mrf.mxu0  ;;  %v1256_v47 = vsel %vm1229_vm6, %v1219_v28, %v1201_v6  ;;  %v879_v42 = vmax.f32 %v771_v10, 0.0  ;;  %v1202_v6 = vrot.slane %v5354_v31, 1  ;;  %v1220_v28 = vrot.slane %v5356_v32, 1 }
 0x19f   : > { %v814_v46 = vadd.f32 %v5077_v16, %v813_v29  ;;  %v1209_v0 = vrot.slane %v5392_v15, 1  ;;  %v5455_v55 = vpack.c.bf16 %v1256_v47, %v1238_v5  ;;  %v1089_v14 = vrot.slane %v880_v61, 7 }
 0x1a0   : > { %3388 = vmatmul.mubr.msk.bf16.gmra.mxu1 %vm5062_vm2, %v5359_v48  ;;  %v1071_v10 = vrot.slane %v879_v42, 7  ;;  %v1239_v31 = vsel %vm1229_vm6, %v1202_v6, %v1220_v28  ;;  %v1257_v32 = vsel %vm1229_vm6, %v1220_v28, %v1202_v6  ;;  %v5481_v5 = vpack.c.bf16 %v880_v61, %v879_v42 }
 0x1a1   : > { %v5408_v36 = vmax.f32 %v814_v46, 0.0  ;;  %2011 = vmatprep.mubr.bf16.mxu1 %v5402_v52  ;;  %v5483_v47 = vpack.c.bf16 %v1257_v32, %v1239_v31  ;;  %v787_v28 = vadd.f32 %v5270_v39, %v5077_v16 }
 0x1a2   : > { %3457 = vmatmul.mubr.msk.bf16.gmra.mxu0 %vm5070_vm4, %v5404_v53  ;;  %v1108_v12 = vsel %vm1096_vm5, %v1071_v10, %v1089_v14  ;;  %v1126_v7 = vsel %vm1096_vm5, %v1089_v14, %v1071_v10  ;;  %v790_v10 = vadd.f32 %v5296_v43, %v5077_v16 }
 0x1a3   : > { %v1227_v44 = vrot.slane %v5408_v36, 1  ;;  %v5430_v58 = vpack.c.bf16 %v5408_v36, %v5392_v15  ;;  %3460 = vmatprep.mubr.msk.bf16.mxu0 %vm5062_vm2, %v5417_v8  ;;  %v5490_v6 = vpack.c.bf16 %v1108_v12, %v1126_v7  ;;  %v883_v14 = vmax.f32 %v787_v28, 0.0 }
 0x1a4   : > { %v884_v31 = vmax.f32 %v790_v10, 0.0 }
 0x1a5   : > { %6277 = vst [vmem:[#allocation25_spill] sm:$0xff] %v5430_v58  ;;  %v1246_v29 = vsel %vm1229_vm6, %v1209_v0, %v1227_v44  ;;  %v1264_v30 = vsel %vm1229_vm6, %v1227_v44, %v1209_v0  ;;  %v779_v0 = vadd.f32 %v5077_v16, %v5285_v54  ;;  %v782_v44 = vadd.f32 %v5077_v16, %v5306_v1 }
 0x1a6   : > { %v5447_v46 = vpack.c.bf16 %v1264_v30, %v1246_v29  ;;  %v1222_v58 = vrot.slane %v880_v61, 1 }
 0x1a7   : > { %v881_v54 = vmax.f32 %v779_v0, 0.0  ;;  %v882_v1 = vmax.f32 %v782_v44, 0.0  ;;  %v1203_v0 = vrot.slane %v5384_v34, 1  ;;  %v1221_v44 = vrot.slane %v5386_v9, 1 }
 0x1a8   : > { %6278 = vst [vmem:[#allocation26_spill] sm:$0xff] %v5447_v46  ;;  %3391 = vmatmul.mubr.msk.bf16.gmra.mxu1 %vm5062_vm2, %v5417_v8 }
 0x1a9   : > { %2019 = vmatprep.mubr.bf16.mxu1 %v5453_v22  ;;  %v1072_v29 = vrot.slane %v881_v54, 7  ;;  %v1090_v30 = vrot.slane %v882_v1, 7  ;;  %v1240_v39 = vsel %vm1229_vm6, %v1203_v0, %v1221_v44  ;;  %v1258_v43 = vsel %vm1229_vm6, %v1221_v44, %v1203_v0 }
 0x1aa   : > { %3463 = vmatmul.mubr.msk.bf16.gmra.mxu0 %vm5070_vm4, %v5455_v55  ;;  %v5513_v12 = vpack.c.bf16 %v882_v1, %v881_v54  ;;  %v5515_v7 = vpack.c.bf16 %v1258_v43, %v1240_v39  ;;  %v1073_v0 = vrot.slane %v883_v14, 7  ;;  %v1091_v44 = vrot.slane %v884_v31, 7 }
 0x1ab   : > { %3466 = vmatprep.mubr.msk.bf16.mxu0 %vm5062_vm2, %v5449_v35  ;;  %v1109_v34 = vsel %vm1096_vm5, %v1072_v29, %v1090_v30  ;;  %v1127_v9 = vsel %vm1096_vm5, %v1090_v30, %v1072_v29  ;;  %v798_v29 = vadd.f32 %v5077_v16, %v5352_v19  ;;  %v1204_v30 = vrot.slane %v879_v42, 1 }
 0x1ac   : > { %v5511_v32 = vpack.c.bf16 %v1109_v34, %v1127_v9  ;;  %v1110_v28 = vsel %vm1096_vm5, %v1073_v0, %v1091_v44  ;;  %v1128_v10 = vsel %vm1096_vm5, %v1091_v44, %v1073_v0  ;;  %v1074_v34 = vrot.slane %v885_v25, 7 }
 0x1ad   : > { %v886_v19 = vmax.f32 %v798_v29, 0.0  ;;  %v1241_v61 = vsel %vm1229_vm6, %v1204_v30, %v1222_v58  ;;  %v1259_v42 = vsel %vm1229_vm6, %v1222_v58, %v1204_v30  ;;  %v5539_v39 = vpack.c.bf16 %v884_v31, %v883_v14 }
 0x1ae   : > { %v5541_v43 = vpack.c.bf16 %v1259_v42, %v1241_v61  ;;  %v1205_v60 = vrot.slane %v881_v54, 1  ;;  %v1223_v29 = vrot.slane %v882_v1, 1  ;;  %v5546_v46 = vpack.c.bf16 %v1110_v28, %v1128_v10 }
 0x1af   : > { %v1092_v9 = vrot.slane %v886_v19, 7  ;;  %v803_v58 = vadd.f32 %v5312_v51, %v5077_v16  ;;  %v806_v30 = vadd.f32 %v5342_v4, %v5077_v16  ;;  %v5569_v61 = vpack.c.bf16 %v886_v19, %v885_v25 }
 0x1b0   : > { %3394 = vmatmul.mubr.msk.bf16.gmra.mxu1 %vm5062_vm2, %v5449_v35  ;;  %v1242_v51 = vsel %vm1229_vm6, %v1205_v60, %v1223_v29  ;;  %v1260_v16 = vsel %vm1229_vm6, %v1223_v29, %v1205_v60  ;;  %v1206_v28 = vrot.slane %v883_v14, 1  ;;  %v1224_v10 = vrot.slane %v884_v31, 1 }
 0x1b1   : > { %2027 = vmatprep.mubr.bf16.mxu1 %v5481_v5  ;;  %v1111_v54 = vsel %vm1096_vm5, %v1074_v34, %v1092_v9  ;;  %v1129_v1 = vsel %vm1096_vm5, %v1092_v9, %v1074_v34  ;;  %v887_v4 = vmax.f32 %v803_v58, 0.0  ;;  %v888_v0 = vmax.f32 %v806_v30, 0.0 }
 0x1b2   : > { %3469 = vmatmul.mubr.msk.bf16.gmra.mxu0 %vm5070_vm4, %v5483_v47  ;;  %v5567_v44 = vpack.c.bf16 %v1111_v54, %v1129_v1  ;;  %v5571_v42 = vpack.c.bf16 %v1260_v16, %v1242_v51  ;;  %v1243_v14 = vsel %vm1229_vm6, %v1206_v28, %v1224_v10  ;;  %v1261_v31 = vsel %vm1229_vm6, %v1224_v10, %v1206_v28 }
 0x1b3   : > { %3472 = vmatprep.mubr.msk.bf16.mxu0 %vm5062_vm2, %v5490_v6  ;;  %v1075_v34 = vrot.slane %v887_v4, 7  ;;  %v1093_v9 = vrot.slane %v888_v0, 7  ;;  %v1076_v58 = vrot.slane %v5392_v15, 7  ;;  %v1094_v30 = vrot.slane %v5408_v36, 7 }
 0x1b4   : > { %v5593_v54 = vpack.c.bf16 %v888_v0, %v887_v4  ;;  %v5595_v1 = vpack.c.bf16 %v1261_v31, %v1243_v14  ;;  %v1207_v51 = vrot.slane %v885_v25, 1  ;;  %v1225_v16 = vrot.slane %v886_v19, 1 }
 0x1b5   : > { %v1112_v60 = vsel %vm1096_vm5, %v1075_v34, %v1093_v9  ;;  %v1130_v29 = vsel %vm1096_vm5, %v1093_v9, %v1075_v34  ;;  %v1113_v15 = vsel %vm1096_vm5, %v1076_v58, %v1094_v30  ;;  %v1131_v36 = vsel %vm1096_vm5, %v1094_v30, %v1076_v58 }
 0x1b6   : > { %v5600_v28 = vpack.c.bf16 %v1112_v60, %v1130_v29  ;;  %v1244_v25 = vsel %vm1229_vm6, %v1207_v51, %v1225_v16  ;;  %v1262_v19 = vsel %vm1229_vm6, %v1225_v16, %v1207_v51  ;;  %v5617_v10 = vpack.c.bf16 %v1113_v15, %v1131_v36  ;;  %v4553_v60 = vld [vmem:[#allocation8 + $0x230] sm:$0xff]  }
 0x1b7   : > { %v5619_v34 = vpack.c.bf16 %v1262_v19, %v1244_v25  ;;  %v1208_v9 = vrot.slane %v887_v4, 1  ;;  %v1226_v14 = vrot.slane %v888_v0, 1 }
 0x1b8   : > { %3397 = vmatmul.mubr.msk.bf16.gmra.mxu1 %vm5062_vm2, %v5490_v6 }
 0x1b9   : > { %2035 = vmatprep.mubr.bf16.mxu1 %v5513_v12  ;;  %v1245_v4 = vsel %vm1229_vm6, %v1208_v9, %v1226_v14  ;;  %v1263_v0 = vsel %vm1229_vm6, %v1226_v14, %v1208_v9 }
 0x1ba   : > { %3475 = vmatmul.mubr.msk.bf16.gmra.mxu0 %vm5070_vm4, %v5515_v7  ;;  %v5637_v31 = vpack.c.bf16 %v1263_v0, %v1245_v4 }
 0x1bb   : > { %3478 = vmatprep.mubr.msk.bf16.mxu0 %vm5062_vm2, %v5511_v32 }
 0x1c0   : > { %3400 = vmatmul.mubr.msk.bf16.gmra.mxu1 %vm5062_vm2, %v5511_v32 }
 0x1c1   : > { %2043 = vmatprep.mubr.bf16.mxu1 %v5539_v39 }
 0x1c2   : > { %3481 = vmatmul.mubr.msk.bf16.gmra.mxu0 %vm5070_vm4, %v5541_v43 }
 0x1c3   : > { %3484 = vmatprep.mubr.msk.bf16.mxu0 %vm5062_vm2, %v5546_v46 }
 0x1c8   : > { %3403 = vmatmul.mubr.msk.bf16.gmra.mxu1 %vm5062_vm2, %v5546_v46 }
 0x1c9   : > { %2051 = vmatprep.mubr.bf16.mxu1 %v5569_v61 }
 0x1ca   : > { %3487 = vmatmul.mubr.msk.bf16.gmra.mxu0 %vm5070_vm4, %v5571_v42 }
 0x1cb   : > { %3490 = vmatprep.mubr.msk.bf16.mxu0 %vm5062_vm2, %v5567_v44 }
 0x1d0   : > { %3406 = vmatmul.mubr.msk.bf16.gmra.mxu1 %vm5062_vm2, %v5567_v44 }
 0x1d1   : > { %2059 = vmatprep.mubr.bf16.mxu1 %v5593_v54 }
 0x1d2   : > { %3493 = vmatmul.mubr.msk.bf16.gmra.mxu0 %vm5070_vm4, %v5595_v1 }
 0x1d3   : > { %3496 = vmatprep.mubr.msk.bf16.mxu0 %vm5062_vm2, %v5600_v28 }
 0x1d8   : > { %3409 = vmatmul.mubr.msk.bf16.gmra.mxu1 %vm5062_vm2, %v5600_v28 }
 0x1d9   : > { %3508 = vmatprep.mubr.msk.bf16.mxu1 %vm5070_vm4, %v5151_v24  ;;  %v4554_v24 = vld [vmem:[#allocation8 + $0x228] sm:$0xff]  }
 0x1da   : > { %3499 = vmatmul.mubr.msk.bf16.gmra.mxu0 %vm5070_vm4, %v5619_v34 }
 0x1db   : > { %3502 = vmatprep.mubr.msk.bf16.mxu0 %vm5062_vm2, %v5617_v10 }
 0x1e0   : > { %2262 = vmatmul.mubr.bf16.vlgmr.msra.gmra.mxu1 %v5086_v33  ;;  %v4556_v33 = vld [vmem:[#allocation8 + $0x218] sm:$0xff]  }
 0x1e1   : > { %3511 = vmatprep.mubr.msk.bf16.mxu1 %vm5070_vm4, %v5192_v50  ;;  %4344 = vmatpush3.bf16.msra.mxu1 %v5112_v56 }
 0x1e2   : > { %3505 = vmatmul.mubr.msk.bf16.gmra.mxu0 %vm5070_vm4, %v5637_v31  ;;  %4337 = vmatprep.subr.bf16.mxu1 %v4553_v60 }
 0x1e3   : > { %2422 = vmatprep.mubr.bf16.mxu0 %v5120_v3 }
 0x1e5   : > { %4345 = vmatpush3.bf16.msra.mxu1 %v4553_v60 }
 0x1e6   : > { %4338 = vmatprep.subr.bf16.mxu1 %v4554_v24 }
 0x1e8   : > { %2270 = vmatmul.mubr.bf16.gmra.mxu1 %v5120_v3  ;;  %v4557_v3 = vld [vmem:[#allocation8 + $0x210] sm:$0xff]  }
 0x1e9   : > { %3514 = vmatprep.mubr.msk.bf16.mxu1 %vm5070_vm4, %v5232_v20  ;;  %4346 = vmatpush3.bf16.msra.mxu1 %v4554_v24 }
 0x1ea   : > { %3556 = vmatmul.mubr.msk.bf16.vlgmr.msra.gmra.mxu0 %vm5062_vm2, %v5140_v18  ;;  %4339 = vmatprep.subr.bf16.mxu1 %v4555_v57  ;;  %v4559_v18 = vld [vmem:[#allocation8 + $0x200] sm:$0xff]  }
 0x1eb   : > { %4241 = vmatpush3.bf16.msra.mxu0 %v5112_v56  ;;  %2430 = vmatprep.mubr.bf16.mxu0 %v5149_v23  ;;  %v4558_v56 = vld [vmem:[#allocation8 + $0x208] sm:$0xff]  }
 0x1ec   : > { %4242 = vmatprep.subr.bf16.mxu0 %v4553_v60 }
 0x1ed   : > { %4347 = vmatpush3.bf16.msra.mxu1 %v4555_v57 }
 0x1ee   : > { %4340 = vmatprep.subr.bf16.mxu1 %v4556_v33 }
 0x1ef   : > { %4243 = vmatpush3.bf16.msra.mxu0 %v4553_v60 }
 0x1f0   : > { %4244 = vmatprep.subr.bf16.mxu0 %v4554_v24  ;;  %2278 = vmatmul.mubr.bf16.gmra.mxu1 %v5149_v23  ;;  %v3711_v23 = vpop.f32.mrf.mxu1 }
 0x1f1   : > { %3517 = vmatprep.mubr.msk.bf16.mxu1 %vm5070_vm4, %v5276_v41  ;;  %4348 = vmatpush3.bf16.msra.mxu1 %v4556_v33 }
 0x1f2   : > { %3559 = vmatmul.mubr.msk.bf16.gmra.mxu0 %vm5062_vm2, %v5159_v27  ;;  %4341 = vmatprep.subr.bf16.mxu1 %v4557_v3  ;;  %v3712_v27 = vpop.f32.mrf.mxu1 }
 0x1f3   : > { %2438 = vmatprep.mubr.bf16.mxu0 %v5190_v49  ;;  %4245 = vmatpush3.bf16.msra.mxu0 %v4554_v24 }
 0x1f4   : > { %4246 = vmatprep.subr.bf16.mxu0 %v4555_v57 }
 0x1f5   : > { %4349 = vmatpush3.bf16.msra.mxu1 %v4557_v3 }
 0x1f6   : > { %4342 = vmatprep.subr.bf16.mxu1 %v4558_v56 }
 0x1f7   : > { %4247 = vmatpush3.bf16.msra.mxu0 %v4555_v57 }
 0x1f8   : > { %4248 = vmatprep.subr.bf16.mxu0 %v4556_v33  ;;  %2286 = vmatmul.mubr.bf16.gmra.mxu1 %v5190_v49 }
 0x1f9   : > { %3520 = vmatprep.mubr.msk.bf16.mxu1 %vm5070_vm4, %v5320_v13  ;;  %4350 = vmatpush3.bf16.msra.mxu1 %v4558_v56 }
 0x1fa   : > { %3562 = vmatmul.mubr.msk.bf16.gmra.mxu0 %vm5062_vm2, %v5184_v45  ;;  %4343 = vmatprep.subr.bf16.mxu1 %v4559_v18  ;;  %v5716_v45 = vld [vmem:[%s6227_s5] ss:$0 sm:$0xff] }
 0x1fb   : > { %2446 = vmatprep.mubr.bf16.mxu0 %v5230_v17  ;;  %4249 = vmatpush3.bf16.msra.mxu0 %v4556_v33 }
 0x1fc   : > { %4250 = vmatprep.subr.bf16.mxu0 %v4557_v3 }
 0x1fd   : > { %4351 = vmatpush3.bf16.msra.mxu1 %v4559_v18 }
 0x1ff   : > { %4251 = vmatpush3.bf16.msra.mxu0 %v4557_v3 }
 0x200   : > { %4252 = vmatprep.subr.bf16.mxu0 %v4558_v56  ;;  %2294 = vmatmul.mubr.bf16.gmra.mxu1 %v5230_v17 }
 0x201   : > { %3523 = vmatprep.mubr.msk.bf16.mxu1 %vm5070_vm4, %v5368_v63 }
 0x202   : > { %3565 = vmatmul.mubr.msk.bf16.gmra.mxu0 %vm5062_vm2, %v5239_v26  ;;  %v1942_v26 = vadd.f32 %v5410_v37, %v5716_v45 }
 0x203   : > { %2454 = vmatprep.mubr.bf16.mxu0 %v5274_v40  ;;  %4253 = vmatpush3.bf16.msra.mxu0 %v4558_v56 }
 0x204   : > { %4254 = vmatprep.subr.bf16.mxu0 %v4559_v18 }
 0x207   : > { %4255 = vmatpush3.bf16.msra.mxu0 %v4559_v18 }
 0x208   : > { %2302 = vmatmul.mubr.bf16.gmra.mxu1 %v5274_v40 }
 0x209   : > { %3526 = vmatprep.mubr.msk.bf16.mxu1 %vm5070_vm4, %v5404_v53 }
 0x20a   : > { %3568 = vmatmul.mubr.msk.bf16.gmra.mxu0 %vm5062_vm2, %v5268_v38  ;;  %v3713_v38 = vadd.f32 %v3712_v27, %v3711_v23 }
 0x20b   : > { %2462 = vmatprep.mubr.bf16.mxu0 %v5318_v11 }
 0x210   : > { %2310 = vmatmul.mubr.bf16.gmra.mxu1 %v5318_v11 }
 0x211   : > { %3529 = vmatprep.mubr.msk.bf16.mxu1 %vm5070_vm4, %v5455_v55 }
 0x212   : > { %3571 = vmatmul.mubr.msk.bf16.gmra.mxu0 %vm5062_vm2, %v5327_v21 }
 0x213   : > { %2470 = vmatprep.mubr.bf16.mxu0 %v5366_v59 }
 0x218   : > { %2318 = vmatmul.mubr.bf16.gmra.mxu1 %v5366_v59 }
 0x219   : > { %3532 = vmatprep.mubr.msk.bf16.mxu1 %vm5070_vm4, %v5483_v47 }
 0x21a   : > { %3574 = vmatmul.mubr.msk.bf16.gmra.mxu0 %vm5062_vm2, %v5359_v48 }
 0x21b   : > { %2478 = vmatprep.mubr.bf16.mxu0 %v5402_v52 }
 0x220   : > { %2326 = vmatmul.mubr.bf16.gmra.mxu1 %v5402_v52 }
 0x221   : > { %3535 = vmatprep.mubr.msk.bf16.mxu1 %vm5070_vm4, %v5515_v7 }
 0x222   : > { %3577 = vmatmul.mubr.msk.bf16.gmra.mxu0 %vm5062_vm2, %v5417_v8  ;;  %v1945_v8 = vadd.f32 %v3713_v38, %v5716_v45 }
 0x223   : > { %2486 = vmatprep.mubr.bf16.mxu0 %v5453_v22 }
 0x226   : > { %v3714_v49 = vpop.f32.mrf.mxu1 }
 0x227   : > { %v3820_v17 = vpop.f32.mrf.mxu0 }
 0x228   : > { %v3715_v40 = vpop.f32.mrf.mxu1  ;;  %2334 = vmatmul.mubr.bf16.gmra.mxu1 %v5453_v22 }
 0x229   : > { %v3716_v11 = vadd.f32 %v3715_v40, %v3714_v49  ;;  %v3821_v21 = vpop.f32.mrf.mxu0  ;;  %3538 = vmatprep.mubr.msk.bf16.mxu1 %vm5070_vm4, %v5541_v43 }
 0x22a   : > { %v3822_v48 = vadd.f32 %v3821_v21, %v3820_v17  ;;  %v3717_v59 = vpop.f32.mrf.mxu1  ;;  %3580 = vmatmul.mubr.msk.bf16.gmra.mxu0 %vm5062_vm2, %v5449_v35 }
 0x22b   : > { %v3823_v52 = vpop.f32.mrf.mxu0  ;;  %2494 = vmatprep.mubr.bf16.mxu0 %v5481_v5  ;;  %v1950_v19 = vadd.f32 %v3716_v11, %v5716_v45 }
 0x22c   : > { %v5728_v37 = vadd.f32 %v3822_v48, %v1942_v26  ;;  %v3718_v29 = vpop.f32.mrf.mxu1 }
 0x22d   : > { %v3719_v58 = vadd.f32 %v3718_v29, %v3717_v59  ;;  %v3824_v22 = vpop.f32.mrf.mxu0 }
 0x22e   : > { %v3825_v30 = vadd.f32 %v3824_v22, %v3823_v52 }
 0x22f   : > { %v1953_v57 = vadd.f32 %v3719_v58, %v5716_v45 }
 0x230   : > { %v5731_v51 = vadd.f32 %v3825_v30, %v1945_v8  ;;  %v3720_v16 = vpop.f32.mrf.mxu1  ;;  %2342 = vmatmul.mubr.bf16.gmra.mxu1 %v5481_v5 }
 0x231   : > { %3541 = vmatprep.mubr.msk.bf16.mxu1 %vm5070_vm4, %v5571_v42 }
 0x232   : > { %v3826_v15 = vpop.f32.mrf.mxu0  ;;  %3583 = vmatmul.mubr.msk.bf16.gmra.mxu0 %vm5062_vm2, %v5490_v6  ;;  %v3721_v35 = vpop.f32.mrf.mxu1 }
 0x233   : > { %2502 = vmatprep.mubr.bf16.mxu0 %v5513_v12  ;;  %v3722_v36 = vadd.f32 %v3721_v35, %v3720_v16 }
 0x234   : > { %v3827_v25 = vpop.f32.mrf.mxu0  ;;  %v3723_v14 = vpop.f32.mrf.mxu1 }
 0x235   : > { %v3828_v9 = vadd.f32 %v3827_v25, %v3826_v15  ;;  %v1958_v49 = vadd.f32 %v3722_v36, %v5716_v45 }
 0x236   : > { %v3829_v4 = vpop.f32.mrf.mxu0  ;;  %v3724_v0 = vpop.f32.mrf.mxu1 }
 0x237   : > { %v5742_v5 = vadd.f32 %v3828_v9, %v1950_v19  ;;  %v3725_v60 = vadd.f32 %v3724_v0, %v3723_v14 }
 0x238   : > { %v3830_v24 = vpop.f32.mrf.mxu0  ;;  %v3726_v3 = vpop.f32.mrf.mxu1  ;;  %2350 = vmatmul.mubr.bf16.gmra.mxu1 %v5513_v12 }
 0x239   : > { %v3831_v33 = vadd.f32 %v3830_v24, %v3829_v4  ;;  %3544 = vmatprep.mubr.msk.bf16.mxu1 %vm5070_vm4, %v5595_v1  ;;  %v1961_v48 = vadd.f32 %v3725_v60, %v5716_v45 }
 0x23a   : > { %v3832_v6 = vpop.f32.mrf.mxu0  ;;  %3586 = vmatmul.mubr.msk.bf16.gmra.mxu0 %vm5062_vm2, %v5511_v32  ;;  %v3727_v18 = vpop.f32.mrf.mxu1 }
 0x23b   : > { %v5752_v56 = vadd.f32 %v3831_v33, %v1953_v57  ;;  %2510 = vmatprep.mubr.bf16.mxu0 %v5539_v39  ;;  %v3728_v23 = vadd.f32 %v3727_v18, %v3726_v3 }
 0x23c   : > { %v3833_v27 = vpop.f32.mrf.mxu0  ;;  %v3729_v12 = vpop.f32.mrf.mxu1 }
 0x23d   : > { %v3834_v17 = vadd.f32 %v3833_v27, %v3832_v6  ;;  %v1966_v30 = vadd.f32 %v3728_v23, %v5716_v45 }
 0x23e   : > { %v3835_v26 = vpop.f32.mrf.mxu0  ;;  %v3730_v40 = vpop.f32.mrf.mxu1 }
 0x23f   : > { %v5756_v38 = vadd.f32 %v3834_v17, %v1958_v49  ;;  %v3731_v11 = vadd.f32 %v3730_v40, %v3729_v12  ;;  %v6279_v40 = vld [vmem:[#allocation26_spill] sm:$0xff] }
 0x240   : > { %v3836_v21 = vpop.f32.mrf.mxu0  ;;  %v3732_v59 = vpop.f32.mrf.mxu1  ;;  %2358 = vmatmul.mubr.bf16.gmra.mxu1 %v5539_v39 }
 0x241   : > { %v3837_v32 = vadd.f32 %v3836_v21, %v3835_v26  ;;  %3547 = vmatprep.mubr.msk.bf16.mxu1 %vm5070_vm4, %v5619_v34  ;;  %v1969_v9 = vadd.f32 %v3731_v11, %v5716_v45 }
 0x242   : > { %v3838_v52 = vpop.f32.mrf.mxu0  ;;  %3589 = vmatmul.mubr.msk.bf16.gmra.mxu0 %vm5062_vm2, %v5546_v46  ;;  %v3733_v29 = vpop.f32.mrf.mxu1 }
 0x243   : > { %v5766_v8 = vadd.f32 %v3837_v32, %v1961_v48  ;;  %2518 = vmatprep.mubr.bf16.mxu0 %v5569_v61  ;;  %v3734_v58 = vadd.f32 %v3733_v29, %v3732_v59  ;;  %v6280_v48 = vld [vmem:[#allocation25_spill] sm:$0xff] }
 0x244   : > { %v3839_v22 = vpop.f32.mrf.mxu0  ;;  %v3735_v39 = vpop.f32.mrf.mxu1 }
 0x245   : > { %v3840_v16 = vadd.f32 %v3839_v22, %v3838_v52  ;;  %v1974_v33 = vadd.f32 %v3734_v58, %v5716_v45 }
 0x246   : > { %v3841_v15 = vpop.f32.mrf.mxu0  ;;  %v3736_v36 = vpop.f32.mrf.mxu1 }
 0x247   : > { %v5770_v35 = vadd.f32 %v3840_v16, %v1966_v30  ;;  %v3737_v25 = vadd.f32 %v3736_v36, %v3735_v39 }
 0x248   : > { %v3842_v19 = vpop.f32.mrf.mxu0  ;;  %v3738_v14 = vpop.f32.mrf.mxu1  ;;  %2366 = vmatmul.mubr.bf16.gmra.mxu1 %v5569_v61 }
 0x249   : > { %v3843_v46 = vadd.f32 %v3842_v19, %v3841_v15  ;;  %3550 = vmatprep.mubr.msk.bf16.mxu1 %vm5070_vm4, %v5637_v31  ;;  %v1977_v17 = vadd.f32 %v3737_v25, %v5716_v45 }
 0x24a   : > { %v3844_v4 = vpop.f32.mrf.mxu0  ;;  %3592 = vmatmul.mubr.msk.bf16.gmra.mxu0 %vm5062_vm2, %v5567_v44  ;;  %v3739_v60 = vpop.f32.mrf.mxu1 }
 0x24b   : > { %v5780_v0 = vadd.f32 %v3843_v46, %v1969_v9  ;;  %2526 = vmatprep.mubr.bf16.mxu0 %v5593_v54  ;;  %v3740_v24 = vadd.f32 %v3739_v60, %v3738_v14  ;;  %v6281_v46 = vmov 0.0|0.0  }
 0x24c   : > { %v3845_v57 = vpop.f32.mrf.mxu0  ;;  %v3741_v61 = vpop.f32.mrf.mxu1 }
 0x24d   : > { %v3846_v3 = vadd.f32 %v3845_v57, %v3844_v4  ;;  %v1982_v52 = vadd.f32 %v3740_v24, %v5716_v45 }
 0x24e   : > { %v3847_v6 = vpop.f32.mrf.mxu0  ;;  %v3742_v23 = vpop.f32.mrf.mxu1 }
 0x24f   : > { %v5784_v18 = vadd.f32 %v3846_v3, %v1974_v33  ;;  %v3743_v27 = vadd.f32 %v3742_v23, %v3741_v61 }
 0x250   : > { %v3848_v49 = vpop.f32.mrf.mxu0  ;;  %v3744_v12 = vpop.f32.mrf.mxu1  ;;  %2374 = vmatmul.mubr.bf16.gmra.mxu1 %v5593_v54 }
 0x251   : > { %v3849_v44 = vadd.f32 %v3848_v49, %v3847_v6  ;;  %3553 = vmatprep.mubr.msk.bf16.mxu1 %vm5070_vm4, %v6279_v40  ;;  %v1985_v15 = vadd.f32 %v3743_v27, %v5716_v45 }
 0x252   : > { %v3850_v26 = vpop.f32.mrf.mxu0  ;;  %3595 = vmatmul.mubr.msk.bf16.gmra.mxu0 %vm5062_vm2, %v5600_v28  ;;  %v3745_v21 = vpop.f32.mrf.mxu1 }
 0x253   : > { %v5794_v11 = vadd.f32 %v3849_v44, %v1977_v17  ;;  %2534 = vmatprep.mubr.bf16.mxu0 %v6280_v48  ;;  %v3746_v32 = vadd.f32 %v3745_v21, %v3744_v12  ;;  %v6282_v17 = vld [vmem:[#allocation23_spill] sm:$0xff] }
 0x254   : > { %v3851_v59 = vpop.f32.mrf.mxu0  ;;  %v3747_v54 = vpop.f32.mrf.mxu1 }
 0x255   : > { %v3852_v29 = vadd.f32 %v3851_v59, %v3850_v26  ;;  %v1990_v60 = vadd.f32 %v3746_v32, %v5716_v45 }
 0x256   : > { %v3853_v58 = vpop.f32.mrf.mxu0  ;;  %v3748_v30 = vpop.f32.mrf.mxu1 }
 0x257   : > { %v5798_v22 = vadd.f32 %v3852_v29, %v1982_v52  ;;  %v3749_v16 = vadd.f32 %v3748_v30, %v3747_v54 }
 0x258   : > { %v3854_v39 = vpop.f32.mrf.mxu0  ;;  %v3750_v36 = vpop.f32.mrf.mxu1  ;;  %2382 = vmatmul.mubr.bf16.gmra.mxu1 %v6280_v48 }
 0x259   : > { %v3855_v28 = vadd.f32 %v3854_v39, %v3853_v58  ;;  %4272 = vmatprep.mubr.msk.bf16.mxu1 %vm5070_vm4, %v5515_v7  ;;  %v1993_v23 = vadd.f32 %v3749_v16, %v5716_v45 }
 0x25a   : > { %v3856_v25 = vpop.f32.mrf.mxu0  ;;  %3598 = vmatmul.mubr.msk.bf16.gmra.mxu0 %vm5062_vm2, %v5617_v10  ;;  %v3751_v9 = vpop.f32.mrf.mxu1 }
 0x25b   : > { %v5808_v19 = vadd.f32 %v3855_v28, %v1985_v15  ;;  %2542 = vmatprep.mubr.bf16.mxu0 %v6281_v46  ;;  %v3752_v14 = vadd.f32 %v3751_v9, %v3750_v36 }
 0x25c   : > { %v3857_v4 = vpop.f32.mrf.mxu0  ;;  %v3753_v57 = vpop.f32.mrf.mxu1 }
 0x25d   : > { %v3858_v24 = vadd.f32 %v3857_v4, %v3856_v25 }
 0x25e   : > { %v3859_v33 = vpop.f32.mrf.mxu0  ;;  %v3754_v61 = vpop.f32.mrf.mxu1 }
 0x25f   : > { %v5812_v3 = vadd.f32 %v3858_v24, %v1990_v60  ;;  %v3755_v10 = vadd.f32 %v3754_v61, %v3753_v57 }
 0x260   : > { %v3860_v6 = vpop.f32.mrf.mxu0  ;;  %v3756_v27 = vpop.f32.mrf.mxu1  ;;  %4273 = vmatmul.mubr.msk.bf16.vlgmr.msra.gmra.mxu1 %vm5070_vm4, %v5541_v43  ;;  %v1998_v43 = vadd.f32 %v3752_v14, %v5716_v45 }
 0x261   : > { %v3861_v7 = vadd.f32 %v3860_v6, %v3859_v33  ;;  %4276 = vmatprep.mubr.msk.bf16.mxu1 %vm5070_vm4, %v5571_v42  ;;  %v2001_v42 = vadd.f32 %v3755_v10, %v5716_v45 }
 0x262   : > { %v3862_v49 = vpop.f32.mrf.mxu0  ;;  %3601 = vmatmul.mubr.msk.bf16.gmra.mxu0 %vm5062_vm2, %v6282_v17  ;;  %v3757_v12 = vpop.f32.mrf.mxu1 }
 0x263   : > { %v5824_v44 = vadd.f32 %v3861_v7, %v1993_v23  ;;  %4256 = vmatprep.mubr.msk.bf16.mxu0 %vm5070_vm4, %v5192_v50  ;;  %v3758_v26 = vadd.f32 %v3757_v12, %v3756_v27 }
 0x264   : > { %v3863_v21 = vpop.f32.mrf.mxu0  ;;  %v3759_v32 = vpop.f32.mrf.mxu1 }
 0x265   : > { %v3864_v48 = vadd.f32 %v3863_v21, %v3862_v49 }
 0x266   : > { %v3865_v59 = vpop.f32.mrf.mxu0  ;;  %v3760_v52 = vpop.f32.mrf.mxu1 }
 0x267   : > { %v5830_v62 = vadd.f32 %v3864_v48, %v1998_v43  ;;  %v3761_v28 = vadd.f32 %v3760_v52, %v3759_v32 }
 0x268   : > { %v3866_v29 = vpop.f32.mrf.mxu0  ;;  %v3762_v58 = vpop.f32.mrf.mxu1  ;;  %4277 = vmatmul.mubr.msk.bf16.gmra.mxu1 %vm5070_vm4, %v5595_v1  ;;  %v2006_v1 = vadd.f32 %v3758_v26, %v5716_v45  ;;  %v6283_v26 = vld [vmem:[#allocation24_spill] sm:$0xff] }
 0x269   : > { %v3867_v54 = vadd.f32 %v3866_v29, %v3865_v59  ;;  %4280 = vmatprep.mubr.msk.bf16.mxu1 %vm5070_vm4, %v5619_v34  ;;  %v2009_v34 = vadd.f32 %v3761_v28, %v5716_v45 }
 0x26a   : > { %v3868_v50 = vpop.f32.mrf.mxu0  ;;  %4257 = vmatmul.mubr.msk.bf16.vlgmr.msra.gmra.mxu0 %vm5070_vm4, %v5232_v20  ;;  %v3763_v16 = vpop.f32.mrf.mxu1 }
 0x26b   : > { %v5842_v30 = vadd.f32 %v3867_v54, %v2001_v42  ;;  %4260 = vmatprep.mubr.msk.bf16.mxu0 %vm5070_vm4, %v5276_v41  ;;  %v3764_v39 = vadd.f32 %v3763_v16, %v3762_v58 }
 0x26c   : > { %v3869_v15 = vpop.f32.mrf.mxu0  ;;  %v3765_v25 = vpop.f32.mrf.mxu1 }
 0x26d   : > { %v3870_v36 = vadd.f32 %v3869_v15, %v3868_v50 }
 0x26e   : > { %v3871_v9 = vpop.f32.mrf.mxu0  ;;  %v3766_v46 = vpop.f32.mrf.mxu1 }
 0x26f   : > { %v5848_v20 = vadd.f32 %v3870_v36, %v2006_v1  ;;  %v3767_v10 = vadd.f32 %v3766_v46, %v3765_v25 }
 0x270   : > { %v3872_v14 = vpop.f32.mrf.mxu0  ;;  %v3768_v60 = vpop.f32.mrf.mxu1  ;;  %4281 = vmatmul.mubr.msk.bf16.gmra.mxu1 %vm5070_vm4, %v5637_v31  ;;  %v2014_v31 = vadd.f32 %v3764_v39, %v5716_v45 }
 0x271   : > { %v3873_v4 = vadd.f32 %v3872_v14, %v3871_v9  ;;  %4284 = vmatprep.mubr.msk.bf16.mxu1 %vm5070_vm4, %v6279_v40  ;;  %v2017_v40 = vadd.f32 %v3767_v10, %v5716_v45 }
 0x272   : > { %v3874_v41 = vpop.f32.mrf.mxu0  ;;  %4261 = vmatmul.mubr.msk.bf16.gmra.mxu0 %vm5070_vm4, %v5320_v13  ;;  %v3769_v57 = vpop.f32.mrf.mxu1 }
 0x273   : > { %v5860_v24 = vadd.f32 %v3873_v4, %v2009_v34  ;;  %4264 = vmatprep.mubr.msk.bf16.mxu0 %vm5070_vm4, %v5368_v63  ;;  %v3770_v33 = vadd.f32 %v3769_v57, %v3768_v60 }
 0x274   : > { %v3875_v61 = vpop.f32.mrf.mxu0  ;;  %v3771_v23 = vpop.f32.mrf.mxu1 }
 0x275   : > { %v3876_v6 = vadd.f32 %v3875_v61, %v3874_v41  ;;  %v2022_v59 = vadd.f32 %v3770_v33, %v5716_v45 }
 0x276   : > { %v3877_v7 = vpop.f32.mrf.mxu0  ;;  %v3772_v27 = vpop.f32.mrf.mxu1 }
 0x277   : > { %v5866_v13 = vadd.f32 %v3876_v6, %v2014_v31  ;;  %v3773_v52 = vadd.f32 %v3772_v27, %v3771_v23 }
 0x278   : > { %v3878_v49 = vpop.f32.mrf.mxu0  ;;  %v3774_v12 = vpop.f32.mrf.mxu1  ;;  %4285 = vmatmul.mubr.msk.bf16.gmra.mxu1 %vm5070_vm4, %v6283_v26 }
 0x279   : > { %v3879_v17 = vadd.f32 %v3878_v49, %v3877_v7 }
 0x27a   : > { %v3880_v63 = vpop.f32.mrf.mxu0  ;;  %4265 = vmatmul.mubr.msk.bf16.gmra.mxu0 %vm5070_vm4, %v5404_v53  ;;  %v3775_v43 = vpop.f32.mrf.mxu1  ;;  %v2025_v53 = vadd.f32 %v3773_v52, %v5716_v45 }
 0x27b   : > { %v5875_v21 = vadd.f32 %v3879_v17, %v2017_v40  ;;  %4268 = vmatprep.mubr.msk.bf16.mxu0 %vm5070_vm4, %v5455_v55  ;;  %v3776_v48 = vadd.f32 %v3775_v43, %v3774_v12 }
 0x27c   : > { %v3881_v32 = vpop.f32.mrf.mxu0  ;;  %v3777_v42 = vpop.f32.mrf.mxu1 }
 0x27d   : > { %v3882_v29 = vadd.f32 %v3881_v32, %v3880_v63  ;;  %v2030_v9 = vadd.f32 %v3776_v48, %v5716_v45 }
 0x27e   : > { %v3883_v54 = vpop.f32.mrf.mxu0  ;;  %v3778_v50 = vpop.f32.mrf.mxu1 }
 0x27f   : > { %v5881_v58 = vadd.f32 %v3882_v29, %v2022_v59  ;;  %v3779_v46 = vadd.f32 %v3778_v50, %v3777_v42 }
 0x280   : > { %v3884_v16 = vpop.f32.mrf.mxu0  ;;  %v3780_v15 = vpop.f32.mrf.mxu1 }
 0x281   : > { %v3885_v39 = vadd.f32 %v3884_v16, %v3883_v54  ;;  %v2033_v33 = vadd.f32 %v3779_v46, %v5716_v45 }
 0x282   : > { %v3886_v1 = vpop.f32.mrf.mxu0  ;;  %4269 = vmatmul.mubr.msk.bf16.gmra.mxu0 %vm5070_vm4, %v5483_v47  ;;  %v3781_v28 = vpop.f32.mrf.mxu1 }
 0x283   : > { %v5887_v55 = vadd.f32 %v3885_v39, %v2025_v53  ;;  %v3782_v36 = vadd.f32 %v3781_v28, %v3780_v15 }
 0x284   : > { %v3887_v25 = vpop.f32.mrf.mxu0  ;;  %v3783_v34 = vpop.f32.mrf.mxu1 }
 0x285   : > { %v3888_v14 = vadd.f32 %v3887_v25, %v3886_v1  ;;  %v2038_v7 = vadd.f32 %v3782_v36, %v5716_v45 }
 0x286   : > { %v3889_v4 = vpop.f32.mrf.mxu0  ;;  %v3784_v41 = vpop.f32.mrf.mxu1 }
 0x287   : > { %v5890_v60 = vadd.f32 %v3888_v14, %v2030_v9  ;;  %v3785_v27 = vadd.f32 %v3784_v41, %v3783_v34  ;;  %v4560_v34 = vld [vmem:[#allocation10 + $0x38] sm:$0xff]  }
 0x288   : > { %v3890_v57 = vpop.f32.mrf.mxu0  ;;  %v3786_v2 = vpop.f32.mrf.mxu1  ;;  %4288 = vmatprep.subr.bf16.mxu1 %v4560_v34 }
 0x289   : > { %v3891_v61 = vadd.f32 %v3890_v57, %v3889_v4  ;;  %v2041_v43 = vadd.f32 %v3785_v27, %v5716_v45  ;;  %4289 = vmatpush3.bf16.msra.mxu1 %v4560_v34 }
 0x28a   : > { %v3892_v47 = vpop.f32.mrf.mxu0  ;;  %v3787_v10 = vpop.f32.mrf.mxu1 }
 0x28b   : > { %v5893_v31 = vadd.f32 %v3891_v61, %v2033_v33  ;;  %v3788_v6 = vadd.f32 %v3787_v10, %v3786_v2 }
 0x28c   : > { %v3893_v23 = vpop.f32.mrf.mxu0  ;;  %v3789_v40 = vpop.f32.mrf.mxu1 }
 0x28d   : > { %v3894_v49 = vadd.f32 %v3893_v23, %v3892_v47  ;;  %v2046_v50 = vadd.f32 %v3788_v6, %v5716_v45  ;;  %v4561_v23 = vld [vmem:[#allocation10 + $0x30] sm:$0xff]  }
 0x28e   : > { %v3895_v17 = vpop.f32.mrf.mxu0  ;;  %v3790_v26 = vpop.f32.mrf.mxu1  ;;  %4290 = vmatprep.subr.bf16.mxu1 %v4561_v23 }
 0x28f   : > { %v5896_v12 = vadd.f32 %v3894_v49, %v2038_v7  ;;  %v3791_v16 = vadd.f32 %v3790_v26, %v3789_v40  ;;  %4291 = vmatpush3.bf16.msra.mxu1 %v4561_v23 }
 0x290   : > { %v3896_v63 = vpop.f32.mrf.mxu0  ;;  %v3792_v32 = vpop.f32.mrf.mxu1 }
 0x291   : > { %v3897_v48 = vadd.f32 %v3896_v63, %v3895_v17  ;;  %v2049_v25 = vadd.f32 %v3791_v16, %v5716_v45 }
 0x292   : > { %v3898_v59 = vpop.f32.mrf.mxu0  ;;  %v3793_v29 = vpop.f32.mrf.mxu1 }
 0x293   : > { %v5899_v52 = vadd.f32 %v3897_v48, %v2041_v43  ;;  %v3794_v42 = vadd.f32 %v3793_v29, %v3792_v32  ;;  %v4562_v43 = vld [vmem:[#allocation10 + $0x28] sm:$0xff]  }
 0x294   : > { %v3899_v54 = vpop.f32.mrf.mxu0  ;;  %v3795_v39 = vpop.f32.mrf.mxu1  ;;  %4292 = vmatprep.subr.bf16.mxu1 %v4562_v43 }
 0x295   : > { %v3900_v53 = vadd.f32 %v3899_v54, %v3898_v59  ;;  %v2054_v61 = vadd.f32 %v3794_v42, %v5716_v45  ;;  %4293 = vmatpush3.bf16.msra.mxu1 %v4562_v43 }
 0x296   : > { %v3901_v15 = vpop.f32.mrf.mxu0  ;;  %v3796_v28 = vpop.f32.mrf.mxu1 }
 0x297   : > { %v5902_v1 = vadd.f32 %v3900_v53, %v2046_v50  ;;  %v3797_v2 = vadd.f32 %v3796_v28, %v3795_v39 }
 0x298   : > { %v3902_v36 = vpop.f32.mrf.mxu0  ;;  %v3798_v46 = vpop.f32.mrf.mxu1 }
 0x299   : > { %v3903_v9 = vadd.f32 %v3902_v36, %v3901_v15  ;;  %v2057_v40 = vadd.f32 %v3797_v2, %v5716_v45  ;;  %v4563_v15 = vld [vmem:[#allocation10 + $0x20] sm:$0xff]  }
 0x29a   : > { %v3904_v14 = vpop.f32.mrf.mxu0  ;;  %v3799_v41 = vpop.f32.mrf.mxu1  ;;  %4294 = vmatprep.subr.bf16.mxu1 %v4563_v15 }
 0x29b   : > { %v5905_v4 = vadd.f32 %v3903_v9, %v2049_v25  ;;  %v3800_v57 = vadd.f32 %v3799_v41, %v3798_v46  ;;  %4295 = vmatpush3.bf16.msra.mxu1 %v4563_v15  ;;  %v4567_v15 = vld [vmem:[#allocation10] sm:$0xff]  }
 0x29c   : > { %v3905_v33 = vpop.f32.mrf.mxu0  ;;  %v3801_v10 = vpop.f32.mrf.mxu1 }
 0x29d   : > { %v3906_v47 = vadd.f32 %v3905_v33, %v3904_v14  ;;  %v2062_v42 = vadd.f32 %v3800_v57, %v5716_v45  ;;  %v4564_v33 = vld [vmem:[#allocation10 + $0x18] sm:$0xff]  }
 0x29e   : > { %v3907_v6 = vpop.f32.mrf.mxu0  ;;  %v3802_v27 = vpop.f32.mrf.mxu1  ;;  %4296 = vmatprep.subr.bf16.mxu1 %v4564_v33 }
 0x29f   : > { %v5908_v7 = vadd.f32 %v3906_v47, %v2054_v61  ;;  %v3803_v54 = vadd.f32 %v3802_v27, %v3801_v10  ;;  %4297 = vmatpush3.bf16.msra.mxu1 %v4564_v33 }
 0x2a0   : > { %v3908_v49 = vpop.f32.mrf.mxu0  ;;  %v3932_v26 = vpop.f32.mrf.mxu1 }
 0x2a1   : > { %v3909_v17 = vadd.f32 %v3908_v49, %v3907_v6  ;;  %v2065_v46 = vadd.f32 %v3803_v54, %v5716_v45  ;;  %v4565_v45 = vld [vmem:[#allocation10 + $0x10] sm:$0xff]  }
 0x2a2   : > { %v3910_v63 = vpop.f32.mrf.mxu0  ;;  %v3933_v32 = vpop.f32.mrf.mxu1  ;;  %4298 = vmatprep.subr.bf16.mxu1 %v4565_v45 }
 0x2a3   : > { %v5911_v48 = vadd.f32 %v3909_v17, %v2057_v40  ;;  %v3934_v59 = vadd.f32 %v3933_v32, %v3932_v26  ;;  %4299 = vmatpush3.bf16.msra.mxu1 %v4565_v45 }
 0x2a4   : > { %v3911_v29 = vpop.f32.mrf.mxu0  ;;  %v3935_v16 = vpop.f32.mrf.mxu1 }
 0x2a5   : > { %v3912_v50 = vadd.f32 %v3911_v29, %v3910_v63  ;;  %v2264_v53 = vadd.f32 %v3934_v59, %v5728_v37  ;;  %v4566_v59 = vld [vmem:[#allocation10 + $0x8] sm:$0xff]  }
 0x2a6   : > { %v3913_v39 = vpop.f32.mrf.mxu0  ;;  %v3936_v36 = vpop.f32.mrf.mxu1  ;;  %4300 = vmatprep.subr.bf16.mxu1 %v4566_v59 }
 0x2a7   : > { %v5915_v28 = vadd.f32 %v3912_v50, %v2062_v42  ;;  %v3937_v25 = vadd.f32 %v3936_v36, %v3935_v16  ;;  %4301 = vmatpush3.bf16.msra.mxu1 %v4566_v59 }
 0x2a8   : > { %v3914_v9 = vpop.f32.mrf.mxu0  ;;  %v3938_v34 = vpop.f32.mrf.mxu1  ;;  %4302 = vmatprep.subr.bf16.mxu1 %v4567_v15 }
 0x2a9   : > { %v3915_v14 = vadd.f32 %v3914_v9, %v3913_v39  ;;  %v2267_v41 = vadd.f32 %v3937_v25, %v5731_v51 }
 0x2aa   : > { %v4044_v57 = vpop.f32.mrf.mxu0  ;;  %v3939_v37 = vpop.f32.mrf.mxu1 }
 0x2ab   : > { %v5919_v61 = vadd.f32 %v3915_v14, %v2065_v46  ;;  %v3940_v2 = vadd.f32 %v3939_v37, %v3938_v34  ;;  %4303 = vmatpush3.bf16.msra.mxu1 %v4567_v15 }
 0x2ac   : > { %v4045_v47 = vpop.f32.mrf.mxu0  ;;  %v3941_v6 = vpop.f32.mrf.mxu1 }
 0x2ad   : > { %v4046_v10 = vadd.f32 %v4045_v47, %v4044_v57  ;;  %v2272_v23 = vadd.f32 %v3940_v2, %v5742_v5 }
 0x2ae   : > { %v4047_v27 = vpop.f32.mrf.mxu0  ;;  %v3942_v49 = vpop.f32.mrf.mxu1 }
 0x2af   : > { %v5922_v40 = vadd.f32 %v4046_v10, %v2264_v53  ;;  %v3943_v17 = vadd.f32 %v3942_v49, %v3941_v6 }
 0x2b0   : > { %v4048_v51 = vpop.f32.mrf.mxu0  ;;  %v3944_v63 = vpop.f32.mrf.mxu1 }
 0x2b1   : > { %v4049_v26 = vadd.f32 %v4048_v51, %v4047_v27  ;;  %v2275_v43 = vadd.f32 %v3943_v17, %v5752_v56 }
 0x2b2   : > { %v4050_v32 = vpop.f32.mrf.mxu0  ;;  %v3945_v29 = vpop.f32.mrf.mxu1 }
 0x2b3   : > { %v5925_v42 = vadd.f32 %v4049_v26, %v2267_v41  ;;  %v3946_v54 = vadd.f32 %v3945_v29, %v3944_v63 }
 0x2b4   : > { %v4051_v5 = vpop.f32.mrf.mxu0  ;;  %v3947_v16 = vpop.f32.mrf.mxu1 }
 0x2b5   : > { %v4052_v50 = vadd.f32 %v4051_v5, %v4050_v32  ;;  %v2280_v53 = vadd.f32 %v3946_v54, %v5756_v38 }
 0x2b6   : > { %v4053_v39 = vpop.f32.mrf.mxu0  ;;  %v3948_v36 = vpop.f32.mrf.mxu1 }
 0x2b7   : > { %v5928_v25 = vadd.f32 %v4052_v50, %v2272_v23  ;;  %v3949_v9 = vadd.f32 %v3948_v36, %v3947_v16 }
 0x2b8   : > { %v4054_v56 = vpop.f32.mrf.mxu0  ;;  %v3950_v14 = vpop.f32.mrf.mxu1 }
 0x2b9   : > { %v4055_v46 = vadd.f32 %v4054_v56, %v4053_v39  ;;  %v2283_v34 = vadd.f32 %v3949_v9, %v5766_v8 }
 0x2ba   : > { %v4056_v41 = vpop.f32.mrf.mxu0  ;;  %v3951_v57 = vpop.f32.mrf.mxu1 }
 0x2bb   : > { %v5931_v33 = vadd.f32 %v4055_v46, %v2275_v43  ;;  %v3952_v37 = vadd.f32 %v3951_v57, %v3950_v14 }
 0x2bc   : > { %v4057_v2 = vpop.f32.mrf.mxu0  ;;  %v3953_v47 = vpop.f32.mrf.mxu1 }
 0x2bd   : > { %v4058_v38 = vadd.f32 %v4057_v2, %v4056_v41  ;;  %v2288_v10 = vadd.f32 %v3952_v37, %v5770_v35 }
 0x2be   : > { %v4059_v6 = vpop.f32.mrf.mxu0  ;;  %v3954_v23 = vpop.f32.mrf.mxu1 }
 0x2bf   : > { %v5934_v27 = vadd.f32 %v4058_v38, %v2280_v53  ;;  %v3955_v45 = vadd.f32 %v3954_v23, %v3953_v47 }
 0x2c0   : > { %v4060_v49 = vpop.f32.mrf.mxu0  ;;  %v3956_v51 = vpop.f32.mrf.mxu1 }
 0x2c1   : > { %v4061_v17 = vadd.f32 %v4060_v49, %v4059_v6  ;;  %v2291_v8 = vadd.f32 %v3955_v45, %v5780_v0 }
 0x2c2   : > { %v4062_v26 = vpop.f32.mrf.mxu0  ;;  %v3957_v63 = vpop.f32.mrf.mxu1 }
 0x2c3   : > { %v5937_v43 = vadd.f32 %v4061_v17, %v2283_v34  ;;  %v3958_v32 = vadd.f32 %v3957_v63, %v3956_v51 }
 0x2c4   : > { %v4063_v59 = vpop.f32.mrf.mxu0  ;;  %v3959_v54 = vpop.f32.mrf.mxu1 }
 0x2c5   : > { %v4064_v29 = vadd.f32 %v4063_v59, %v4062_v26  ;;  %v2296_v35 = vadd.f32 %v3958_v32, %v5784_v18 }
 0x2c6   : > { %v4065_v5 = vpop.f32.mrf.mxu0  ;;  %v3960_v50 = vpop.f32.mrf.mxu1 }
 0x2c7   : > { %v5940_v16 = vadd.f32 %v4064_v29, %v2288_v10  ;;  %v3961_v53 = vadd.f32 %v3960_v50, %v3959_v54 }
 0x2c8   : > { %v4066_v39 = vpop.f32.mrf.mxu0  ;;  %v3962_v36 = vpop.f32.mrf.mxu1 }
 0x2c9   : > { %v4067_v15 = vadd.f32 %v4066_v39, %v4065_v5  ;;  %v2299_v0 = vadd.f32 %v3961_v53, %v5794_v11 }
 0x2ca   : > { %v4068_v9 = vpop.f32.mrf.mxu0  ;;  %v3963_v56 = vpop.f32.mrf.mxu1 }
 0x2cb   : > { %v5943_v46 = vadd.f32 %v4067_v15, %v2291_v8  ;;  %v3964_v14 = vadd.f32 %v3963_v56, %v3962_v36 }
 0x2cc   : > { %v4069_v34 = vpop.f32.mrf.mxu0  ;;  %v3965_v57 = vpop.f32.mrf.mxu1 }
 0x2cd   : > { %v4070_v41 = vadd.f32 %v4069_v34, %v4068_v9  ;;  %v2304_v18 = vadd.f32 %v3964_v14, %v5798_v22 }
 0x2ce   : > { %v4071_v37 = vpop.f32.mrf.mxu0  ;;  %v3966_v2 = vpop.f32.mrf.mxu1 }
 0x2cf   : > { %v5946_v38 = vadd.f32 %v4070_v41, %v2296_v35  ;;  %v3967_v47 = vadd.f32 %v3966_v2, %v3965_v57 }
 0x2d0   : > { %v4072_v10 = vpop.f32.mrf.mxu0  ;;  %v3968_v23 = vpop.f32.mrf.mxu1 }
 0x2d1   : > { %v4073_v6 = vadd.f32 %v4072_v10, %v4071_v37  ;;  %v2307_v11 = vadd.f32 %v3967_v47, %v5808_v19 }
 0x2d2   : > { %v4074_v45 = vpop.f32.mrf.mxu0  ;;  %v3969_v49 = vpop.f32.mrf.mxu1 }
 0x2d3   : > { %v5949_v17 = vadd.f32 %v4073_v6, %v2299_v0  ;;  %v3970_v51 = vadd.f32 %v3969_v49, %v3968_v23 }
 0x2d4   : > { %v4075_v8 = vpop.f32.mrf.mxu0  ;;  %v3971_v63 = vpop.f32.mrf.mxu1 }
 0x2d5   : > { %v4076_v26 = vadd.f32 %v4075_v8, %v4074_v45  ;;  %v2312_v22 = vadd.f32 %v3970_v51, %v5812_v3 }
 0x2d6   : > { %v4077_v32 = vpop.f32.mrf.mxu0  ;;  %v3972_v59 = vpop.f32.mrf.mxu1 }
 0x2d7   : > { %v5952_v29 = vadd.f32 %v4076_v26, %v2304_v18  ;;  %v3973_v54 = vadd.f32 %v3972_v59, %v3971_v63 }
 0x2d8   : > { %v4078_v35 = vpop.f32.mrf.mxu0  ;;  %v3974_v50 = vpop.f32.mrf.mxu1 }
 0x2d9   : > { %v4079_v5 = vadd.f32 %v4078_v35, %v4077_v32  ;;  %v2315_v19 = vadd.f32 %v3973_v54, %v5824_v44 }
 0x2da   : > { %v4080_v53 = vpop.f32.mrf.mxu0  ;;  %v3975_v39 = vpop.f32.mrf.mxu1 }
 0x2db   : > { %v5955_v15 = vadd.f32 %v4079_v5, %v2307_v11  ;;  %v3976_v36 = vadd.f32 %v3975_v39, %v3974_v50 }
 0x2dc   : > { %v4081_v0 = vpop.f32.mrf.mxu0  ;;  %v3977_v56 = vpop.f32.mrf.mxu1 }
 0x2dd   : > { %v4082_v9 = vadd.f32 %v4081_v0, %v4080_v53  ;;  %v2320_v3 = vadd.f32 %v3976_v36, %v5830_v62 }
 0x2de   : > { %v4083_v14 = vpop.f32.mrf.mxu0  ;;  %v3978_v34 = vpop.f32.mrf.mxu1 }
 0x2df   : > { %v5958_v41 = vadd.f32 %v4082_v9, %v2312_v22  ;;  %v3979_v57 = vadd.f32 %v3978_v34, %v3977_v56 }
 0x2e0   : > { %v4084_v18 = vpop.f32.mrf.mxu0  ;;  %v3980_v2 = vpop.f32.mrf.mxu1 }
 0x2e1   : > { %v4085_v37 = vadd.f32 %v4084_v18, %v4083_v14  ;;  %v2323_v44 = vadd.f32 %v3979_v57, %v5842_v30 }
 0x2e2   : > { %v4086_v47 = vpop.f32.mrf.mxu0  ;;  %v3981_v10 = vpop.f32.mrf.mxu1 }
 0x2e3   : > { %v5961_v6 = vadd.f32 %v4085_v37, %v2315_v19  ;;  %v3982_v23 = vadd.f32 %v3981_v10, %v3980_v2 }
 0x2e4   : > { %v4087_v11 = vpop.f32.mrf.mxu0  ;;  %v3983_v49 = vpop.f32.mrf.mxu1 }
 0x2e5   : > { %v4088_v45 = vadd.f32 %v4087_v11, %v4086_v47  ;;  %v2328_v62 = vadd.f32 %v3982_v23, %v5848_v20 }
 0x2e6   : > { %v4089_v51 = vpop.f32.mrf.mxu0  ;;  %v3984_v8 = vpop.f32.mrf.mxu1 }
 0x2e7   : > { %v5964_v26 = vadd.f32 %v4088_v45, %v2320_v3  ;;  %v3985_v5 = vadd.f32 %v3984_v8, %v3983_v49 }
 0x2e8   : > { %v4090_v63 = vpop.f32.mrf.mxu0  ;;  %v3986_v32 = vpop.f32.mrf.mxu1 }
 0x2e9   : > { %v4091_v22 = vadd.f32 %v4090_v63, %v4089_v51  ;;  %v2331_v0 = vadd.f32 %v3985_v5, %v5860_v24 }
 0x2ea   : > { %v4092_v59 = vpop.f32.mrf.mxu0  ;;  %v3987_v54 = vpop.f32.mrf.mxu1 }
 0x2eb   : > { %v5966_v30 = vadd.f32 %v4091_v22, %v2323_v44  ;;  %v3988_v9 = vadd.f32 %v3987_v54, %v3986_v32 }
 0x2ec   : > { %v4093_v35 = vpop.f32.mrf.mxu0  ;;  %v3989_v19 = vpop.f32.mrf.mxu1 }
 0x2ed   : > { %v4094_v50 = vadd.f32 %v4093_v35, %v4092_v59  ;;  %v2336_v37 = vadd.f32 %v3988_v9, %v5866_v13 }
 0x2ee   : > { %v4095_v53 = vpop.f32.mrf.mxu0  ;;  %v3990_v39 = vpop.f32.mrf.mxu1 }
 0x2ef   : > { %v5968_v36 = vadd.f32 %v4094_v50, %v2328_v62  ;;  %v3991_v2 = vadd.f32 %v3990_v39, %v3989_v19 }
 0x2f0   : > { %v4096_v20 = vpop.f32.mrf.mxu0  ;;  %v3992_v3 = vpop.f32.mrf.mxu1 }
 0x2f1   : > { %v4097_v56 = vadd.f32 %v4096_v20, %v4095_v53  ;;  %v2339_v24 = vadd.f32 %v3991_v2, %v5875_v21 }
 0x2f2   : > { %v4098_v14 = vpop.f32.mrf.mxu0  ;;  %v3993_v34 = vpop.f32.mrf.mxu1 }
 0x2f3   : > { %v5971_v57 = vadd.f32 %v4097_v56, %v2331_v0  ;;  %v3994_v49 = vadd.f32 %v3993_v34, %v3992_v3 }
 0x2f4   : > { %v4099_v18 = vpop.f32.mrf.mxu0  ;;  %v3995_v47 = vpop.f32.mrf.mxu1 }
 0x2f5   : > { %v4100_v44 = vadd.f32 %v4099_v18, %v4098_v14  ;;  %v2344_v13 = vadd.f32 %v3994_v49, %v5881_v58 }
 0x2f6   : > { %v4101_v10 = vpop.f32.mrf.mxu0  ;;  %v3996_v23 = vpop.f32.mrf.mxu1 }
 0x2f7   : > { %v5974_v11 = vadd.f32 %v4100_v44, %v2336_v37  ;;  %v3997_v59 = vadd.f32 %v3996_v23, %v3995_v47 }
 0x2f8   : > { %v4102_v45 = vpop.f32.mrf.mxu0  ;;  %v3998_v51 = vpop.f32.mrf.mxu1 }
 0x2f9   : > { %v4103_v62 = vadd.f32 %v4102_v45, %v4101_v10  ;;  %v2347_v21 = vadd.f32 %v3997_v59, %v5887_v55 }
 0x2fa   : > { %v4104_v8 = vpop.f32.mrf.mxu0  ;;  %v3999_v63 = vpop.f32.mrf.mxu1 }
 0x2fb   : > { %v5977_v22 = vadd.f32 %v4103_v62, %v2339_v24  ;;  %v4000_v39 = vadd.f32 %v3999_v63, %v3998_v51 }
 0x2fc   : > { %v4105_v32 = vpop.f32.mrf.mxu0  ;;  %v4001_v35 = vpop.f32.mrf.mxu1 }
 0x2fd   : > { %v4106_v54 = vadd.f32 %v4105_v32, %v4104_v8  ;;  %v2352_v58 = vadd.f32 %v4000_v39, %v5890_v60 }
 0x2fe   : > { %v4107_v5 = vpop.f32.mrf.mxu0  ;;  %v4002_v50 = vpop.f32.mrf.mxu1 }
 0x2ff   : > { %v5980_v19 = vadd.f32 %v4106_v54, %v2344_v13  ;;  %v4003_v34 = vadd.f32 %v4002_v50, %v4001_v35 }
 0x300   : > { %v4108_v53 = vpop.f32.mrf.mxu0  ;;  %v4004_v0 = vpop.f32.mrf.mxu1 }
 0x301   : > { %v4109_v20 = vadd.f32 %v4108_v53, %v4107_v5  ;;  %v2355_v55 = vadd.f32 %v4003_v34, %v5893_v31 }
 0x302   : > { %v4110_v9 = vpop.f32.mrf.mxu0  ;;  %v4005_v56 = vpop.f32.mrf.mxu1 }
 0x303   : > { %v5983_v3 = vadd.f32 %v4109_v20, %v2347_v21  ;;  %v4006_v23 = vadd.f32 %v4005_v56, %v4004_v0 }
 0x304   : > { %v4111_v14 = vpop.f32.mrf.mxu0  ;;  %v4007_v37 = vpop.f32.mrf.mxu1 }
 0x305   : > { %v4112_v18 = vadd.f32 %v4111_v14, %v4110_v9  ;;  %v2360_v60 = vadd.f32 %v4006_v23, %v5896_v12 }
 0x306   : > { %v4113_v2 = vpop.f32.mrf.mxu0  ;;  %v4008_v44 = vpop.f32.mrf.mxu1 }
 0x307   : > { %v5986_v47 = vadd.f32 %v4112_v18, %v2352_v58  ;;  %v4009_v63 = vadd.f32 %v4008_v44, %v4007_v37 }
 0x308   : > { %v4114_v10 = vpop.f32.mrf.mxu0  ;;  %v4010_v24 = vpop.f32.mrf.mxu1 }
 0x309   : > { %v4115_v45 = vadd.f32 %v4114_v10, %v4113_v2  ;;  %v2363_v31 = vadd.f32 %v4009_v63, %v5899_v52 }
 0x30a   : > { %v4116_v49 = vpop.f32.mrf.mxu0  ;;  %v4011_v62 = vpop.f32.mrf.mxu1 }
 0x30b   : > { %v5989_v51 = vadd.f32 %v4115_v45, %v2355_v55  ;;  %v4012_v50 = vadd.f32 %v4011_v62, %v4010_v24 }
 0x30c   : > { %v4117_v8 = vpop.f32.mrf.mxu0  ;;  %v4013_v13 = vpop.f32.mrf.mxu1 }
 0x30d   : > { %v4118_v32 = vadd.f32 %v4117_v8, %v4116_v49  ;;  %v2368_v12 = vadd.f32 %v4012_v50, %v5902_v1 }
 0x30e   : > { %v4119_v59 = vpop.f32.mrf.mxu0  ;;  %v4014_v54 = vpop.f32.mrf.mxu1 }
 0x30f   : > { %v5992_v35 = vadd.f32 %v4118_v32, %v2360_v60  ;;  %v4015_v56 = vadd.f32 %v4014_v54, %v4013_v13 }
 0x310   : > { %v4120_v5 = vpop.f32.mrf.mxu0  ;;  %v4016_v21 = vpop.f32.mrf.mxu1 }
 0x311   : > { %v4121_v53 = vadd.f32 %v4120_v5, %v4119_v59  ;;  %v2371_v52 = vadd.f32 %v4015_v56, %v5905_v4 }
 0x312   : > { %v4122_v39 = vpop.f32.mrf.mxu0  ;;  %v4017_v20 = vpop.f32.mrf.mxu1 }
 0x313   : > { %v5995_v0 = vadd.f32 %v4121_v53, %v2363_v31  ;;  %v4018_v44 = vadd.f32 %v4017_v20, %v4016_v21 }
 0x314   : > { %v4123_v9 = vpop.f32.mrf.mxu0  ;;  %v4019_v58 = vpop.f32.mrf.mxu1 }
 0x315   : > { %v4124_v14 = vadd.f32 %v4123_v9, %v4122_v39  ;;  %v2376_v1 = vadd.f32 %v4018_v44, %v5908_v7 }
 0x316   : > { %v4125_v34 = vpop.f32.mrf.mxu0  ;;  %v4020_v18 = vpop.f32.mrf.mxu1 }
 0x317   : > { %v5998_v37 = vadd.f32 %v4124_v14, %v2368_v12  ;;  %v4021_v62 = vadd.f32 %v4020_v18, %v4019_v58 }
 0x318   : > { %v4126_v2 = vpop.f32.mrf.mxu0  ;;  %v4022_v55 = vpop.f32.mrf.mxu1 }
 0x319   : > { %v4127_v10 = vadd.f32 %v4126_v2, %v4125_v34  ;;  %v2379_v59 = vadd.f32 %v4021_v62, %v5911_v48 }
 0x31a   : > { %v4128_v23 = vpop.f32.mrf.mxu0  ;;  %v4023_v45 = vpop.f32.mrf.mxu1 }
 0x31b   : > { %v6001_v24 = vadd.f32 %v4127_v10, %v2371_v52  ;;  %v4024_v54 = vadd.f32 %v4023_v45, %v4022_v55 }
 0x31c   : > { %v4129_v49 = vpop.f32.mrf.mxu0  ;;  %v6004_v60 = vpop.f32.mrf.mxu1 }
 0x31d   : > { %v4130_v8 = vadd.f32 %v4129_v49, %v4128_v23  ;;  %v2384_v20 = vadd.f32 %v4024_v54, %v5915_v28 }
 0x31e   : > { %v4131_v63 = vpop.f32.mrf.mxu0  ;;  %v6006_v32 = vpop.f32.mrf.mxu1 }
 0x31f   : > { %v6008_v13 = vadd.f32 %v4130_v8, %v2376_v1 }
 0x320   : > { %v4132_v4 = vpop.f32.mrf.mxu0  ;;  %v4274_v31 = vpop.f32.mrf.mxu1 }
 0x321   : > { %v4133_v5 = vadd.f32 %v4132_v4, %v4131_v63  ;;  %v2658_v7 = vadd.f32 %v4274_v31, %v5974_v11 }
 0x322   : > { %v4134_v50 = vpop.f32.mrf.mxu0  ;;  %v2649_v53 = vpop.f32.mrf.mxu1 }
 0x323   : > { %v6011_v21 = vadd.f32 %v4133_v5, %v2379_v59  ;;  %v2650_v56 = vadd.f32 %v2649_v53, %v5968_v36  ;;  %v2730_v18 = vmax.f32 %v2658_v7, 0.0 }
 0x324   : > { %v4135_v39 = vpop.f32.mrf.mxu0  ;;  %v4275_v12 = vpop.f32.mrf.mxu1 }
 0x325   : > { %v4136_v9 = vadd.f32 %v4135_v39, %v4134_v50  ;;  %v2661_v14 = vadd.f32 %v4275_v12, %v5977_v22  ;;  %v2728_v11 = vmax.f32 %v2650_v56, 0.0 }
 0x326   : > { %v4137_v58 = vpop.f32.mrf.mxu0  ;;  %v2652_v48 = vpop.f32.mrf.mxu1 }
 0x327   : > { %v6017_v34 = vadd.f32 %v4136_v9, %v2384_v20  ;;  %v2731_v2 = vmax.f32 %v2661_v14, 0.0  ;;  %v2653_v52 = vadd.f32 %v2652_v48, %v5971_v57 }
 0x328   : > { %v4138_v44 = vpop.f32.mrf.mxu0  ;;  %v4278_v10 = vpop.f32.mrf.mxu1 }
 0x329   : > { %v6020_v55 = vpack.c.bf16 %v2731_v2, %v2730_v18  ;;  %v2729_v28 = vmax.f32 %v2653_v52, 0.0  ;;  %v2674_v36 = vadd.f32 %v4278_v10, %v5986_v47 }
 0x32a   : > { %v4258_v23 = vpop.f32.mrf.mxu0  ;;  %v2665_v45 = vpop.f32.mrf.mxu1 }
 0x32b   : > { %v6022_v49 = vpack.c.bf16 %v2729_v28, %v2728_v11  ;;  %v2594_v1 = vadd.f32 %v4258_v23, %v5928_v25  ;;  %v2666_v8 = vadd.f32 %v2665_v45, %v5980_v19  ;;  %v2734_v5 = vmax.f32 %v2674_v36, 0.0 }
 0x32c   : > { %v2585_v22 = vpop.f32.mrf.mxu0  ;;  %v4279_v62 = vpop.f32.mrf.mxu1 }
 0x32d   : > { %v2677_v57 = vadd.f32 %v4279_v62, %v5989_v51  ;;  %v2586_v4 = vadd.f32 %v2585_v22, %v5922_v40  ;;  %v2714_v47 = vmax.f32 %v2594_v1, 0.0  ;;  %v2732_v20 = vmax.f32 %v2666_v8, 0.0 }
 0x32e   : > { %v4259_v63 = vpop.f32.mrf.mxu0  ;;  %v2668_v54 = vpop.f32.mrf.mxu1 }
 0x32f   : > { %v2597_v59 = vadd.f32 %v4259_v63, %v5931_v33  ;;  %v2735_v31 = vmax.f32 %v2677_v57, 0.0  ;;  %v2669_v50 = vadd.f32 %v2668_v54, %v5983_v3  ;;  %v2712_v12 = vmax.f32 %v2586_v4, 0.0 }
 0x330   : > { %v2588_v53 = vpop.f32.mrf.mxu0  ;;  %v4282_v39 = vpop.f32.mrf.mxu1 }
 0x331   : > { %v2715_v7 = vmax.f32 %v2597_v59, 0.0  ;;  %v2589_v25 = vadd.f32 %v2588_v53, %v5925_v42  ;;  %v6032_v19 = vpack.c.bf16 %v2735_v31, %v2734_v5  ;;  %v2733_v51 = vmax.f32 %v2669_v50, 0.0 }
 0x332   : > { %v4262_v9 = vpop.f32.mrf.mxu0  ;;  %v2681_v33 = vpop.f32.mrf.mxu1  ;;  %v2690_v48 = vadd.f32 %v4282_v39, %v5998_v37  ;;  %v4027_v42 = vadd.f32 %v6006_v32, %v6004_v60  ;;  %v4139_v37 = vadd.f32 %v4138_v44, %v4137_v58 }
 0x333   : > { %v2745_v40 = vpack.c.bf16 %v2715_v7, %v2714_v47  ;;  %v2713_v56 = vmax.f32 %v2589_v25, 0.0  ;;  %v6034_v14 = vpack.c.bf16 %v2733_v51, %v2732_v20  ;;  %v2610_v2 = vadd.f32 %v4262_v9, %v5940_v16 }
 0x334   : > { %v2601_v3 = vpop.f32.mrf.mxu0  ;;  %v4283_v52 = vpop.f32.mrf.mxu1  ;;  %v2682_v10 = vadd.f32 %v2681_v33, %v5992_v35  ;;  %v2738_v22 = vmax.f32 %v2690_v48, 0.0 }
 0x335   : > { %v2744_v18 = vpack.c.bf16 %v2713_v56, %v2712_v12  ;;  %v2693_v11 = vadd.f32 %v4283_v52, %v6001_v24  ;;  %v2602_v23 = vadd.f32 %v2601_v3, %v5934_v27  ;;  %v2718_v8 = vmax.f32 %v2610_v2, 0.0 }
 0x336   : > { %v4263_v28 = vpop.f32.mrf.mxu0  ;;  %v2684_v36 = vpop.f32.mrf.mxu1  ;;  %v2387_v24 = vadd.f32 %v4027_v42, %v5919_v61  ;;  %v2736_v57 = vmax.f32 %v2682_v10, 0.0 }
 0x337   : > { %v2613_v45 = vadd.f32 %v4263_v28, %v5943_v46  ;;  %4304 = vmatprep.mubr.bf16.mxu1 %v2744_v18  ;;  %v2739_v1 = vmax.f32 %v2693_v11, 0.0  ;;  %v2685_v16 = vadd.f32 %v2684_v36, %v5995_v0  ;;  %v2716_v4 = vmax.f32 %v2602_v23, 0.0 }
 0x338   : > { %v2604_v62 = vpop.f32.mrf.mxu0  ;;  %4305 = vmatmul.mubr.bf16.vlgmr.msra.gmra.mxu1 %v2745_v40  ;;  %v4286_v32 = vpop.f32.mrf.mxu1  ;;  %v2548_v31 = vadd.f32 %v4139_v37, %v2387_v24  ;;  %v826_v24 = vld [vmem:[%s5024_s17 + $0x8] sm:$0xff] }
 0x339   : > { %v2719_v60 = vmax.f32 %v2613_v45, 0.0  ;;  %v2605_v35 = vadd.f32 %v2604_v62, %v5937_v43  ;;  %v2757_v27 = vpack.c.bf16 %v2739_v1, %v2738_v22  ;;  %v2737_v63 = vmax.f32 %v2685_v16, 0.0  ;;  %v828_v62 = vld [vmem:[%s5024_s17 + $0x18] sm:$0xff] }
 0x33a   : > { %v4266_v46 = vpop.f32.mrf.mxu0  ;;  %v2697_v44 = vpop.f32.mrf.mxu1  ;;  %v2706_v0 = vadd.f32 %v4286_v32, %v6017_v34 }
 0x33b   : > { %v2747_v59 = vpack.c.bf16 %v2719_v60, %v2718_v8  ;;  %v2717_v58 = vmax.f32 %v2605_v35, 0.0  ;;  %v2756_v54 = vpack.c.bf16 %v2737_v63, %v2736_v57  ;;  %v2626_v53 = vadd.f32 %v4266_v46, %v5952_v29 }
 0x33c   : > { %v2617_v5 = vpop.f32.mrf.mxu0  ;;  %v4287_v43 = vpop.f32.mrf.mxu1  ;;  %v2698_v47 = vadd.f32 %v2697_v44, %v6008_v13  ;;  %v2742_v51 = vmax.f32 %v2706_v0, 0.0  ;;  %v829_v0 = vld [vmem:[%s5024_s17 + $0x20] sm:$0xff] }
 0x33d   : > { %v2746_v50 = vpack.c.bf16 %v2717_v58, %v2716_v4  ;;  %v2709_v61 = vadd.f32 %v4287_v43, %v2548_v31  ;;  %v2618_v25 = vadd.f32 %v2617_v5, %v5946_v38  ;;  %v2722_v40 = vmax.f32 %v2626_v53, 0.0  ;;  %v831_v4 = vld [vmem:[%s5024_s17 + $0x30] sm:$0xff]  ;;  %v832_v43 = vld [vmem:[%s5024_s17 + $0x38] sm:$0xff] }
 0x33e   : > { %v4267_v7 = vpop.f32.mrf.mxu0  ;;  %v2700_v20 = vpop.f32.mrf.mxu1  ;;  %v2740_v33 = vmax.f32 %v2698_v47, 0.0 }
 0x33f   : > { %v2629_v39 = vadd.f32 %v4267_v7, %v5955_v15  ;;  %4308 = vmatprep.mubr.bf16.mxu1 %v2746_v50  ;;  %v2743_v9 = vmax.f32 %v2709_v61, 0.0  ;;  %v2701_v34 = vadd.f32 %v2700_v20, %v6011_v21  ;;  %v2720_v18 = vmax.f32 %v2618_v25, 0.0 }
 0x340   : > { %v2620_v12 = vpop.f32.mrf.mxu0  ;;  %4309 = vmatmul.mubr.bf16.gmra.mxu1 %v2747_v59 }
 0x341   : > { %v2723_v56 = vmax.f32 %v2629_v39, 0.0  ;;  %v2621_v29 = vadd.f32 %v2620_v12, %v5949_v17  ;;  %v2759_v13 = vpack.c.bf16 %v2743_v9, %v2742_v51  ;;  %v2741_v48 = vmax.f32 %v2701_v34, 0.0  ;;  %v830_v39 = vld [vmem:[%s5024_s17 + $0x28] sm:$0xff]  ;;  %v835_v12 = vld [vmem:[%s5024_s17 + $0x50] sm:$0xff] }
 0x342   : > { %v4270_v3 = vpop.f32.mrf.mxu0 }
 0x343   : > { %v2749_v38 = vpack.c.bf16 %v2723_v56, %v2722_v40  ;;  %v2721_v2 = vmax.f32 %v2621_v29, 0.0  ;;  %v2758_v15 = vpack.c.bf16 %v2741_v48, %v2740_v33  ;;  %v2642_v10 = vadd.f32 %v4270_v3, %v5964_v26 }
 0x344   : > { %v2633_v52 = vpop.f32.mrf.mxu0 }
 0x345   : > { %v2748_v42 = vpack.c.bf16 %v2721_v2, %v2720_v18  ;;  %v2634_v21 = vadd.f32 %v2633_v52, %v5958_v41  ;;  %v2726_v17 = vmax.f32 %v2642_v10, 0.0  ;;  %v6065_v41 = vld [vmem:[%s6229_s7] ss:$0 sm:$0xff]  ;;  %v836_v2 = vld [vmem:[%s5024_s17 + $0x58] sm:$0xff] }
 0x346   : > { %v4271_v11 = vpop.f32.mrf.mxu0 }
 0x347   : > { %v2645_v28 = vadd.f32 %v4271_v11, %v5966_v30  ;;  %4312 = vmatprep.mubr.bf16.mxu1 %v2748_v42  ;;  %v2724_v37 = vmax.f32 %v2634_v21, 0.0  ;;  %v834_v11 = vld [vmem:[%s5024_s17 + $0x48] sm:$0xff] }
 0x348   : > { %v2636_v23 = vpop.f32.mrf.mxu0  ;;  %4313 = vmatmul.mubr.bf16.gmra.mxu1 %v2749_v38 }
 0x349   : > { %v2727_v45 = vmax.f32 %v2645_v28, 0.0  ;;  %v2637_v36 = vadd.f32 %v2636_v23, %v5961_v6  ;;  %v827_v6 = vld [vmem:[%s5024_s17 + $0x10] sm:$0xff] }
 0x34b   : > { %v2751_v22 = vpack.c.bf16 %v2727_v45, %v2726_v17  ;;  %v2725_v1 = vmax.f32 %v2637_v36, 0.0  ;;  %v839_v45 = vld [vmem:[%s5024_s17 + $0x70] sm:$0xff] }
 0x34d   : > { %v2750_v16 = vpack.c.bf16 %v2725_v1, %v2724_v37 }
 0x34f   : > { %4316 = vmatprep.mubr.bf16.mxu1 %v2750_v16  ;;  %v837_v16 = vld [vmem:[%s5024_s17 + $0x60] sm:$0xff] }
 0x350   : > { %4317 = vmatmul.mubr.bf16.gmra.mxu1 %v2751_v22 }
 0x351   : > { %4320 = vmatprep.mubr.bf16.mxu1 %v6022_v49 }
 0x358   : > { %4321 = vmatmul.mubr.bf16.gmra.mxu1 %v6020_v55  ;;  %v825_v55 = vld [vmem:[%s5024_s17] sm:$0xff] }
 0x359   : > { %4324 = vmatprep.mubr.bf16.mxu1 %v6034_v14 }
 0x360   : > { %4325 = vmatmul.mubr.bf16.gmra.mxu1 %v6032_v19 }
 0x361   : > { %4328 = vmatprep.mubr.bf16.mxu1 %v2756_v54 }
 0x368   : > { %4329 = vmatmul.mubr.bf16.gmra.mxu1 %v2757_v27 }
 0x369   : > { %4332 = vmatprep.mubr.bf16.mxu1 %v2758_v15 }
 0x370   : > { %4333 = vmatmul.mubr.bf16.gmra.mxu1 %v2759_v13  ;;  %v833_v13 = vld [vmem:[%s5024_s17 + $0x40] sm:$0xff] }
 0x3f8   : > { %v4306_v26 = vpop.f32.mrf.mxu1 }
 0x3f9   : > { %v2874_v30 = vadd.f32 %v4306_v26, %v6065_v41 }
 0x3fa   : > { %v2865_v49 = vpop.f32.mrf.mxu1 }
 0x3fb   : > { %v2994_v14 = vadd.f32 %v2874_v30, %v827_v6  ;;  %v2866_v19 = vadd.f32 %v6065_v41, %v2865_v49  ;;  %v840_v49 = vld [vmem:[%s5024_s17 + $0x78] sm:$0xff] }
 0x3fc   : > { %v4307_v8 = vpop.f32.mrf.mxu1 }
 0x3fd   : > { %v3026_v60 = vmax.f32 %v2994_v14, 0.0  ;;  %v2992_v35 = vadd.f32 %v2866_v19, %v825_v55  ;;  %v2877_v32 = vadd.f32 %v4307_v8, %v6065_v41 }
 0x3fe   : > { %v2868_v57 = vpop.f32.mrf.mxu1 }
 0x3ff   : > { %3058 = vst [vmem:[%s6076_s26 + $0x10] sm:$0xff] %v3026_v60  ;;  %v3024_v27 = vmax.f32 %v2992_v35, 0.0  ;;  %v2995_v63 = vadd.f32 %v2877_v32, %v828_v62  ;;  %v2869_v46 = vadd.f32 %v6065_v41, %v2868_v57  ;;  %v838_v60 = vld [vmem:[%s5024_s17 + $0x68] sm:$0xff] }
 0x400   : > { %v4310_v59 = vpop.f32.mrf.mxu1 }
 0x401   : > { %3056 = vst [vmem:[%s6076_s26] sm:$0xff] %v3024_v27  ;;  %v3027_v58 = vmax.f32 %v2995_v63, 0.0  ;;  %v2993_v44 = vadd.f32 %v2869_v46, %v826_v24  ;;  %v2890_v54 = vadd.f32 %v4310_v59, %v6065_v41  ;;  %v843_v27 = vld [vmem:[%s5024_s17 + $0x90] sm:$0xff] }
 0x402   : > { %v2881_v5 = vpop.f32.mrf.mxu1 }
 0x403   : > { %3059 = vst [vmem:[%s6076_s26 + $0x18] sm:$0xff] %v3027_v58  ;;  %v3025_v31 = vmax.f32 %v2993_v44, 0.0  ;;  %v2998_v50 = vadd.f32 %v2890_v54, %v831_v4  ;;  %v2882_v53 = vadd.f32 %v6065_v41, %v2881_v5  ;;  %v841_v58 = vld [vmem:[%s5024_s17 + $0x80] sm:$0xff] }
 0x404   : > { %v4311_v47 = vpop.f32.mrf.mxu1 }
 0x405   : > { %3057 = vst [vmem:[%s6076_s26 + $0x8] sm:$0xff] %v3025_v31  ;;  %v3030_v61 = vmax.f32 %v2998_v50, 0.0  ;;  %v2996_v7 = vadd.f32 %v2882_v53, %v829_v0  ;;  %v2893_v25 = vadd.f32 %v4311_v47, %v6065_v41  ;;  %v844_v31 = vld [vmem:[%s5024_s17 + $0x98] sm:$0xff] }
 0x406   : > { %v2884_v20 = vpop.f32.mrf.mxu1 }
 0x407   : > { %3062 = vst [vmem:[%s6076_s26 + $0x30] sm:$0xff] %v3030_v61  ;;  %v3028_v51 = vmax.f32 %v2996_v7, 0.0  ;;  %v2999_v9 = vadd.f32 %v2893_v25, %v832_v43  ;;  %v2885_v34 = vadd.f32 %v6065_v41, %v2884_v20  ;;  %v842_v61 = vld [vmem:[%s5024_s17 + $0x88] sm:$0xff] }
 0x408   : > { %v4314_v40 = vpop.f32.mrf.mxu1 }
 0x409   : > { %3060 = vst [vmem:[%s6076_s26 + $0x20] sm:$0xff] %v3028_v51  ;;  %v3031_v56 = vmax.f32 %v2999_v9, 0.0  ;;  %v2997_v29 = vadd.f32 %v2885_v34, %v830_v39  ;;  %v2906_v33 = vadd.f32 %v4314_v40, %v6065_v41  ;;  %v847_v51 = vld [vmem:[%s5024_s17 + $0xb0] sm:$0xff] }
 0x40a   : > { %v2897_v48 = vpop.f32.mrf.mxu1 }
 0x40b   : > { %3063 = vst [vmem:[%s6076_s26 + $0x38] sm:$0xff] %v3031_v56  ;;  %v3029_v3 = vmax.f32 %v2997_v29, 0.0  ;;  %v3002_v18 = vadd.f32 %v2906_v33, %v835_v12  ;;  %v2898_v38 = vadd.f32 %v6065_v41, %v2897_v48  ;;  %v845_v56 = vld [vmem:[%s5024_s17 + $0xa0] sm:$0xff] }
 0x40c   : > { %v4315_v15 = vpop.f32.mrf.mxu1 }
 0x40d   : > { %3061 = vst [vmem:[%s6076_s26 + $0x28] sm:$0xff] %v3029_v3  ;;  %v3034_v52 = vmax.f32 %v3002_v18, 0.0  ;;  %v3000_v42 = vadd.f32 %v2898_v38, %v833_v13  ;;  %v2909_v10 = vadd.f32 %v4315_v15, %v6065_v41  ;;  %v848_v3 = vld [vmem:[%s5024_s17 + $0xb8] sm:$0xff] }
 0x40e   : > { %v2900_v21 = vpop.f32.mrf.mxu1 }
 0x40f   : > { %3066 = vst [vmem:[%s6076_s26 + $0x50] sm:$0xff] %v3034_v52  ;;  %v3032_v28 = vmax.f32 %v3000_v42, 0.0  ;;  %v3003_v23 = vadd.f32 %v2909_v10, %v836_v2  ;;  %v2901_v17 = vadd.f32 %v6065_v41, %v2900_v21  ;;  %v846_v52 = vld [vmem:[%s5024_s17 + $0xa8] sm:$0xff] }
 0x410   : > { %v4318_v36 = vpop.f32.mrf.mxu1 }
 0x411   : > { %3064 = vst [vmem:[%s6076_s26 + $0x40] sm:$0xff] %v3032_v28  ;;  %v3035_v37 = vmax.f32 %v3003_v23, 0.0  ;;  %v3001_v22 = vadd.f32 %v2901_v17, %v834_v11  ;;  %v2922_v1 = vadd.f32 %v4318_v36, %v6065_v41  ;;  %v851_v28 = vld [vmem:[%s5024_s17 + $0xd0] sm:$0xff] }
 0x412   : > { %v2913_v6 = vpop.f32.mrf.mxu1 }
 0x413   : > { %3067 = vst [vmem:[%s6076_s26 + $0x58] sm:$0xff] %v3035_v37  ;;  %v3033_v26 = vmax.f32 %v3001_v22, 0.0  ;;  %v3006_v30 = vadd.f32 %v2922_v1, %v839_v45  ;;  %v2914_v55 = vadd.f32 %v6065_v41, %v2913_v6  ;;  %v849_v37 = vld [vmem:[%s5024_s17 + $0xc0] sm:$0xff] }
 0x414   : > { %v4319_v14 = vpop.f32.mrf.mxu1 }
 0x415   : > { %3065 = vst [vmem:[%s6076_s26 + $0x48] sm:$0xff] %v3033_v26  ;;  %v3038_v19 = vmax.f32 %v3006_v30, 0.0  ;;  %v3004_v62 = vadd.f32 %v2914_v55, %v837_v16  ;;  %v2925_v8 = vadd.f32 %v4319_v14, %v6065_v41  ;;  %v852_v26 = vld [vmem:[%s5024_s17 + $0xd8] sm:$0xff] }
 0x416   : > { %v2916_v35 = vpop.f32.mrf.mxu1 }
 0x417   : > { %3070 = vst [vmem:[%s6076_s26 + $0x70] sm:$0xff] %v3038_v19  ;;  %v3036_v32 = vmax.f32 %v3004_v62, 0.0  ;;  %v3007_v24 = vadd.f32 %v2925_v8, %v840_v49  ;;  %v2917_v57 = vadd.f32 %v6065_v41, %v2916_v35  ;;  %v850_v19 = vld [vmem:[%s5024_s17 + $0xc8] sm:$0xff] }
 0x418   : > { %v4322_v63 = vpop.f32.mrf.mxu1 }
 0x419   : > { %3068 = vst [vmem:[%s6076_s26 + $0x60] sm:$0xff] %v3036_v32  ;;  %v3039_v46 = vmax.f32 %v3007_v24, 0.0  ;;  %v3005_v4 = vadd.f32 %v2917_v57, %v838_v60  ;;  %v2938_v59 = vadd.f32 %v4322_v63, %v6065_v41  ;;  %v855_v32 = vld [vmem:[%s5024_s17 + $0xf0] sm:$0xff] }
 0x41a   : > { %v2929_v44 = vpop.f32.mrf.mxu1 }
 0x41b   : > { %3071 = vst [vmem:[%s6076_s26 + $0x78] sm:$0xff] %v3039_v46  ;;  %v3037_v54 = vmax.f32 %v3005_v4, 0.0  ;;  %v3010_v0 = vadd.f32 %v2938_v59, %v843_v27  ;;  %v2930_v5 = vadd.f32 %v6065_v41, %v2929_v44  ;;  %v853_v46 = vld [vmem:[%s5024_s17 + $0xe0] sm:$0xff] }
 0x41c   : > { %v4323_v50 = vpop.f32.mrf.mxu1 }
 0x41d   : > { %3069 = vst [vmem:[%s6076_s26 + $0x68] sm:$0xff] %v3037_v54  ;;  %v3042_v53 = vmax.f32 %v3010_v0, 0.0  ;;  %v3008_v43 = vadd.f32 %v2930_v5, %v841_v58  ;;  %v2941_v47 = vadd.f32 %v4323_v50, %v6065_v41  ;;  %v856_v54 = vld [vmem:[%s5024_s17 + $0xf8] sm:$0xff] }
 0x41e   : > { %v2932_v7 = vpop.f32.mrf.mxu1 }
 0x41f   : > { %3074 = vst [vmem:[%s6076_s26 + $0x90] sm:$0xff] %v3042_v53  ;;  %v3040_v25 = vmax.f32 %v3008_v43, 0.0  ;;  %v3011_v39 = vadd.f32 %v2941_v47, %v844_v31  ;;  %v2933_v20 = vadd.f32 %v6065_v41, %v2932_v7  ;;  %v854_v53 = vld [vmem:[%s5024_s17 + $0xe8] sm:$0xff] }
 0x420   : > { %v4326_v9 = vpop.f32.mrf.mxu1 }
 0x421   : > { %3072 = vst [vmem:[%s6076_s26 + $0x80] sm:$0xff] %v3040_v25  ;;  %v3043_v34 = vmax.f32 %v3011_v39, 0.0  ;;  %v3009_v12 = vadd.f32 %v2933_v20, %v842_v61  ;;  %v2954_v40 = vadd.f32 %v4326_v9, %v6065_v41 }
 0x422   : > { %v2945_v29 = vpop.f32.mrf.mxu1 }
 0x423   : > { %3075 = vst [vmem:[%s6076_s26 + $0x98] sm:$0xff] %v3043_v34  ;;  %v3041_v33 = vmax.f32 %v3009_v12, 0.0  ;;  %v3014_v13 = vadd.f32 %v2954_v40, %v847_v51  ;;  %v2946_v48 = vadd.f32 %v6065_v41, %v2945_v29 }
 0x424   : > { %v4327_v18 = vpop.f32.mrf.mxu1 }
 0x425   : > { %3073 = vst [vmem:[%s6076_s26 + $0x88] sm:$0xff] %v3041_v33  ;;  %v3046_v38 = vmax.f32 %v3014_v13, 0.0  ;;  %v3012_v2 = vadd.f32 %v2946_v48, %v845_v56  ;;  %v2957_v15 = vadd.f32 %v4327_v18, %v6065_v41 }
 0x426   : > { %v2948_v42 = vpop.f32.mrf.mxu1 }
 0x427   : > { %3078 = vst [vmem:[%s6076_s26 + $0xb0] sm:$0xff] %v3046_v38  ;;  %v3044_v10 = vmax.f32 %v3012_v2, 0.0  ;;  %v3015_v11 = vadd.f32 %v2957_v15, %v848_v3  ;;  %v2949_v21 = vadd.f32 %v6065_v41, %v2948_v42 }
 0x428   : > { %v4330_v23 = vpop.f32.mrf.mxu1 }
 0x429   : > { %3076 = vst [vmem:[%s6076_s26 + $0xa0] sm:$0xff] %v3044_v10  ;;  %v3047_v17 = vmax.f32 %v3015_v11, 0.0  ;;  %v3013_v45 = vadd.f32 %v2949_v21, %v846_v52  ;;  %v2970_v36 = vadd.f32 %v4330_v23, %v6065_v41 }
 0x42a   : > { %v2961_v22 = vpop.f32.mrf.mxu1 }
 0x42b   : > { %3079 = vst [vmem:[%s6076_s26 + $0xb8] sm:$0xff] %v3047_v17  ;;  %v3045_v1 = vmax.f32 %v3013_v45, 0.0  ;;  %v3018_v16 = vadd.f32 %v2970_v36, %v851_v28  ;;  %v2962_v6 = vadd.f32 %v6065_v41, %v2961_v22 }
 0x42c   : > { %v4331_v30 = vpop.f32.mrf.mxu1 }
 0x42d   : > { %3077 = vst [vmem:[%s6076_s26 + $0xa8] sm:$0xff] %v3045_v1  ;;  %v3050_v55 = vmax.f32 %v3018_v16, 0.0  ;;  %v3016_v49 = vadd.f32 %v2962_v6, %v849_v37  ;;  %v2973_v14 = vadd.f32 %v4331_v30, %v6065_v41 }
 0x42e   : > { %v2964_v62 = vpop.f32.mrf.mxu1 }
 0x42f   : > { %3082 = vst [vmem:[%s6076_s26 + $0xd0] sm:$0xff] %v3050_v55  ;;  %v3048_v8 = vmax.f32 %v3016_v49, 0.0  ;;  %v3019_v60 = vadd.f32 %v2973_v14, %v852_v26  ;;  %v2965_v35 = vadd.f32 %v6065_v41, %v2964_v62 }
 0x430   : > { %v4334_v24 = vpop.f32.mrf.mxu1 }
 0x431   : > { %3080 = vst [vmem:[%s6076_s26 + $0xc0] sm:$0xff] %v3048_v8  ;;  %v3051_v57 = vmax.f32 %v3019_v60, 0.0  ;;  %v3017_v27 = vadd.f32 %v2965_v35, %v850_v19  ;;  %v2986_v63 = vadd.f32 %v4334_v24, %v6065_v41 }
 0x432   : > { %v2977_v4 = vpop.f32.mrf.mxu1 }
 0x433   : > { %3083 = vst [vmem:[%s6076_s26 + $0xd8] sm:$0xff] %v3051_v57  ;;  %v3049_v59 = vmax.f32 %v3017_v27, 0.0  ;;  %v3022_v58 = vadd.f32 %v2986_v63, %v855_v32  ;;  %v2978_v44 = vadd.f32 %v6065_v41, %v2977_v4 }
 0x434   : > { %v4335_v0 = vpop.f32.mrf.mxu1 }
 0x435   : > { %3081 = vst [vmem:[%s6076_s26 + $0xc8] sm:$0xff] %v3049_v59  ;;  %v3054_v5 = vmax.f32 %v3022_v58, 0.0  ;;  %v3020_v31 = vadd.f32 %v2978_v44, %v853_v46  ;;  %v2989_v50 = vadd.f32 %v4335_v0, %v6065_v41 }
 0x436   : > { %v2980_v43 = vpop.f32.mrf.mxu1 }
 0x437   : > { %3086 = vst [vmem:[%s6076_s26 + $0xf0] sm:$0xff] %v3054_v5  ;;  %v3052_v47 = vmax.f32 %v3020_v31, 0.0  ;;  %v3023_v61 = vadd.f32 %v2989_v50, %v856_v54  ;;  %v2981_v7 = vadd.f32 %v6065_v41, %v2980_v43 }
 0x439   : > { %3084 = vst [vmem:[%s6076_s26 + $0xe0] sm:$0xff] %v3052_v47  ;;  %v3055_v25 = vmax.f32 %v3023_v61, 0.0  ;;  %v3021_v39 = vadd.f32 %v2981_v7, %v854_v53 }
 0x43b   : > { %3087 = vst [vmem:[%s6076_s26 + $0xf8] sm:$0xff] %v3055_v25  ;;  %v3053_v20 = vmax.f32 %v3021_v39, 0.0 }
 0x43d   : > { %3085 = vst [vmem:[%s6076_s26 + $0xe8] sm:$0xff] %v3053_v20 }
 0x43e   : > { %4715 = shalt.err (!%p4712_p9)
}
 0x43f   : > { %s4716_s29 = scalar_lea.hbm %s6170_s4, 4096  ;;  %s4720_s16 = scalar_lea.hbm %s6230_s8, 8192 }
 0x440   : > { %p4717_p0 = scmp.ne.s32.totalorder %s6170_s4, %s4716_s29  ;;  %p4721_p2 = scmp.lt.s32.totalorder %s6170_s4, %s6230_s8 }
 0x441   : > { %p4722_p3 = scmp.lt.s32.totalorder %s4720_s16, %s4716_s29 }
 0x442   : > { %p4718_p8 = pnand %p4717_p0, %p4961_p13 }
 0x443   : > { %p4723_p4 = por %p4722_p3, %p4721_p2 }
 0x444   : > { %p4719_p5 = pneg %p4718_p8 }
 0x446   : > { %p4724_p11 = pnand %p4723_p4, %p4719_p5 }
 0x448   : > { %4727 = shalt.err (!%p4724_p11)
}
 0x449   : > { %s4809_s13 = smov 128   ;;  %s4810_s2 = smov 8  }
 0x44a   : > { %4371 = dma.vmem_to_hbm [thread:$0]  (%p4961_p13), %s6172_s20, 4096, %s6170_s4, %s3089_s25, %s4809_s13, %s4809_s13, %s4810_s2  }
 0x44b PF: > { %s6284_s24 = sld [smem:[#allocation17_spill]] }
 0x44c   : > { %s6286_s21 = sld [smem:[#allocation19_spill]] }
 0x451   : > { %s3120_s26 = sand.u32 1, %s6284_s24  }
 0x452   : > { %p6287_p10 = scmp.ge.s32.totalorder %s6286_s21, 2  ;;  %s3121_s14 = scalar_lea.sflag [#allocation4], %s3120_s26 }
 0x454   : > { %p4391_p7 = pnand %p6287_p10, %p4901_p6 }
 0x456   : > { %p4392_p1 = pneg %p4391_p7 }
 0x458   : > { %4769 = dma.done.wait (%p4392_p1), %s3121_s14, 4096  }
 0x459   : > { %4771 = vsyncadd (%p4392_p1), %s3121_s14, 4294963200  ;;  %s28_s10 = sadd.s32 1, %s6286_s21   ;;  %s6288_s23 = sld [smem:[#allocation18_spill]] }
 0x45a   : > { %p25_p12 = scmp.ge.s32.totalorder %s28_s10, 4   ;;  %s6289_s29 = sld [smem:[#allocation22_spill]] }
 0x45b   : > { %s6290_s12 = sld [smem:[#allocation21_spill]]  ;;  %s6291_s27 = smov %s4778_s28 }
 0x45c   : > { %s6293_s30 = smov %s4790_s9 }
 0x45d   :  { %27 = sbr.rel (!%p25_p12) target bundleno = 14 (0xe), region = 123 }
 0x45f   : > { %s6292_s28 = smov %s6288_s23 }
 0x461   : > { %s6294_s9 = smov %s6290_s12 }
 0x462   :  { %3126 = vsyncpa [#allocation3], 1 }
 0x463   :  { %3128 = vsyncpa [#allocation3 + $0x1], 1 }
 0x464   :  { %3129 = vsyncpa [#allocation6], 1 }
 0x465   :  { %3131 = vsyncpa [#allocation6 + $0x1], 1 }
 0x466   :  { %3132 = vsyncpa [#allocation9], 1 }
 0x467   :  { %3133 = vsyncpa [#allocation4], 1 }
 0x468   :  { %3135 = vsyncpa [#allocation4 + $0x1], 1 }

// kernel: tpu_custom_call.1
= control target key start
LH: loop header
LB: loop body
LE: loop exit
PB: predicated region body
PF: predicated region fallthrough
CT: control target
= control target key end

     0   :  { %s6222_s0 = inlined_call_operand.hbm [shape: bf16[2,18,16,128], index: 0, kind: input, shape index: {}]   ;;  %s6223_s1 = inlined_call_operand.hbm [shape: f32[2,16,16,128], index: 1, kind: input, shape index: {}]   ;;  %s6224_s2 = inlined_call_operand.hbm [shape: bf16[128,128], index: 2, kind: input, shape index: {}]   ;;  %s6225_s3 = inlined_call_operand.vmem [shape: f32[1,128], index: 3, kind: input, shape index: {}]   ;;  %s6226_s4 = inlined_call_operand.hbm [shape: bf16[1152,128], index: 4, kind: input, shape index: {}]   ;;  %s6227_s5 = inlined_call_operand.vmem [shape: f32[1,128], index: 5, kind: input, shape index: {}]   ;;  %s6228_s6 = inlined_call_operand.hbm [shape: bf16[128,128], index: 6, kind: input, shape index: {}]   ;;  %s6229_s7 = inlined_call_operand.vmem [shape: f32[1,128], index: 7, kind: input, shape index: {}]   ;;  %s6230_s8 = inlined_call_operand.hbm [shape: f32[2,16,16,128], index: 8, kind: output, shape index: {}]  }
   0x1   :  { %6245 = sst [smem:[#allocation27_spill]] %s6222_s0 }
   0x2   :  { %6246 = sst [smem:[#allocation28_spill]] %s6224_s2 }
   0x3   :  { %6247 = sst [smem:[#allocation29_spill]] %s6226_s4 }
   0x4   :  { %6248 = sst [smem:[#allocation30_spill]] %s6228_s6 }
   0x5   :  { %13 = vsyncpa [#allocation3], 0 }
   0x6   :  { %15 = vsyncpa [#allocation3 + $0x1], 0 }
   0x7   :  { %16 = vsyncpa [#allocation6], 0 }
   0x8   :  { %18 = vsyncpa [#allocation6 + $0x1], 0 }
   0x9   :  { %19 = vsyncpa [#allocation9], 0 }
   0xa   :  { %20 = vsyncpa [#allocation4], 0 }
   0xb   :  { %22 = vsyncpa [#allocation4 + $0x1], 0  ;;  %s4856_s27 = smov 0   ;;  %s4858_s28 = smov 0  }
   0xc   :  { %s4860_s29 = smov 0   ;;  %s4862_s30 = smov 0  }
   0xd   :  { %s4864_s9 = smov 0   ;;  %s4866_s10 = smov 0  }
   0xe LB: > { %6249 = sst [smem:[#allocation17_spill]] %s4774_s27  ;;  %s4887_s11 = sadd.s32 4294967295, %s4794_s10   ;;  %s4794_s10 = sphi %s4866_s10, %s28_s10   ;;  %s4790_s9 = sphi %s4864_s9, %s6294_s9   ;;  %s4786_s30 = sphi %s4862_s30, %s6293_s30   ;;  %s4782_s29 = sphi %s4860_s29, %s6289_s29   ;;  %s4778_s28 = sphi %s4858_s28, %s6292_s28   ;;  %s4774_s27 = sphi %s4856_s27, %s6291_s27  }
   0xf   : > { %6250 = sst [smem:[#allocation18_spill]] %s4782_s29  ;;  %s3246_s12 = sadd.s32 4294967294, %s4794_s10  }
  0x10   : > { %6251 = sst [smem:[#allocation19_spill]] %s4794_s10  ;;  %p60_p0 = scmp.ne.s32.totalorder %s4778_s28, %s4774_s27 }
  0x11   : > { %p6231_p1 = scmp.eq.s32.totalorder %s4887_s11, 0  ;;  %p240_p2 = scmp.eq.s32.totalorder %s4887_s11, 1 }
  0x12   : > { %p246_p3 = scmp.eq.s32.totalorder %s3246_s12, 1  ;;  %p3247_p5 = scmp.ge.s32.totalorder %s4794_s10, 1 }
  0x13   : > { %p4896_p4 = por %p6231_p1, %p60_p0  ;;  %p253_p7 = scmp.lt.s32.totalorder %s4794_s10, 3 }
  0x14   : > { %p4901_p6 = por %p246_p3, %p60_p0  ;;  %s4796_s16 = smov [#allocation7]  }
  0x15   : > { %p4906_p8 = pnand %p3247_p5, %p253_p7  ;;  %s265_s17 = sshll.u32 %s4796_s16, 4  ;;  %s266_s17 = int_to_ptr.vmem [resolvable:$true] %s265_s17 }
  0x16   : > { %s6253_s14 = scalar_select %p4901_p6, 1, 0 }
  0x17   : > { %p4373_p9 = pneg %p4906_p8  ;;  %s4797_s19 = smov [#allocation8]  }
  0x18   : > { %6254 = sst [smem:[#allocation20_spill]] %s6253_s14  ;;  %s281_s20 = sshll.u32 %s4797_s19, 4  ;;  %s282_s20 = int_to_ptr.vmem [resolvable:$true] %s281_s20 }
  0x19   : > { %p4915_p11 = pnand %p4373_p9, %p6231_p1  ;;  %s4798_s21 = smov [#allocation10]  }
  0x1a   : > { %s297_s22 = sshll.u32 %s4798_s21, 4  ;;  %s4579_s23 = scalar_lea.vmem %s266_s17, 1024  ;;  %s298_s22 = int_to_ptr.vmem [resolvable:$true] %s297_s22 }
  0x1b   : > { %p4570_p12 = pneg %p4915_p11  ;;  %p4580_p13 = scmp.ne.s32.totalorder %s266_s17, %s4579_s23 }
  0x1c   : > { %p4587_p5 = scmp.lt.s32.totalorder %s266_s17, %s266_s17  ;;  %p4588_p7 = scmp.lt.s32.totalorder %s4579_s23, %s4579_s23 }
  0x1d   : > { %p4582_p0 = pnand %p4580_p13, %p4570_p12 }
  0x1e   : > { %p4589_p9 = por %p4588_p7, %p4587_p5 }
  0x1f   : > { %p4583_p3 = pneg %p4582_p0 }
  0x21   : > { %p4590_p10 = pnand %p4589_p9, %p4583_p3 }
  0x23   : > { %4593 = shalt.err (!%p4590_p10)
}
  0x24   : > { %s6232_s24 = smov 64   ;;  %s6233_s25 = smov 4  }
  0x25   : > { %s6257_s2 = sld [smem:[#allocation28_spill]]  ;;  %s4605_s16 = scalar_lea.vmem %s282_s20, 9216 }
  0x26   : > { %p4606_p13 = scmp.ne.s32.totalorder %s282_s20, %s4605_s16  ;;  %p4613_p3 = scmp.lt.s32.totalorder %s282_s20, %s282_s20 }
  0x27   : > { %p4614_p10 = scmp.lt.s32.totalorder %s4605_s16, %s4605_s16 }
  0x28   : > { %p4608_p0 = pnand %p4606_p13, %p4570_p12 }
  0x29   : > { %p4615_p7 = por %p4614_p10, %p4613_p3 }
  0x2a   : > { %p4609_p5 = pneg %p4608_p0 }
  0x2b   : > { %4376 = dma.hbm_to_vmem [thread:$0]  (!%p4915_p11), %s6257_s2, 1024, %s266_s17, [#allocation6], %s6232_s24, %s6232_s24, %s6233_s25  }
  0x2c   : > { %p4616_p9 = pnand %p4615_p7, %p4609_p5 }
  0x2e   : > { %4619 = shalt.err (!%p4616_p9)
}
  0x2f   : > { %s6258_s4 = sld [smem:[#allocation29_spill]]  ;;  %s4631_s17 = scalar_lea.vmem %s298_s22, 1024 }
  0x30   : > { %p4632_p1 = scmp.ne.s32.totalorder %s298_s22, %s4631_s17  ;;  %p4639_p3 = scmp.lt.s32.totalorder %s298_s22, %s298_s22 }
  0x31   : > { %p4640_p5 = scmp.lt.s32.totalorder %s4631_s17, %s4631_s17 }
  0x32   : > { %p4634_p13 = pnand %p4632_p1, %p4570_p12 }
  0x33   : > { %p4641_p10 = por %p4640_p5, %p4639_p3 }
  0x34   : > { %p4635_p0 = pneg %p4634_p13 }
  0x35   : > { %4379 = dma.hbm_to_vmem [thread:$0]  (!%p4915_p11), %s6258_s4, 9216, %s282_s20, [#allocation9], %s6232_s24, %s6232_s24, %s6233_s25  }
  0x36   : > { %p4642_p7 = pnand %p4641_p10, %p4635_p0 }
  0x38   : > { %4645 = shalt.err (!%p4642_p7)
}
  0x39   : > { %s6259_s6 = sld [smem:[#allocation30_spill]]  ;;  %s47_s20 = sadd.s32 1, %s4782_s29 }
  0x3a   : > { %s40_s18 = sadd.s32 1, %s4790_s9  ;;  %p54_p1 = scmp.ne.s32.totalorder %s4782_s29, %s4778_s28 }
  0x3b   : > { %p42_p12 = scmp.ge.s32.totalorder %s40_s18, 2  ;;  %p55_p9 = scmp.eq.s32.totalorder %s4794_s10, 0 }
  0x3c   : > { %p4961_p13 = por %p240_p2, %p54_p1  ;;  %p4397_p0 = scmp.lt.s32.totalorder %s4794_s10, 2 }
  0x3d   : > { %s6296_s18 = smov (%p42_p12, %s40_s18), 0  ;;  %p56_p3 = por %p55_p9, %p54_p1 }
  0x3e   : > { %6261 = sst [smem:[#allocation21_spill]] %s6296_s18  ;;  %s4969_s16 = sand.u32 1, %s4782_s29  }
  0x3f   : > { %4382 = dma.hbm_to_vmem [thread:$0]  (!%p4915_p11), %s6259_s6, 1024, %s298_s22, [#allocation9], %s6232_s24, %s6232_s24, %s6233_s25  }
  0x40   : > { %s44_s22 = ssub.s32 %s4790_s9, %s6296_s18  ;;  %s4352_s19 = smul.u32 144, %s4969_s16 }
  0x41   : > { %p45_p11 = scmp.eq.s32.totalorder %s44_s22, 0  ;;  %s4353_s21 = smul.u32 2304, %s4790_s9 }
  0x42   : > { %p4975_p5 = pnand %p4397_p0, %p56_p3  ;;  %s6264_s0 = sld [smem:[#allocation27_spill]] }
  0x43   : > { %s4980_s23 = scalar_select %p45_p11, %s4782_s29, %s47_s20  }
  0x44   : > { %s318_s2 = scalar_lea.vmem [#allocation2], %s4352_s19  ;;  %s335_s6 = sand.u32 1, %s4794_s10  }
  0x45   : > { %6263 = sst [smem:[#allocation22_spill]] %s4980_s23  ;;  %s325_s4 = sshll.u32 %s318_s2, 4  ;;  %s326_s4 = int_to_ptr.vmem [resolvable:$true] %s325_s4 }
  0x46   : > { %s315_s18 = scalar_lea.sflag [#allocation3], %s4969_s16  ;;  %p4648_p2 = pneg %p4975_p5 }
  0x47   : > { %s4659_s22 = scalar_lea.vmem %s326_s4, 2304  ;;  %s4801_s14 = smov [#allocation2]  }
  0x48   : > { %s324_s25 = scalar_lea.hbm %s6264_s0, %s4353_s21  ;;  %p4660_p10 = scmp.ne.s32.totalorder %s326_s4, %s4659_s22 }
  0x49   : > { %s4664_s20 = sshll.u32 %s4801_s14, 4  ;;  %s4665_s20 = int_to_ptr.vmem [resolvable:$false] %s4664_s20 }
  0x4a   : > { %p4662_p7 = pnand %p4660_p10, %p4648_p2  ;;  %s4666_s23 = scalar_lea.vmem %s4665_s20, 4608 }
  0x4b   : > { %p4667_p12 = scmp.lt.s32.totalorder %s326_s4, %s4665_s20  ;;  %p4668_p9 = scmp.lt.s32.totalorder %s4666_s23, %s4659_s22 }
  0x4c   : > { %p4663_p1 = pneg %p4662_p7 }
  0x4d   : > { %p4669_p0 = por %p4668_p9, %p4667_p12 }
  0x4f   : > { %p4670_p3 = pnand %p4669_p0, %p4663_p1 }
  0x51   : > { %4673 = shalt.err (!%p4670_p3)
}
  0x52   : > { %s6265_s2 = smov 4   ;;  %s6266_s24 = smov 64  }
  0x53   : > { %4386 = dma.hbm_to_vmem [thread:$0]  (!%p4975_p5), %s324_s25, 2304, %s326_s4, %s315_s18, %s6266_s24, %s6266_s24, %s6265_s2  }
  0x54   : > { %s3253_s19 = sshll.u32 %s4969_s16, 8  ;;  %s3664_s21 = sshll.u32 %s4790_s9, 12 }
  0x55   : > { %s348_s0 = scalar_lea.hbm %s6223_s1, %s3664_s21  ;;  %s339_s20 = scalar_lea.vmem [#allocation5], %s3253_s19 }
  0x56   : > { %s349_s23 = sshll.u32 %s339_s20, 4  ;;  %s336_s22 = scalar_lea.sflag [#allocation6], %s335_s6  ;;  %s350_s23 = int_to_ptr.vmem [resolvable:$true] %s349_s23 }
  0x57   : > { %s4687_s29 = scalar_lea.vmem %s350_s23, 4096  ;;  %s4802_s10 = smov [#allocation5]  }
  0x58   : > { %p4688_p11 = scmp.ne.s32.totalorder %s350_s23, %s4687_s29  ;;  %s4692_s27 = sshll.u32 %s4802_s10, 4  ;;  %s4693_s27 = int_to_ptr.vmem [resolvable:$false] %s4692_s27 }
  0x59   : > { %s4694_s4 = scalar_lea.vmem %s4693_s27, 8192  ;;  %p4695_p1 = scmp.lt.s32.totalorder %s350_s23, %s4693_s27 }
  0x5a   : > { %p4690_p10 = pnand %p4688_p11, %p4648_p2  ;;  %p4696_p12 = scmp.lt.s32.totalorder %s4694_s4, %s4687_s29 }
  0x5c   : > { %p4691_p7 = pneg %p4690_p10  ;;  %p4697_p9 = por %p4696_p12, %p4695_p1 }
  0x5e   : > { %p4698_p0 = pnand %p4697_p9, %p4691_p7 }
  0x60   : > { %4701 = shalt.err (!%p4698_p0)
}
  0x61   : > { %s4803_s25 = smov 128   ;;  %s4804_s18 = smov 8  }
  0x62   : > { %4389 = dma.hbm_to_vmem [thread:$0]  (!%p4975_p5), %s348_s0, 4096, %s350_s23, %s336_s22, %s4803_s25, %s4803_s25, %s4804_s18  }
  0x63   : > { %361 = sbr.rel (%p4906_p8) target bundleno = 1099 (0x44b), region = 52 }
  0x68   : > { %s5010_s6 = sand.u32 1, %s4778_s28  }
  0x69   : > { %s4354_s10 = smul.u32 144, %s5010_s6  ;;  %s364_s27 = scalar_lea.sflag [#allocation3], %s5010_s6 }
  0x6b   : > { %s5014_s29 = scalar_lea.vmem [#allocation2], %s4354_s10 }
  0x6c   : > { %4753 = dma.done.wait (%p4896_p4), %s364_s27, 2304  }
  0x6d   : > { %4755 = vsyncadd (%p4896_p4), %s364_s27, 4294964992  ;;  %s372_s0 = sand.u32 1, %s4887_s11   ;;  %s3257_s15 = sshll.u32 %s5010_s6, 8 }
  0x6e   : > { %s373_s16 = scalar_lea.sflag [#allocation6], %s372_s0  ;;  %s5024_s17 = scalar_lea.vmem [#allocation5], %s3257_s15 }
  0x6f   : > { %4757 = dma.done.wait (%p4896_p4), %s373_s16, 4096  }
  0x70   : > { %4759 = vsyncadd (%p4896_p4), %s373_s16, 4294963200  ;;  %p6267_p8 = scmp.eq.s32.totalorder %s4887_s11, 0 }
  0x72   : > { %4761 = dma.done.wait (%p6267_p8), [#allocation6], 1024   ;;  %p6268_p5 = pmov %p6267_p8 }
  0x74   : > { %4763 = vsyncadd (%p6268_p5), [#allocation6], 4294966272  ;;  %p6269_p2 = pmov %p6268_p5 }
  0x76   : > { %4765 = dma.done.wait (%p6269_p2), [#allocation9], 10240   ;;  %p6270_p3 = pmov %p6269_p2 }
  0x77   : > { %v4462_v0 = vld [vmem:[#allocation7 + $0x38] sm:$0xff]   ;;  %v4463_v1 = vld [vmem:[#allocation7 + $0x30] sm:$0xff]   ;;  %v4464_v2 = vld [vmem:[#allocation7 + $0x28] sm:$0xff]   ;;  %v1037_v55 = vlaneseq  ;;  %v4805_v58 = vmov 0.0   ;;  %v6240_v61 = vmov 0.0|0.0   ;;  %vm4807_vm1 = vmmov 1  }
  0x78   : > { %4767 = vsyncadd (%p6270_p3), [#allocation9], 4294957056  ;;  %4188 = vmatprep.subr.bf16.mxu0 %v4462_v0  ;;  %v4465_v3 = vld [vmem:[#allocation7 + $0x20] sm:$0xff]   ;;  %v4466_v5 = vld [vmem:[#allocation7 + $0x18] sm:$0xff]   ;;  %v1060_v59 = vrot.slane %v4805_v58, 7  ;;  %1939 = vmatprep.mubr.bf16.mxu1 %v6240_v61  ;;  %s6076_s26 = scalar_lea.vmem [#allocation11], %s3257_s15 }
  0x79   : > { %4189 = vmatpush3.bf16.msra.mxu0 %v4462_v0  ;;  %v4470_v4 = vld [vmem:[%s5014_s29] sm:$0xff]   ;;  %v4468_v7 = vld [vmem:[#allocation7 + $0x8] sm:$0xff]   ;;  %v4488_v9 = vld [vmem:[#allocation8 + $0xf8] sm:$0xff]   ;;  %v5056_v57 = vshrl.u32 %v1037_v55, 7  ;;  %s3665_s14 = sshll.u32 %s4786_s30, 12  ;;  %s3105_s20 = sshll.u32 %s6076_s26, 4  ;;  %s6172_s20 = int_to_ptr.vmem [resolvable:$true] %s3105_s20 }
  0x7a   : > { %4190 = vmatprep.subr.bf16.mxu0 %v4463_v1  ;;  %4204 = vmatprep.mubr.bf16.mxu0 %v4470_v4  ;;  %v4467_v6 = vld [vmem:[#allocation7 + $0x10] sm:$0xff]   ;;  %v4469_v8 = vld [vmem:[#allocation7] sm:$0xff]   ;;  %v4471_v10 = vld [vmem:[%s5014_s29 + $0x8] sm:$0xff]   ;;  %v5059_v60 = vpack.c.bf16 %v1060_v59, %v1060_v59  ;;  %s6170_s4 = scalar_lea.hbm %s6230_s8, %s3665_s14  ;;  %s3089_s25 = scalar_lea.sflag [#allocation4], %s5010_s6 }
  0x7b   : > { %v4472_v11 = vld [vmem:[%s5014_s29 + $0x10] sm:$0xff]   ;;  %v4489_v12 = vld [vmem:[#allocation8 + $0xb8] sm:$0xff]   ;;  %v4492_v15 = vld [vmem:[#allocation8 + $0xe8] sm:$0xff]   ;;  %vm1058_vm0 = vcmp.gt.s32.totalorder %v5056_v57, 0  ;;  %vm1096_vm5 = vcmp.lt.s32.totalorder %v5056_v57, 1  ;;  %vm1229_vm6 = vcmp.lt.s32.totalorder %v5056_v57, 7 }
  0x7c   : > { %v4490_v13 = vld [vmem:[#allocation8 + $0xf0] sm:$0xff]   ;;  %v4496_v16 = vld [vmem:[#allocation8 + $0x78] sm:$0xff]   ;;  %v4493_v22 = vld [vmem:[#allocation8 + $0xa8] sm:$0xff]   ;;  %6271 = vst [vmem:[#allocation23_spill] sm:$0xff] %v5059_v60  ;;  %s4702_s18 = scalar_lea.vmem %s6172_s20, 4096  ;;  %s4808_s30 = smov [#allocation11]  }
  0x7d   : > { %4191 = vmatpush3.bf16.msra.mxu0 %v4463_v1  ;;  %v4491_v14 = vld [vmem:[#allocation8 + $0xb0] sm:$0xff]   ;;  %v4497_v17 = vld [vmem:[#allocation8 + $0x38] sm:$0xff]   ;;  %3692 = vmatprep.subr.bf16.mxu1 %v4496_v16  ;;  %v4494_v23 = vld [vmem:[#allocation8 + $0xe0] sm:$0xff]   ;;  %v1039_v1 = vadd.s32 8, %v5056_v57  ;;  %p4703_p4 = scmp.ne.s32.totalorder %s6172_s20, %s4702_s18  ;;  %s4706_s10 = sshll.u32 %s4808_s30, 4  ;;  %s4707_s10 = int_to_ptr.vmem [resolvable:$false] %s4706_s10 }
  0x7e   : > { %4192 = vmatprep.subr.bf16.mxu0 %v4464_v2  ;;  %v4473_v18 = vld [vmem:[%s5014_s29 + $0x18] sm:$0xff]   ;;  %v4498_v19 = vld [vmem:[#allocation8 + $0x70] sm:$0xff]   ;;  %3693 = vmatpush3.bf16.msra.mxu1 %v4497_v17  ;;  %v4504_v26 = vld [vmem:[#allocation8 + $0x60] sm:$0xff]   ;;  %s4708_s27 = scalar_lea.vmem %s4707_s10, 8192  ;;  %p4709_p7 = scmp.lt.s32.totalorder %s6172_s20, %s4707_s10 }
  0x7f   : > { %v4474_v20 = vld [vmem:[%s5014_s29 + $0x20] sm:$0xff]   ;;  %3694 = vmatprep.subr.bf16.mxu1 %v4498_v19  ;;  %v4502_v24 = vld [vmem:[#allocation8 + $0x68] sm:$0xff]   ;;  %v4500_v29 = vld [vmem:[#allocation8 + $0xd8] sm:$0xff]   ;;  %vm1192_vm3 = vcmp.lt.s32.totalorder %v1039_v1, 15  ;;  %p4704_p11 = pnand %p4703_p4, %p4961_p13  ;;  %p4710_p1 = scmp.lt.s32.totalorder %s4708_s27, %s4702_s18 }
  0x80   : > { %v4499_v21 = vld [vmem:[#allocation8 + $0x30] sm:$0xff]   ;;  %v4503_v25 = vld [vmem:[#allocation8 + $0x28] sm:$0xff]   ;;  %v4495_v27 = vld [vmem:[#allocation8 + $0xa0] sm:$0xff]  }
  0x81   : > { %4193 = vmatpush3.bf16.msra.mxu0 %v4464_v2  ;;  %v4475_v28 = vld [vmem:[%s5014_s29 + $0x28] sm:$0xff]   ;;  %v4476_v30 = vld [vmem:[%s5014_s29 + $0x30] sm:$0xff]   ;;  %v4477_v39 = vld [vmem:[%s5014_s29 + $0x38] sm:$0xff]   ;;  %p4705_p10 = pneg %p4704_p11  ;;  %p4711_p12 = por %p4710_p1, %p4709_p7 }
  0x82   : > { %4194 = vmatprep.subr.bf16.mxu0 %v4465_v3  ;;  %3695 = vmatpush3.bf16.msra.mxu1 %v4499_v21  ;;  %v4505_v31 = vld [vmem:[#allocation8 + $0x20] sm:$0xff]   ;;  %v4507_v32 = vld [vmem:[#allocation8 + $0x58] sm:$0xff]   ;;  %v4506_v34 = vld [vmem:[#allocation8 + $0xd0] sm:$0xff]  }
  0x83   : > { %3696 = vmatprep.subr.bf16.mxu1 %v4502_v24  ;;  %v4501_v33 = vld [vmem:[#allocation8 + $0x98] sm:$0xff]   ;;  %v4508_v35 = vld [vmem:[#allocation8 + $0x90] sm:$0xff]   ;;  %v4512_v40 = vld [vmem:[#allocation8 + $0x48] sm:$0xff]   ;;  %p4712_p9 = pnand %p4711_p12, %p4705_p10 }
  0x84   : > { %v4509_v36 = vld [vmem:[#allocation8 + $0x18] sm:$0xff]   ;;  %v4510_v37 = vld [vmem:[#allocation8 + $0x50] sm:$0xff]   ;;  %v4513_v41 = vld [vmem:[#allocation8 + $0xc8] sm:$0xff]  }
  0x85   : > { %4195 = vmatpush3.bf16.msra.mxu0 %v4465_v3  ;;  %v4511_v38 = vld [vmem:[#allocation8 + $0x10] sm:$0xff]   ;;  %v4515_v43 = vld [vmem:[#allocation8 + $0x88] sm:$0xff]   ;;  %v4516_v54 = vld [vmem:[#allocation8 + $0x40] sm:$0xff]  }
  0x86   : > { %4196 = vmatprep.subr.bf16.mxu0 %v4466_v5  ;;  %3697 = vmatpush3.bf16.msra.mxu1 %v4503_v25  ;;  %v4478_v42 = vld [vmem:[%s5014_s29 + $0x40] sm:$0xff]   ;;  %v4514_v44 = vld [vmem:[#allocation8 + $0x8] sm:$0xff]   ;;  %v4480_v46 = vld [vmem:[%s5014_s29 + $0x50] sm:$0xff]  }
  0x87   : > { %3698 = vmatprep.subr.bf16.mxu1 %v4504_v26  ;;  %v4479_v45 = vld [vmem:[%s5014_s29 + $0x48] sm:$0xff]   ;;  %v4481_v47 = vld [vmem:[%s5014_s29 + $0x58] sm:$0xff]   ;;  %v4482_v48 = vld [vmem:[%s5014_s29 + $0x60] sm:$0xff]  }
  0x88   : > { %v4483_v49 = vld [vmem:[%s5014_s29 + $0x68] sm:$0xff]   ;;  %v4484_v50 = vld [vmem:[%s5014_s29 + $0x70] sm:$0xff]   ;;  %v4485_v51 = vld [vmem:[%s5014_s29 + $0x78] sm:$0xff]  }
  0x89   : > { %4197 = vmatpush3.bf16.msra.mxu0 %v4466_v5  ;;  %v4486_v52 = vld [vmem:[%s5014_s29 + $0x80] sm:$0xff]   ;;  %v4487_v53 = vld [vmem:[%s5014_s29 + $0x88] sm:$0xff]   ;;  %vm5062_vm2 = vmpackc.low %vm4807_vm1, %vm1058_vm0 }
  0x8a   : > { %4198 = vmatprep.subr.bf16.mxu0 %v4467_v6  ;;  %3699 = vmatpush3.bf16.msra.mxu1 %v4505_v31  ;;  %v4517_v56 = vld [vmem:[#allocation8] sm:$0xff]   ;;  %vm5070_vm4 = vmpackc.low %vm1192_vm3, %vm4807_vm1  ;;  %v4520_v3 = vld [vmem:[#allocation8 + $0x1f8] sm:$0xff]  }
  0x8b   : > { %3700 = vmatprep.subr.bf16.mxu1 %v4507_v32  ;;  %v4518_v63 = vld [vmem:[#allocation8 + $0xc0] sm:$0xff]   ;;  %v4524_v4 = vld [vmem:[#allocation8 + $0x178] sm:$0xff]   ;;  %v4548_v21 = vld [vmem:[#allocation8 + $0x108] sm:$0xff]  }
  0x8c   : > { %v4519_v0 = vld [vmem:[#allocation8 + $0x80] sm:$0xff]   ;;  %v4526_v5 = vld [vmem:[#allocation8 + $0x138] sm:$0xff]  }
  0x8d   : > { %4199 = vmatpush3.bf16.msra.mxu0 %v4467_v6  ;;  %v4528_v6 = vld [vmem:[#allocation8 + $0x170] sm:$0xff]   ;;  %v5077_v16 = vld [vmem:[%s6225_s3] ss:$0 sm:$0xff] }
  0x8e   : > { %4200 = vmatprep.subr.bf16.mxu0 %v4468_v7  ;;  %3701 = vmatpush3.bf16.msra.mxu1 %v4509_v36  ;;  %v4551_v26 = vld [vmem:[#allocation8 + $0x100] sm:$0xff]  }
  0x8f   : > { %3702 = vmatprep.subr.bf16.mxu1 %v4510_v37  ;;  %v4555_v57 = vld [vmem:[#allocation8 + $0x220] sm:$0xff]  }
  0x91   : > { %4201 = vmatpush3.bf16.msra.mxu0 %v4468_v7  ;;  %v4530_v7 = vld [vmem:[#allocation8 + $0x130] sm:$0xff]  }
  0x92   : > { %4202 = vmatprep.subr.bf16.mxu0 %v4469_v8  ;;  %3703 = vmatpush3.bf16.msra.mxu1 %v4511_v38 }
  0x93   : > { %3704 = vmatprep.subr.bf16.mxu1 %v4512_v40 }
  0x95   : > { %4203 = vmatpush3.bf16.msra.mxu0 %v4469_v8  ;;  %v4532_v8 = vld [vmem:[#allocation8 + $0x168] sm:$0xff]  }
  0x96   : > { %3804 = vmatprep.subr.bf16.mxu0 %v4488_v9  ;;  %3705 = vmatpush3.bf16.msra.mxu1 %v4514_v44  ;;  %v4534_v9 = vld [vmem:[#allocation8 + $0x128] sm:$0xff]   ;;  %v4522_v44 = vld [vmem:[#allocation8 + $0x1f0] sm:$0xff]  }
  0x97   : > { %3706 = vmatprep.subr.bf16.mxu1 %v4516_v54 }
  0x98   : > { %4205 = vmatmul.mubr.bf16.vlgmr.msra.gmra.mxu0 %v4471_v10  ;;  %v4536_v10 = vld [vmem:[#allocation8 + $0x160] sm:$0xff]  }
  0x99   : > { %4208 = vmatprep.mubr.bf16.mxu0 %v4472_v11  ;;  %3805 = vmatpush3.bf16.msra.mxu0 %v4489_v12  ;;  %v4538_v11 = vld [vmem:[#allocation8 + $0x120] sm:$0xff]   ;;  %v4540_v12 = vld [vmem:[#allocation8 + $0x158] sm:$0xff]  }
  0x9a   : > { %3806 = vmatprep.subr.bf16.mxu0 %v4490_v13  ;;  %3707 = vmatpush3.bf16.msra.mxu1 %v4517_v56  ;;  %v4542_v13 = vld [vmem:[#allocation8 + $0x118] sm:$0xff]  }
  0x9b   : > { %3916 = vmatprep.subr.bf16.mxu1 %v4524_v4  ;;  %v5112_v56 = vld [vmem:[#allocation8 + $0x238] sm:$0xff]  }
  0x9d   : > { %3807 = vmatpush3.bf16.msra.mxu0 %v4491_v14  ;;  %3364 = vmatmul.mubr.msk.bf16.vlgmr.msra.gmra.mxu1 %vm5062_vm2, %v5059_v60  ;;  %v4544_v14 = vld [vmem:[#allocation8 + $0x150] sm:$0xff]  }
  0x9e   : > { %3808 = vmatprep.subr.bf16.mxu0 %v4492_v15  ;;  %3917 = vmatpush3.bf16.msra.mxu1 %v4526_v5  ;;  %v4545_v15 = vld [vmem:[#allocation8 + $0x110] sm:$0xff]   ;;  %v4527_v5 = vld [vmem:[#allocation8 + $0x1a8] sm:$0xff]  }
  0x9f   : > { %3918 = vmatprep.subr.bf16.mxu1 %v4528_v6 }
  0xa0   : > { %4209 = vmatmul.mubr.bf16.gmra.mxu0 %v4473_v18 }
  0xa1   : > { %4212 = vmatprep.mubr.bf16.mxu0 %v4474_v20  ;;  %3809 = vmatpush3.bf16.msra.mxu0 %v4493_v22  ;;  %v4546_v20 = vld [vmem:[#allocation8 + $0x148] sm:$0xff]  }
  0xa2   : > { %3810 = vmatprep.subr.bf16.mxu0 %v4494_v23  ;;  %3919 = vmatpush3.bf16.msra.mxu1 %v4530_v7  ;;  %v4550_v23 = vld [vmem:[#allocation8 + $0x140] sm:$0xff]  }
  0xa3   : > { %3920 = vmatprep.subr.bf16.mxu1 %v4532_v8  ;;  %v4529_v8 = vld [vmem:[#allocation8 + $0x1e0] sm:$0xff]  }
  0xa5   : > { %3811 = vmatpush3.bf16.msra.mxu0 %v4495_v27 }
  0xa6   : > { %3812 = vmatprep.subr.bf16.mxu0 %v4500_v29  ;;  %3921 = vmatpush3.bf16.msra.mxu1 %v4534_v9  ;;  %v1193_v29 = vrot.slane %v4805_v58, 1 }
  0xa7   : > { %3922 = vmatprep.subr.bf16.mxu1 %v4536_v10 }
  0xa8   : > { %4213 = vmatmul.mubr.bf16.gmra.mxu0 %v4475_v28 }
  0xa9   : > { %4216 = vmatprep.mubr.bf16.mxu0 %v4476_v30  ;;  %3813 = vmatpush3.bf16.msra.mxu0 %v4501_v33 }
  0xaa   : > { %3814 = vmatprep.subr.bf16.mxu0 %v4506_v34  ;;  %3923 = vmatpush3.bf16.msra.mxu1 %v4538_v11 }
  0xab   : > { %3924 = vmatprep.subr.bf16.mxu1 %v4540_v12 }
  0xad   : > { %3815 = vmatpush3.bf16.msra.mxu0 %v4508_v35  ;;  %v5088_v35 = vpack.c.bf16 %v1193_v29, %v1193_v29 }
  0xae   : > { %3816 = vmatprep.subr.bf16.mxu0 %v4513_v41  ;;  %3925 = vmatpush3.bf16.msra.mxu1 %v4542_v13  ;;  %v4521_v41 = vld [vmem:[#allocation8 + $0x1b8] sm:$0xff]  }
  0xaf   : > { %3926 = vmatprep.subr.bf16.mxu1 %v4544_v14  ;;  %6276 = vst [vmem:[#allocation24_spill] sm:$0xff] %v5088_v35 }
  0xb0   : > { %4217 = vmatmul.mubr.bf16.gmra.mxu0 %v4477_v39 }
  0xb1   : > { %4220 = vmatprep.mubr.bf16.mxu0 %v4478_v42  ;;  %3817 = vmatpush3.bf16.msra.mxu0 %v4515_v43 }
  0xb2   : > { %3818 = vmatprep.subr.bf16.mxu0 %v4518_v63  ;;  %3927 = vmatpush3.bf16.msra.mxu1 %v4545_v15 }
  0xb3   : > { %3928 = vmatprep.subr.bf16.mxu1 %v4546_v20  ;;  %v4531_v20 = vld [vmem:[#allocation8 + $0x1a0] sm:$0xff]  }
  0xb5   : > { %3819 = vmatpush3.bf16.msra.mxu0 %v4519_v0 }
  0xb6   : > { %4028 = vmatprep.subr.bf16.mxu0 %v4520_v3  ;;  %3929 = vmatpush3.bf16.msra.mxu1 %v4548_v21 }
  0xb7   : > { %3930 = vmatprep.subr.bf16.mxu1 %v4550_v23 }
  0xb8   : > { %4221 = vmatmul.mubr.bf16.gmra.mxu0 %v4479_v45 }
  0xb9   : > { %4224 = vmatprep.mubr.bf16.mxu0 %v4480_v46 }
  0xba   : > { %3931 = vmatpush3.bf16.msra.mxu1 %v4551_v26 }
  0xbb   : > { %4336 = vmatprep.subr.bf16.mxu1 %v5112_v56 }
  0xc0   : > { %4225 = vmatmul.mubr.bf16.gmra.mxu0 %v4481_v47 }
  0xc1   : > { %4228 = vmatprep.mubr.bf16.mxu0 %v4482_v48 }
  0xc8   : > { %4229 = vmatmul.mubr.bf16.gmra.mxu0 %v4483_v49 }
  0xc9   : > { %4232 = vmatprep.mubr.bf16.mxu0 %v4484_v50  ;;  %v4523_v50 = vld [vmem:[#allocation8 + $0x1b0] sm:$0xff]  }
  0xd0   : > { %4233 = vmatmul.mubr.bf16.gmra.mxu0 %v4485_v51 }
  0xd1   : > { %4236 = vmatprep.mubr.bf16.mxu0 %v4486_v52 }
  0xd8   : > { %4237 = vmatmul.mubr.bf16.gmra.mxu0 %v4487_v53  ;;  %v4525_v53 = vld [vmem:[#allocation8 + $0x1e8] sm:$0xff]  }
 0x158   : > { %v4206_v17 = vpop.f32.mrf.mxu0 }
 0x159   : > { %v691_v18 = vadd.f32 %v4206_v17, %v5077_v16 }
 0x15a   : > { %v682_v19 = vpop.f32.mrf.mxu0 }
 0x15b   : > { %v5080_v24 = vmax.f32 %v691_v18, 0.0 }
 0x15c   : > { %v4207_v22 = vpop.f32.mrf.mxu0 }
 0x15d   : > { %v694_v25 = vadd.f32 %v4207_v22, %v5077_v16  ;;  %v1061_v31 = vrot.slane %v5080_v24, 7  ;;  %v1194_v0 = vrot.slane %v5080_v24, 1 }
 0x15e   : > { %v685_v27 = vpop.f32.mrf.mxu0 }
 0x15f   : > { %v860_v28 = vmax.f32 %v694_v25, 0.0  ;;  %v4533_v25 = vld [vmem:[#allocation8 + $0x1d8] sm:$0xff]  }
 0x160   : > { %v4210_v30 = vpop.f32.mrf.mxu0 }
 0x161   : > { %v1079_v32 = vrot.slane %v860_v28, 7  ;;  %v5086_v33 = vpack.c.bf16 %v860_v28, %v5080_v24  ;;  %v707_v42 = vadd.f32 %v4210_v30, %v5077_v16  ;;  %v1212_v54 = vrot.slane %v860_v28, 1 }
 0x162   : > { %v698_v34 = vpop.f32.mrf.mxu0 }
 0x163   : > { %1947 = vmatprep.mubr.bf16.mxu1 %v5086_v33  ;;  %v1098_v36 = vsel %vm1096_vm5, %v1061_v31, %v1079_v32  ;;  %v1116_v37 = vsel %vm1096_vm5, %v1079_v32, %v1061_v31  ;;  %v699_v38 = vadd.f32 %v5077_v16, %v698_v34  ;;  %v5110_v51 = vmax.f32 %v707_v42, 0.0 }
 0x164   : > { %v4211_v39 = vpop.f32.mrf.mxu0  ;;  %v3366_v40 = vpack.c.bf16 %v1098_v36, %v1116_v37  ;;  %v1231_v12 = vsel %vm1229_vm6, %v1194_v0, %v1212_v54  ;;  %v1249_v13 = vsel %vm1229_vm6, %v1212_v54, %v1194_v0  ;;  %v4535_v36 = vld [vmem:[#allocation8 + $0x198] sm:$0xff]   ;;  %v4541_v54 = vld [vmem:[#allocation8 + $0x1c8] sm:$0xff]  }
 0x165   : > { %v710_v43 = vadd.f32 %v4211_v39, %v5077_v16  ;;  %v5108_v48 = vmax.f32 %v699_v38, 0.0  ;;  %v1063_v6 = vrot.slane %v5110_v51, 7  ;;  %v5151_v24 = vpack.c.bf16 %v1249_v13, %v1231_v12  ;;  %v4537_v39 = vld [vmem:[#allocation8 + $0x1d0] sm:$0xff]   ;;  %v4549_v13 = vld [vmem:[#allocation8 + $0x180] sm:$0xff]  }
 0x166   : > { %v701_v45 = vpop.f32.mrf.mxu0  ;;  %3367 = vmatmul.mubr.msk.bf16.gmra.mxu1 %vm5062_vm2, %v3366_v40  ;;  %3412 = vmatprep.mubr.msk.bf16.mxu0 %vm5062_vm2, %v3366_v40  ;;  %v1196_v0 = vrot.slane %v5110_v51, 1 }
 0x167   : > { %v5102_v46 = vmax.f32 %v710_v43, 0.0  ;;  %v702_v47 = vadd.f32 %v5077_v16, %v701_v45  ;;  %3415 = vmatmul.mubr.msk.bf16.vlgmr.msra.gmra.mxu0 %vm5070_vm4, %v5088_v35  ;;  %v1062_v1 = vrot.slane %v5108_v48, 7  ;;  %v1195_v32 = vrot.slane %v5108_v48, 1 }
 0x168   : > { %4029 = vmatpush3.bf16.msra.mxu0 %v4521_v41  ;;  %v4214_v49 = vpop.f32.mrf.mxu0 }
 0x169   : > { %v862_v52 = vmax.f32 %v702_v47, 0.0  ;;  %4030 = vmatprep.subr.bf16.mxu0 %v4522_v44  ;;  %v1081_v58 = vrot.slane %v5102_v46, 7  ;;  %v5149_v23 = vpack.c.bf16 %v5102_v46, %v5110_v51  ;;  %v723_v29 = vadd.f32 %v4214_v49, %v5077_v16 }
 0x16a   : > { %v714_v55 = vpop.f32.mrf.mxu0 }
 0x16b   : > { %v1080_v59 = vrot.slane %v862_v52, 7  ;;  %v715_v63 = vadd.f32 %v5077_v16, %v714_v55  ;;  %v5120_v3 = vpack.c.bf16 %v862_v52, %v5108_v48  ;;  %v1100_v15 = vsel %vm1096_vm5, %v1063_v6, %v1081_v58  ;;  %v4539_v48 = vld [vmem:[#allocation8 + $0x190] sm:$0xff]  }
 0x16c   : > { %v4215_v4 = vpop.f32.mrf.mxu0  ;;  %4031 = vmatpush3.bf16.msra.mxu0 %v4523_v50  ;;  %v1118_v17 = vsel %vm1096_vm5, %v1081_v58, %v1063_v6  ;;  %v1213_v26 = vrot.slane %v862_v52, 1  ;;  %v5180_v43 = vmax.f32 %v723_v29, 0.0  ;;  %v1214_v55 = vrot.slane %v5102_v46, 1  ;;  %v4547_v6 = vld [vmem:[#allocation8 + $0x1c0] sm:$0xff]  }
 0x16d   : > { %v5123_v7 = vmax.f32 %v715_v63, 0.0  ;;  %4032 = vmatprep.subr.bf16.mxu0 %v4525_v53  ;;  %1955 = vmatprep.mubr.bf16.mxu1 %v5120_v3  ;;  %v1099_v10 = vsel %vm1096_vm5, %v1062_v1, %v1080_v59  ;;  %v1117_v11 = vsel %vm1096_vm5, %v1080_v59, %v1062_v1  ;;  %v5159_v27 = vpack.c.bf16 %v1100_v15, %v1118_v17  ;;  %v4543_v1 = vld [vmem:[#allocation8 + $0x188] sm:$0xff]  }
 0x16e   : > { %v717_v9 = vpop.f32.mrf.mxu0  ;;  %v5140_v18 = vpack.c.bf16 %v1099_v10, %v1117_v11  ;;  %v726_v30 = vadd.f32 %v4215_v4, %v5077_v16  ;;  %v1232_v40 = vsel %vm1229_vm6, %v1195_v32, %v1213_v26  ;;  %v1250_v41 = vsel %vm1229_vm6, %v1213_v26, %v1195_v32 }
 0x16f   : > { %v718_v14 = vadd.f32 %v5077_v16, %v717_v9  ;;  %v1064_v21 = vrot.slane %v5123_v7, 7  ;;  %v5192_v50 = vpack.c.bf16 %v1250_v41, %v1232_v40  ;;  %v1065_v59 = vrot.slane %v5180_v43, 7 }
 0x170   : > { %v5142_v19 = vpop.f32.mrf.mxu0  ;;  %4033 = vmatpush3.bf16.msra.mxu0 %v4527_v5  ;;  %3370 = vmatmul.mubr.msk.bf16.gmra.mxu1 %vm5062_vm2, %v5140_v18  ;;  %v5182_v44 = vmax.f32 %v726_v30, 0.0  ;;  %v1251_v51 = vsel %vm1229_vm6, %v1214_v55, %v1196_v0 }
 0x171   : > { %v5145_v22 = vmax.f32 %v718_v14, 0.0  ;;  %4034 = vmatprep.subr.bf16.mxu0 %v4529_v8  ;;  %3418 = vmatprep.mubr.msk.bf16.mxu0 %vm5062_vm2, %v5140_v18  ;;  %v1233_v8 = vsel %vm1229_vm6, %v1196_v0, %v1214_v55  ;;  %v739_v29 = vadd.f32 %v5142_v19, %v5077_v16 }
 0x172   : > { %v730_v28 = vpop.f32.mrf.mxu0  ;;  %1963 = vmatprep.mubr.bf16.mxu1 %v5149_v23  ;;  %3421 = vmatmul.mubr.msk.bf16.gmra.mxu0 %vm5070_vm4, %v5151_v24  ;;  %v1083_v63 = vrot.slane %v5182_v44, 7  ;;  %v5230_v17 = vpack.c.bf16 %v5182_v44, %v5180_v43 }
 0x173   : > { %v1082_v31 = vrot.slane %v5145_v22, 7  ;;  %3424 = vmatprep.mubr.msk.bf16.mxu0 %vm5062_vm2, %v5159_v27  ;;  %v5190_v49 = vpack.c.bf16 %v5145_v22, %v5123_v7  ;;  %v731_v52 = vadd.f32 %v5077_v16, %v730_v28 }
 0x174   : > { %v4219_v34 = vpop.f32.mrf.mxu0  ;;  %4035 = vmatpush3.bf16.msra.mxu0 %v4531_v20  ;;  %v1102_v10 = vsel %vm1096_vm5, %v1065_v59, %v1083_v63  ;;  %v1120_v11 = vsel %vm1096_vm5, %v1083_v63, %v1065_v59  ;;  %v5232_v20 = vpack.c.bf16 %v1251_v51, %v1233_v8 }
 0x175   : > { %v1101_v37 = vsel %vm1096_vm5, %v1064_v21, %v1082_v31  ;;  %v1119_v38 = vsel %vm1096_vm5, %v1082_v31, %v1064_v21  ;;  %4036 = vmatprep.subr.bf16.mxu0 %v4533_v25  ;;  %v5212_v4 = vmax.f32 %v731_v52, 0.0  ;;  %v1197_v21 = vrot.slane %v5123_v7, 1 }
 0x176   : > { %v733_v42 = vpop.f32.mrf.mxu0  ;;  %v5184_v45 = vpack.c.bf16 %v1101_v37, %v1119_v38  ;;  %v1215_v25 = vrot.slane %v5145_v22, 1  ;;  %v5239_v26 = vpack.c.bf16 %v1102_v10, %v1120_v11  ;;  %v742_v30 = vadd.f32 %v4219_v34, %v5077_v16 }
 0x177   : > { %v734_v53 = vadd.f32 %v5077_v16, %v733_v42  ;;  %v1066_v14 = vrot.slane %v5212_v4, 7  ;;  %v1198_v52 = vrot.slane %v5180_v43, 1 }
 0x178   : > { %v5186_v47 = vpop.f32.mrf.mxu0  ;;  %4037 = vmatpush3.bf16.msra.mxu0 %v4535_v36  ;;  %3373 = vmatmul.mubr.msk.bf16.gmra.mxu1 %vm5062_vm2, %v5159_v27  ;;  %v1234_v31 = vsel %vm1229_vm6, %v1197_v21, %v1215_v25  ;;  %v1252_v32 = vsel %vm1229_vm6, %v1215_v25, %v1197_v21  ;;  %v5264_v36 = vmax.f32 %v739_v29, 0.0  ;;  %v5266_v37 = vmax.f32 %v742_v30, 0.0 }
 0x179   : > { %4038 = vmatprep.subr.bf16.mxu0 %v4537_v39  ;;  %1971 = vmatprep.mubr.bf16.mxu1 %v5190_v49  ;;  %v5214_v5 = vmax.f32 %v734_v53, 0.0  ;;  %v5276_v41 = vpack.c.bf16 %v1252_v32, %v1234_v31  ;;  %v1216_v53 = vrot.slane %v5182_v44, 1  ;;  %v755_v29 = vadd.f32 %v5186_v47, %v5077_v16 }
 0x17a   : > { %v746_v58 = vpop.f32.mrf.mxu0  ;;  %3427 = vmatmul.mubr.msk.bf16.gmra.mxu0 %vm5070_vm4, %v5192_v50  ;;  %v1067_v55 = vrot.slane %v5264_v36, 7  ;;  %v1085_v59 = vrot.slane %v5266_v37, 7  ;;  %v5318_v11 = vpack.c.bf16 %v5266_v37, %v5264_v36 }
 0x17b   : > { %3430 = vmatprep.mubr.msk.bf16.mxu0 %vm5062_vm2, %v5184_v45  ;;  %v1084_v15 = vrot.slane %v5214_v5, 7  ;;  %v5274_v40 = vpack.c.bf16 %v5214_v5, %v5212_v4  ;;  %v747_v42 = vadd.f32 %v5077_v16, %v746_v58  ;;  %v1235_v63 = vsel %vm1229_vm6, %v1198_v52, %v1216_v53 }
 0x17c   : > { %v5210_v46 = vpop.f32.mrf.mxu0  ;;  %4039 = vmatpush3.bf16.msra.mxu0 %v4539_v48  ;;  %v1253_v0 = vsel %vm1229_vm6, %v1216_v53, %v1198_v52  ;;  %v1122_v8 = vsel %vm1096_vm5, %v1085_v59, %v1067_v55  ;;  %v5354_v31 = vmax.f32 %v755_v29, 0.0 }
 0x17d   : > { %4040 = vmatprep.subr.bf16.mxu0 %v4541_v54  ;;  %v1103_v22 = vsel %vm1096_vm5, %v1066_v14, %v1084_v15  ;;  %v1121_v19 = vsel %vm1096_vm5, %v1084_v15, %v1066_v14  ;;  %v5298_v44 = vmax.f32 %v747_v42, 0.0  ;;  %v1199_v14 = vrot.slane %v5212_v4, 1 }
 0x17e   : > { %v749_v9 = vpop.f32.mrf.mxu0  ;;  %v5268_v38 = vpack.c.bf16 %v1103_v22, %v1121_v19  ;;  %v1217_v15 = vrot.slane %v5214_v5, 1  ;;  %v758_v30 = vadd.f32 %v5210_v46, %v5077_v16  ;;  %v1200_v42 = vrot.slane %v5264_v36, 1 }
 0x17f   : > { %v750_v48 = vadd.f32 %v5077_v16, %v749_v9  ;;  %v1068_v9 = vrot.slane %v5298_v44, 7 }
 0x180   : > { %v5224_v12 = vpop.f32.mrf.mxu0  ;;  %4041 = vmatpush3.bf16.msra.mxu0 %v4543_v1  ;;  %3376 = vmatmul.mubr.msk.bf16.gmra.mxu1 %vm5062_vm2, %v5184_v45  ;;  %v1236_v46 = vsel %vm1229_vm6, %v1199_v14, %v1217_v15  ;;  %v1254_v22 = vsel %vm1229_vm6, %v1217_v15, %v1199_v14  ;;  %v5356_v32 = vmax.f32 %v758_v30, 0.0  ;;  %v3708_v30 = vpop.f32.mrf.mxu1 }
 0x181   : > { %4042 = vmatprep.subr.bf16.mxu0 %v4547_v6  ;;  %1979 = vmatprep.mubr.bf16.mxu1 %v5230_v17  ;;  %v5300_v58 = vmax.f32 %v750_v48, 0.0  ;;  %v1104_v6 = vsel %vm1096_vm5, %v1067_v55, %v1085_v59  ;;  %v1218_v55 = vrot.slane %v5266_v37, 1 }
 0x182   : > { %v5241_v28 = vpop.f32.mrf.mxu0  ;;  %3433 = vmatmul.mubr.msk.bf16.gmra.mxu0 %vm5070_vm4, %v5232_v20  ;;  %v5327_v21 = vpack.c.bf16 %v1104_v6, %v1122_v8  ;;  %v1069_v6 = vrot.slane %v5354_v31, 7 }
 0x183   : > { %3436 = vmatprep.mubr.msk.bf16.mxu0 %vm5062_vm2, %v5239_v26  ;;  %v1086_v10 = vrot.slane %v5300_v58, 7  ;;  %v763_v52 = vadd.f32 %v5077_v16, %v5241_v28  ;;  %v5366_v59 = vpack.c.bf16 %v5300_v58, %v5298_v44  ;;  %v1087_v28 = vrot.slane %v5356_v32, 7 }
 0x184   : > { %v5253_v7 = vpop.f32.mrf.mxu0  ;;  %4043 = vmatpush3.bf16.msra.mxu0 %v4549_v13  ;;  %v5320_v13 = vpack.c.bf16 %v1253_v0, %v1235_v63  ;;  %v5368_v63 = vpack.c.bf16 %v1254_v22, %v1236_v46  ;;  %v1255_v14 = vsel %vm1229_vm6, %v1218_v55, %v1200_v42 }
 0x185   : > { %4240 = vmatprep.subr.bf16.mxu0 %v5112_v56  ;;  %v1105_v5 = vsel %vm1096_vm5, %v1068_v9, %v1086_v10  ;;  %v1123_v47 = vsel %vm1096_vm5, %v1086_v10, %v1068_v9  ;;  %v1237_v10 = vsel %vm1229_vm6, %v1200_v42, %v1218_v55  ;;  %v3709_v42 = vpop.f32.mrf.mxu1 }
 0x186   : > { %v765_v34 = vpop.f32.mrf.mxu0  ;;  %v5359_v48 = vpack.c.bf16 %v1105_v5, %v1123_v47  ;;  %v1106_v5 = vsel %vm1096_vm5, %v1069_v6, %v1087_v28  ;;  %v1124_v47 = vsel %vm1096_vm5, %v1087_v28, %v1069_v6  ;;  %v1201_v6 = vrot.slane %v5298_v44, 1 }
 0x187   : > { %v766_v0 = vadd.f32 %v5077_v16, %v765_v34  ;;  %v5384_v34 = vmax.f32 %v763_v52, 0.0  ;;  %v5402_v52 = vpack.c.bf16 %v5356_v32, %v5354_v31  ;;  %v1219_v28 = vrot.slane %v5300_v58, 1 }
 0x188   : > { %v5270_v39 = vpop.f32.mrf.mxu0  ;;  %3379 = vmatmul.mubr.msk.bf16.gmra.mxu1 %vm5062_vm2, %v5239_v26 }
 0x189   : > { %1987 = vmatprep.mubr.bf16.mxu1 %v5274_v40  ;;  %v5386_v9 = vmax.f32 %v766_v0, 0.0  ;;  %v1070_v22 = vrot.slane %v5384_v34, 7 }
 0x18a   : > { %v5285_v54 = vpop.f32.mrf.mxu0  ;;  %3439 = vmatmul.mubr.msk.bf16.gmra.mxu0 %vm5070_vm4, %v5276_v41 }
 0x18b   : > { %3442 = vmatprep.mubr.msk.bf16.mxu0 %vm5062_vm2, %v5268_v38  ;;  %v1088_v55 = vrot.slane %v5386_v9, 7 }
 0x18c   : > { %v5296_v43 = vpop.f32.mrf.mxu0 }
 0x18e   : > { %v5306_v1 = vpop.f32.mrf.mxu0 }
 0x190   : > { %v5312_v51 = vpop.f32.mrf.mxu0  ;;  %3382 = vmatmul.mubr.msk.bf16.gmra.mxu1 %vm5062_vm2, %v5268_v38 }
 0x191   : > { %1995 = vmatprep.mubr.bf16.mxu1 %v5318_v11 }
 0x192   : > { %v5329_v25 = vpop.f32.mrf.mxu0  ;;  %3445 = vmatmul.mubr.msk.bf16.gmra.mxu0 %vm5070_vm4, %v5320_v13 }
 0x193   : > { %3448 = vmatprep.mubr.msk.bf16.mxu0 %vm5062_vm2, %v5327_v21  ;;  %v795_v60 = vadd.f32 %v5077_v16, %v5329_v25 }
 0x194   : > { %v5342_v4 = vpop.f32.mrf.mxu0 }
 0x195   : > { %v885_v25 = vmax.f32 %v795_v60, 0.0 }
 0x196   : > { %v5352_v19 = vpop.f32.mrf.mxu0 }
 0x198   : > { %v4238_v53 = vpop.f32.mrf.mxu0  ;;  %3385 = vmatmul.mubr.msk.bf16.gmra.mxu1 %vm5062_vm2, %v5327_v21 }
 0x199   : > { %2003 = vmatprep.mubr.bf16.mxu1 %v5366_v59  ;;  %v5404_v53 = vpack.c.bf16 %v1255_v14, %v1237_v10  ;;  %v771_v10 = vadd.f32 %v5224_v12, %v5077_v16  ;;  %v774_v14 = vadd.f32 %v5253_v7, %v5077_v16  ;;  %v1107_v12 = vsel %vm1096_vm5, %v1070_v22, %v1088_v55 }
 0x19a   : > { %v810_v36 = vpop.f32.mrf.mxu0  ;;  %3451 = vmatmul.mubr.msk.bf16.gmra.mxu0 %vm5070_vm4, %v5368_v63  ;;  %v1125_v7 = vsel %vm1096_vm5, %v1088_v55, %v1070_v22  ;;  %v5453_v22 = vpack.c.bf16 %v5386_v9, %v5384_v34 }
 0x19b   : > { %v811_v37 = vadd.f32 %v5077_v16, %v810_v36  ;;  %3454 = vmatprep.mubr.msk.bf16.mxu0 %vm5062_vm2, %v5359_v48  ;;  %v880_v61 = vmax.f32 %v774_v14, 0.0  ;;  %v5449_v35 = vpack.c.bf16 %v1107_v12, %v1125_v7 }
 0x19c   : > { %v4239_v8 = vpop.f32.mrf.mxu0 }
 0x19d   : > { %v5392_v15 = vmax.f32 %v811_v37, 0.0  ;;  %v5410_v37 = vadd.f32 %v3709_v42, %v3708_v30  ;;  %v5417_v8 = vpack.c.bf16 %v1106_v5, %v1124_v47  ;;  %v1238_v5 = vsel %vm1229_vm6, %v1201_v6, %v1219_v28 }
 0x19e   : > { %v813_v29 = vpop.f32.mrf.mxu0  ;;  %v1256_v47 = vsel %vm1229_vm6, %v1219_v28, %v1201_v6  ;;  %v879_v42 = vmax.f32 %v771_v10, 0.0  ;;  %v1202_v6 = vrot.slane %v5354_v31, 1  ;;  %v1220_v28 = vrot.slane %v5356_v32, 1 }
 0x19f   : > { %v814_v46 = vadd.f32 %v5077_v16, %v813_v29  ;;  %v1209_v0 = vrot.slane %v5392_v15, 1  ;;  %v5455_v55 = vpack.c.bf16 %v1256_v47, %v1238_v5  ;;  %v1089_v14 = vrot.slane %v880_v61, 7 }
 0x1a0   : > { %3388 = vmatmul.mubr.msk.bf16.gmra.mxu1 %vm5062_vm2, %v5359_v48  ;;  %v1071_v10 = vrot.slane %v879_v42, 7  ;;  %v1239_v31 = vsel %vm1229_vm6, %v1202_v6, %v1220_v28  ;;  %v1257_v32 = vsel %vm1229_vm6, %v1220_v28, %v1202_v6  ;;  %v5481_v5 = vpack.c.bf16 %v880_v61, %v879_v42 }
 0x1a1   : > { %v5408_v36 = vmax.f32 %v814_v46, 0.0  ;;  %2011 = vmatprep.mubr.bf16.mxu1 %v5402_v52  ;;  %v5483_v47 = vpack.c.bf16 %v1257_v32, %v1239_v31  ;;  %v787_v28 = vadd.f32 %v5270_v39, %v5077_v16 }
 0x1a2   : > { %3457 = vmatmul.mubr.msk.bf16.gmra.mxu0 %vm5070_vm4, %v5404_v53  ;;  %v1108_v12 = vsel %vm1096_vm5, %v1071_v10, %v1089_v14  ;;  %v1126_v7 = vsel %vm1096_vm5, %v1089_v14, %v1071_v10  ;;  %v790_v10 = vadd.f32 %v5296_v43, %v5077_v16 }
 0x1a3   : > { %v1227_v44 = vrot.slane %v5408_v36, 1  ;;  %v5430_v58 = vpack.c.bf16 %v5408_v36, %v5392_v15  ;;  %3460 = vmatprep.mubr.msk.bf16.mxu0 %vm5062_vm2, %v5417_v8  ;;  %v5490_v6 = vpack.c.bf16 %v1108_v12, %v1126_v7  ;;  %v883_v14 = vmax.f32 %v787_v28, 0.0 }
 0x1a4   : > { %v884_v31 = vmax.f32 %v790_v10, 0.0 }
 0x1a5   : > { %6277 = vst [vmem:[#allocation25_spill] sm:$0xff] %v5430_v58  ;;  %v1246_v29 = vsel %vm1229_vm6, %v1209_v0, %v1227_v44  ;;  %v1264_v30 = vsel %vm1229_vm6, %v1227_v44, %v1209_v0  ;;  %v779_v0 = vadd.f32 %v5077_v16, %v5285_v54  ;;  %v782_v44 = vadd.f32 %v5077_v16, %v5306_v1 }
 0x1a6   : > { %v5447_v46 = vpack.c.bf16 %v1264_v30, %v1246_v29  ;;  %v1222_v58 = vrot.slane %v880_v61, 1 }
 0x1a7   : > { %v881_v54 = vmax.f32 %v779_v0, 0.0  ;;  %v882_v1 = vmax.f32 %v782_v44, 0.0  ;;  %v1203_v0 = vrot.slane %v5384_v34, 1  ;;  %v1221_v44 = vrot.slane %v5386_v9, 1 }
 0x1a8   : > { %6278 = vst [vmem:[#allocation26_spill] sm:$0xff] %v5447_v46  ;;  %3391 = vmatmul.mubr.msk.bf16.gmra.mxu1 %vm5062_vm2, %v5417_v8 }
 0x1a9   : > { %2019 = vmatprep.mubr.bf16.mxu1 %v5453_v22  ;;  %v1072_v29 = vrot.slane %v881_v54, 7  ;;  %v1090_v30 = vrot.slane %v882_v1, 7  ;;  %v1240_v39 = vsel %vm1229_vm6, %v1203_v0, %v1221_v44  ;;  %v1258_v43 = vsel %vm1229_vm6, %v1221_v44, %v1203_v0 }
 0x1aa   : > { %3463 = vmatmul.mubr.msk.bf16.gmra.mxu0 %vm5070_vm4, %v5455_v55  ;;  %v5513_v12 = vpack.c.bf16 %v882_v1, %v881_v54  ;;  %v5515_v7 = vpack.c.bf16 %v1258_v43, %v1240_v39  ;;  %v1073_v0 = vrot.slane %v883_v14, 7  ;;  %v1091_v44 = vrot.slane %v884_v31, 7 }
 0x1ab   : > { %3466 = vmatprep.mubr.msk.bf16.mxu0 %vm5062_vm2, %v5449_v35  ;;  %v1109_v34 = vsel %vm1096_vm5, %v1072_v29, %v1090_v30  ;;  %v1127_v9 = vsel %vm1096_vm5, %v1090_v30, %v1072_v29  ;;  %v798_v29 = vadd.f32 %v5077_v16, %v5352_v19  ;;  %v1204_v30 = vrot.slane %v879_v42, 1 }
 0x1ac   : > { %v5511_v32 = vpack.c.bf16 %v1109_v34, %v1127_v9  ;;  %v1110_v28 = vsel %vm1096_vm5, %v1073_v0, %v1091_v44  ;;  %v1128_v10 = vsel %vm1096_vm5, %v1091_v44, %v1073_v0  ;;  %v1074_v34 = vrot.slane %v885_v25, 7 }
 0x1ad   : > { %v886_v19 = vmax.f32 %v798_v29, 0.0  ;;  %v1241_v61 = vsel %vm1229_vm6, %v1204_v30, %v1222_v58  ;;  %v1259_v42 = vsel %vm1229_vm6, %v1222_v58, %v1204_v30  ;;  %v5539_v39 = vpack.c.bf16 %v884_v31, %v883_v14 }
 0x1ae   : > { %v5541_v43 = vpack.c.bf16 %v1259_v42, %v1241_v61  ;;  %v1205_v60 = vrot.slane %v881_v54, 1  ;;  %v1223_v29 = vrot.slane %v882_v1, 1  ;;  %v5546_v46 = vpack.c.bf16 %v1110_v28, %v1128_v10 }
 0x1af   : > { %v1092_v9 = vrot.slane %v886_v19, 7  ;;  %v803_v58 = vadd.f32 %v5312_v51, %v5077_v16  ;;  %v806_v30 = vadd.f32 %v5342_v4, %v5077_v16  ;;  %v5569_v61 = vpack.c.bf16 %v886_v19, %v885_v25 }
 0x1b0   : > { %3394 = vmatmul.mubr.msk.bf16.gmra.mxu1 %vm5062_vm2, %v5449_v35  ;;  %v1242_v51 = vsel %vm1229_vm6, %v1205_v60, %v1223_v29  ;;  %v1260_v16 = vsel %vm1229_vm6, %v1223_v29, %v1205_v60  ;;  %v1206_v28 = vrot.slane %v883_v14, 1  ;;  %v1224_v10 = vrot.slane %v884_v31, 1 }
 0x1b1   : > { %2027 = vmatprep.mubr.bf16.mxu1 %v5481_v5  ;;  %v1111_v54 = vsel %vm1096_vm5, %v1074_v34, %v1092_v9  ;;  %v1129_v1 = vsel %vm1096_vm5, %v1092_v9, %v1074_v34  ;;  %v887_v4 = vmax.f32 %v803_v58, 0.0  ;;  %v888_v0 = vmax.f32 %v806_v30, 0.0 }
 0x1b2   : > { %3469 = vmatmul.mubr.msk.bf16.gmra.mxu0 %vm5070_vm4, %v5483_v47  ;;  %v5567_v44 = vpack.c.bf16 %v1111_v54, %v1129_v1  ;;  %v5571_v42 = vpack.c.bf16 %v1260_v16, %v1242_v51  ;;  %v1243_v14 = vsel %vm1229_vm6, %v1206_v28, %v1224_v10  ;;  %v1261_v31 = vsel %vm1229_vm6, %v1224_v10, %v1206_v28 }
 0x1b3   : > { %3472 = vmatprep.mubr.msk.bf16.mxu0 %vm5062_vm2, %v5490_v6  ;;  %v1075_v34 = vrot.slane %v887_v4, 7  ;;  %v1093_v9 = vrot.slane %v888_v0, 7  ;;  %v1076_v58 = vrot.slane %v5392_v15, 7  ;;  %v1094_v30 = vrot.slane %v5408_v36, 7 }
 0x1b4   : > { %v5593_v54 = vpack.c.bf16 %v888_v0, %v887_v4  ;;  %v5595_v1 = vpack.c.bf16 %v1261_v31, %v1243_v14  ;;  %v1207_v51 = vrot.slane %v885_v25, 1  ;;  %v1225_v16 = vrot.slane %v886_v19, 1 }
 0x1b5   : > { %v1112_v60 = vsel %vm1096_vm5, %v1075_v34, %v1093_v9  ;;  %v1130_v29 = vsel %vm1096_vm5, %v1093_v9, %v1075_v34  ;;  %v1113_v15 = vsel %vm1096_vm5, %v1076_v58, %v1094_v30  ;;  %v1131_v36 = vsel %vm1096_vm5, %v1094_v30, %v1076_v58 }
 0x1b6   : > { %v5600_v28 = vpack.c.bf16 %v1112_v60, %v1130_v29  ;;  %v1244_v25 = vsel %vm1229_vm6, %v1207_v51, %v1225_v16  ;;  %v1262_v19 = vsel %vm1229_vm6, %v1225_v16, %v1207_v51  ;;  %v5617_v10 = vpack.c.bf16 %v1113_v15, %v1131_v36  ;;  %v4553_v60 = vld [vmem:[#allocation8 + $0x230] sm:$0xff]  }
 0x1b7   : > { %v5619_v34 = vpack.c.bf16 %v1262_v19, %v1244_v25  ;;  %v1208_v9 = vrot.slane %v887_v4, 1  ;;  %v1226_v14 = vrot.slane %v888_v0, 1 }
 0x1b8   : > { %3397 = vmatmul.mubr.msk.bf16.gmra.mxu1 %vm5062_vm2, %v5490_v6 }
 0x1b9   : > { %2035 = vmatprep.mubr.bf16.mxu1 %v5513_v12  ;;  %v1245_v4 = vsel %vm1229_vm6, %v1208_v9, %v1226_v14  ;;  %v1263_v0 = vsel %vm1229_vm6, %v1226_v14, %v1208_v9 }
 0x1ba   : > { %3475 = vmatmul.mubr.msk.bf16.gmra.mxu0 %vm5070_vm4, %v5515_v7  ;;  %v5637_v31 = vpack.c.bf16 %v1263_v0, %v1245_v4 }
 0x1bb   : > { %3478 = vmatprep.mubr.msk.bf16.mxu0 %vm5062_vm2, %v5511_v32 }
 0x1c0   : > { %3400 = vmatmul.mubr.msk.bf16.gmra.mxu1 %vm5062_vm2, %v5511_v32 }
 0x1c1   : > { %2043 = vmatprep.mubr.bf16.mxu1 %v5539_v39 }
 0x1c2   : > { %3481 = vmatmul.mubr.msk.bf16.gmra.mxu0 %vm5070_vm4, %v5541_v43 }
 0x1c3   : > { %3484 = vmatprep.mubr.msk.bf16.mxu0 %vm5062_vm2, %v5546_v46 }
 0x1c8   : > { %3403 = vmatmul.mubr.msk.bf16.gmra.mxu1 %vm5062_vm2, %v5546_v46 }
 0x1c9   : > { %2051 = vmatprep.mubr.bf16.mxu1 %v5569_v61 }
 0x1ca   : > { %3487 = vmatmul.mubr.msk.bf16.gmra.mxu0 %vm5070_vm4, %v5571_v42 }
 0x1cb   : > { %3490 = vmatprep.mubr.msk.bf16.mxu0 %vm5062_vm2, %v5567_v44 }
 0x1d0   : > { %3406 = vmatmul.mubr.msk.bf16.gmra.mxu1 %vm5062_vm2, %v5567_v44 }
 0x1d1   : > { %2059 = vmatprep.mubr.bf16.mxu1 %v5593_v54 }
 0x1d2   : > { %3493 = vmatmul.mubr.msk.bf16.gmra.mxu0 %vm5070_vm4, %v5595_v1 }
 0x1d3   : > { %3496 = vmatprep.mubr.msk.bf16.mxu0 %vm5062_vm2, %v5600_v28 }
 0x1d8   : > { %3409 = vmatmul.mubr.msk.bf16.gmra.mxu1 %vm5062_vm2, %v5600_v28 }
 0x1d9   : > { %3508 = vmatprep.mubr.msk.bf16.mxu1 %vm5070_vm4, %v5151_v24  ;;  %v4554_v24 = vld [vmem:[#allocation8 + $0x228] sm:$0xff]  }
 0x1da   : > { %3499 = vmatmul.mubr.msk.bf16.gmra.mxu0 %vm5070_vm4, %v5619_v34 }
 0x1db   : > { %3502 = vmatprep.mubr.msk.bf16.mxu0 %vm5062_vm2, %v5617_v10 }
 0x1e0   : > { %2262 = vmatmul.mubr.bf16.vlgmr.msra.gmra.mxu1 %v5086_v33  ;;  %v4556_v33 = vld [vmem:[#allocation8 + $0x218] sm:$0xff]  }
 0x1e1   : > { %3511 = vmatprep.mubr.msk.bf16.mxu1 %vm5070_vm4, %v5192_v50  ;;  %4344 = vmatpush3.bf16.msra.mxu1 %v5112_v56 }
 0x1e2   : > { %3505 = vmatmul.mubr.msk.bf16.gmra.mxu0 %vm5070_vm4, %v5637_v31  ;;  %4337 = vmatprep.subr.bf16.mxu1 %v4553_v60 }
 0x1e3   : > { %2422 = vmatprep.mubr.bf16.mxu0 %v5120_v3 }
 0x1e5   : > { %4345 = vmatpush3.bf16.msra.mxu1 %v4553_v60 }
 0x1e6   : > { %4338 = vmatprep.subr.bf16.mxu1 %v4554_v24 }
 0x1e8   : > { %2270 = vmatmul.mubr.bf16.gmra.mxu1 %v5120_v3  ;;  %v4557_v3 = vld [vmem:[#allocation8 + $0x210] sm:$0xff]  }
 0x1e9   : > { %3514 = vmatprep.mubr.msk.bf16.mxu1 %vm5070_vm4, %v5232_v20  ;;  %4346 = vmatpush3.bf16.msra.mxu1 %v4554_v24 }
 0x1ea   : > { %3556 = vmatmul.mubr.msk.bf16.vlgmr.msra.gmra.mxu0 %vm5062_vm2, %v5140_v18  ;;  %4339 = vmatprep.subr.bf16.mxu1 %v4555_v57  ;;  %v4559_v18 = vld [vmem:[#allocation8 + $0x200] sm:$0xff]  }
 0x1eb   : > { %4241 = vmatpush3.bf16.msra.mxu0 %v5112_v56  ;;  %2430 = vmatprep.mubr.bf16.mxu0 %v5149_v23  ;;  %v4558_v56 = vld [vmem:[#allocation8 + $0x208] sm:$0xff]  }
 0x1ec   : > { %4242 = vmatprep.subr.bf16.mxu0 %v4553_v60 }
 0x1ed   : > { %4347 = vmatpush3.bf16.msra.mxu1 %v4555_v57 }
 0x1ee   : > { %4340 = vmatprep.subr.bf16.mxu1 %v4556_v33 }
 0x1ef   : > { %4243 = vmatpush3.bf16.msra.mxu0 %v4553_v60 }
 0x1f0   : > { %4244 = vmatprep.subr.bf16.mxu0 %v4554_v24  ;;  %2278 = vmatmul.mubr.bf16.gmra.mxu1 %v5149_v23  ;;  %v3711_v23 = vpop.f32.mrf.mxu1 }
 0x1f1   : > { %3517 = vmatprep.mubr.msk.bf16.mxu1 %vm5070_vm4, %v5276_v41  ;;  %4348 = vmatpush3.bf16.msra.mxu1 %v4556_v33 }
 0x1f2   : > { %3559 = vmatmul.mubr.msk.bf16.gmra.mxu0 %vm5062_vm2, %v5159_v27  ;;  %4341 = vmatprep.subr.bf16.mxu1 %v4557_v3  ;;  %v3712_v27 = vpop.f32.mrf.mxu1 }
 0x1f3   : > { %2438 = vmatprep.mubr.bf16.mxu0 %v5190_v49  ;;  %4245 = vmatpush3.bf16.msra.mxu0 %v4554_v24 }
 0x1f4   : > { %4246 = vmatprep.subr.bf16.mxu0 %v4555_v57 }
 0x1f5   : > { %4349 = vmatpush3.bf16.msra.mxu1 %v4557_v3 }
 0x1f6   : > { %4342 = vmatprep.subr.bf16.mxu1 %v4558_v56 }
 0x1f7   : > { %4247 = vmatpush3.bf16.msra.mxu0 %v4555_v57 }
 0x1f8   : > { %4248 = vmatprep.subr.bf16.mxu0 %v4556_v33  ;;  %2286 = vmatmul.mubr.bf16.gmra.mxu1 %v5190_v49 }
 0x1f9   : > { %3520 = vmatprep.mubr.msk.bf16.mxu1 %vm5070_vm4, %v5320_v13  ;;  %4350 = vmatpush3.bf16.msra.mxu1 %v4558_v56 }
 0x1fa   : > { %3562 = vmatmul.mubr.msk.bf16.gmra.mxu0 %vm5062_vm2, %v5184_v45  ;;  %4343 = vmatprep.subr.bf16.mxu1 %v4559_v18  ;;  %v5716_v45 = vld [vmem:[%s6227_s5] ss:$0 sm:$0xff] }
 0x1fb   : > { %2446 = vmatprep.mubr.bf16.mxu0 %v5230_v17  ;;  %4249 = vmatpush3.bf16.msra.mxu0 %v4556_v33 }
 0x1fc   : > { %4250 = vmatprep.subr.bf16.mxu0 %v4557_v3 }
 0x1fd   : > { %4351 = vmatpush3.bf16.msra.mxu1 %v4559_v18 }
 0x1ff   : > { %4251 = vmatpush3.bf16.msra.mxu0 %v4557_v3 }
 0x200   : > { %4252 = vmatprep.subr.bf16.mxu0 %v4558_v56  ;;  %2294 = vmatmul.mubr.bf16.gmra.mxu1 %v5230_v17 }
 0x201   : > { %3523 = vmatprep.mubr.msk.bf16.mxu1 %vm5070_vm4, %v5368_v63 }
 0x202   : > { %3565 = vmatmul.mubr.msk.bf16.gmra.mxu0 %vm5062_vm2, %v5239_v26  ;;  %v1942_v26 = vadd.f32 %v5410_v37, %v5716_v45 }
 0x203   : > { %2454 = vmatprep.mubr.bf16.mxu0 %v5274_v40  ;;  %4253 = vmatpush3.bf16.msra.mxu0 %v4558_v56 }
 0x204   : > { %4254 = vmatprep.subr.bf16.mxu0 %v4559_v18 }
 0x207   : > { %4255 = vmatpush3.bf16.msra.mxu0 %v4559_v18 }
 0x208   : > { %2302 = vmatmul.mubr.bf16.gmra.mxu1 %v5274_v40 }
 0x209   : > { %3526 = vmatprep.mubr.msk.bf16.mxu1 %vm5070_vm4, %v5404_v53 }
 0x20a   : > { %3568 = vmatmul.mubr.msk.bf16.gmra.mxu0 %vm5062_vm2, %v5268_v38  ;;  %v3713_v38 = vadd.f32 %v3712_v27, %v3711_v23 }
 0x20b   : > { %2462 = vmatprep.mubr.bf16.mxu0 %v5318_v11 }
 0x210   : > { %2310 = vmatmul.mubr.bf16.gmra.mxu1 %v5318_v11 }
 0x211   : > { %3529 = vmatprep.mubr.msk.bf16.mxu1 %vm5070_vm4, %v5455_v55 }
 0x212   : > { %3571 = vmatmul.mubr.msk.bf16.gmra.mxu0 %vm5062_vm2, %v5327_v21 }
 0x213   : > { %2470 = vmatprep.mubr.bf16.mxu0 %v5366_v59 }
 0x218   : > { %2318 = vmatmul.mubr.bf16.gmra.mxu1 %v5366_v59 }
 0x219   : > { %3532 = vmatprep.mubr.msk.bf16.mxu1 %vm5070_vm4, %v5483_v47 }
 0x21a   : > { %3574 = vmatmul.mubr.msk.bf16.gmra.mxu0 %vm5062_vm2, %v5359_v48 }
 0x21b   : > { %2478 = vmatprep.mubr.bf16.mxu0 %v5402_v52 }
 0x220   : > { %2326 = vmatmul.mubr.bf16.gmra.mxu1 %v5402_v52 }
 0x221   : > { %3535 = vmatprep.mubr.msk.bf16.mxu1 %vm5070_vm4, %v5515_v7 }
 0x222   : > { %3577 = vmatmul.mubr.msk.bf16.gmra.mxu0 %vm5062_vm2, %v5417_v8  ;;  %v1945_v8 = vadd.f32 %v3713_v38, %v5716_v45 }
 0x223   : > { %2486 = vmatprep.mubr.bf16.mxu0 %v5453_v22 }
 0x226   : > { %v3714_v49 = vpop.f32.mrf.mxu1 }
 0x227   : > { %v3820_v17 = vpop.f32.mrf.mxu0 }
 0x228   : > { %v3715_v40 = vpop.f32.mrf.mxu1  ;;  %2334 = vmatmul.mubr.bf16.gmra.mxu1 %v5453_v22 }
 0x229   : > { %v3716_v11 = vadd.f32 %v3715_v40, %v3714_v49  ;;  %v3821_v21 = vpop.f32.mrf.mxu0  ;;  %3538 = vmatprep.mubr.msk.bf16.mxu1 %vm5070_vm4, %v5541_v43 }
 0x22a   : > { %v3822_v48 = vadd.f32 %v3821_v21, %v3820_v17  ;;  %v3717_v59 = vpop.f32.mrf.mxu1  ;;  %3580 = vmatmul.mubr.msk.bf16.gmra.mxu0 %vm5062_vm2, %v5449_v35 }
 0x22b   : > { %v3823_v52 = vpop.f32.mrf.mxu0  ;;  %2494 = vmatprep.mubr.bf16.mxu0 %v5481_v5  ;;  %v1950_v19 = vadd.f32 %v3716_v11, %v5716_v45 }
 0x22c   : > { %v5728_v37 = vadd.f32 %v3822_v48, %v1942_v26  ;;  %v3718_v29 = vpop.f32.mrf.mxu1 }
 0x22d   : > { %v3719_v58 = vadd.f32 %v3718_v29, %v3717_v59  ;;  %v3824_v22 = vpop.f32.mrf.mxu0 }
 0x22e   : > { %v3825_v30 = vadd.f32 %v3824_v22, %v3823_v52 }
 0x22f   : > { %v1953_v57 = vadd.f32 %v3719_v58, %v5716_v45 }
 0x230   : > { %v5731_v51 = vadd.f32 %v3825_v30, %v1945_v8  ;;  %v3720_v16 = vpop.f32.mrf.mxu1  ;;  %2342 = vmatmul.mubr.bf16.gmra.mxu1 %v5481_v5 }
 0x231   : > { %3541 = vmatprep.mubr.msk.bf16.mxu1 %vm5070_vm4, %v5571_v42 }
 0x232   : > { %v3826_v15 = vpop.f32.mrf.mxu0  ;;  %3583 = vmatmul.mubr.msk.bf16.gmra.mxu0 %vm5062_vm2, %v5490_v6  ;;  %v3721_v35 = vpop.f32.mrf.mxu1 }
 0x233   : > { %2502 = vmatprep.mubr.bf16.mxu0 %v5513_v12  ;;  %v3722_v36 = vadd.f32 %v3721_v35, %v3720_v16 }
 0x234   : > { %v3827_v25 = vpop.f32.mrf.mxu0  ;;  %v3723_v14 = vpop.f32.mrf.mxu1 }
 0x235   : > { %v3828_v9 = vadd.f32 %v3827_v25, %v3826_v15  ;;  %v1958_v49 = vadd.f32 %v3722_v36, %v5716_v45 }
 0x236   : > { %v3829_v4 = vpop.f32.mrf.mxu0  ;;  %v3724_v0 = vpop.f32.mrf.mxu1 }
 0x237   : > { %v5742_v5 = vadd.f32 %v3828_v9, %v1950_v19  ;;  %v3725_v60 = vadd.f32 %v3724_v0, %v3723_v14 }
 0x238   : > { %v3830_v24 = vpop.f32.mrf.mxu0  ;;  %v3726_v3 = vpop.f32.mrf.mxu1  ;;  %2350 = vmatmul.mubr.bf16.gmra.mxu1 %v5513_v12 }
 0x239   : > { %v3831_v33 = vadd.f32 %v3830_v24, %v3829_v4  ;;  %3544 = vmatprep.mubr.msk.bf16.mxu1 %vm5070_vm4, %v5595_v1  ;;  %v1961_v48 = vadd.f32 %v3725_v60, %v5716_v45 }
 0x23a   : > { %v3832_v6 = vpop.f32.mrf.mxu0  ;;  %3586 = vmatmul.mubr.msk.bf16.gmra.mxu0 %vm5062_vm2, %v5511_v32  ;;  %v3727_v18 = vpop.f32.mrf.mxu1 }
 0x23b   : > { %v5752_v56 = vadd.f32 %v3831_v33, %v1953_v57  ;;  %2510 = vmatprep.mubr.bf16.mxu0 %v5539_v39  ;;  %v3728_v23 = vadd.f32 %v3727_v18, %v3726_v3 }
 0x23c   : > { %v3833_v27 = vpop.f32.mrf.mxu0  ;;  %v3729_v12 = vpop.f32.mrf.mxu1 }
 0x23d   : > { %v3834_v17 = vadd.f32 %v3833_v27, %v3832_v6  ;;  %v1966_v30 = vadd.f32 %v3728_v23, %v5716_v45 }
 0x23e   : > { %v3835_v26 = vpop.f32.mrf.mxu0  ;;  %v3730_v40 = vpop.f32.mrf.mxu1 }
 0x23f   : > { %v5756_v38 = vadd.f32 %v3834_v17, %v1958_v49  ;;  %v3731_v11 = vadd.f32 %v3730_v40, %v3729_v12  ;;  %v6279_v40 = vld [vmem:[#allocation26_spill] sm:$0xff] }
 0x240   : > { %v3836_v21 = vpop.f32.mrf.mxu0  ;;  %v3732_v59 = vpop.f32.mrf.mxu1  ;;  %2358 = vmatmul.mubr.bf16.gmra.mxu1 %v5539_v39 }
 0x241   : > { %v3837_v32 = vadd.f32 %v3836_v21, %v3835_v26  ;;  %3547 = vmatprep.mubr.msk.bf16.mxu1 %vm5070_vm4, %v5619_v34  ;;  %v1969_v9 = vadd.f32 %v3731_v11, %v5716_v45 }
 0x242   : > { %v3838_v52 = vpop.f32.mrf.mxu0  ;;  %3589 = vmatmul.mubr.msk.bf16.gmra.mxu0 %vm5062_vm2, %v5546_v46  ;;  %v3733_v29 = vpop.f32.mrf.mxu1 }
 0x243   : > { %v5766_v8 = vadd.f32 %v3837_v32, %v1961_v48  ;;  %2518 = vmatprep.mubr.bf16.mxu0 %v5569_v61  ;;  %v3734_v58 = vadd.f32 %v3733_v29, %v3732_v59  ;;  %v6280_v48 = vld [vmem:[#allocation25_spill] sm:$0xff] }
 0x244   : > { %v3839_v22 = vpop.f32.mrf.mxu0  ;;  %v3735_v39 = vpop.f32.mrf.mxu1 }
 0x245   : > { %v3840_v16 = vadd.f32 %v3839_v22, %v3838_v52  ;;  %v1974_v33 = vadd.f32 %v3734_v58, %v5716_v45 }
 0x246   : > { %v3841_v15 = vpop.f32.mrf.mxu0  ;;  %v3736_v36 = vpop.f32.mrf.mxu1 }
 0x247   : > { %v5770_v35 = vadd.f32 %v3840_v16, %v1966_v30  ;;  %v3737_v25 = vadd.f32 %v3736_v36, %v3735_v39 }
 0x248   : > { %v3842_v19 = vpop.f32.mrf.mxu0  ;;  %v3738_v14 = vpop.f32.mrf.mxu1  ;;  %2366 = vmatmul.mubr.bf16.gmra.mxu1 %v5569_v61 }
 0x249   : > { %v3843_v46 = vadd.f32 %v3842_v19, %v3841_v15  ;;  %3550 = vmatprep.mubr.msk.bf16.mxu1 %vm5070_vm4, %v5637_v31  ;;  %v1977_v17 = vadd.f32 %v3737_v25, %v5716_v45 }
 0x24a   : > { %v3844_v4 = vpop.f32.mrf.mxu0  ;;  %3592 = vmatmul.mubr.msk.bf16.gmra.mxu0 %vm5062_vm2, %v5567_v44  ;;  %v3739_v60 = vpop.f32.mrf.mxu1 }
 0x24b   : > { %v5780_v0 = vadd.f32 %v3843_v46, %v1969_v9  ;;  %2526 = vmatprep.mubr.bf16.mxu0 %v5593_v54  ;;  %v3740_v24 = vadd.f32 %v3739_v60, %v3738_v14  ;;  %v6281_v46 = vmov 0.0|0.0  }
 0x24c   : > { %v3845_v57 = vpop.f32.mrf.mxu0  ;;  %v3741_v61 = vpop.f32.mrf.mxu1 }
 0x24d   : > { %v3846_v3 = vadd.f32 %v3845_v57, %v3844_v4  ;;  %v1982_v52 = vadd.f32 %v3740_v24, %v5716_v45 }
 0x24e   : > { %v3847_v6 = vpop.f32.mrf.mxu0  ;;  %v3742_v23 = vpop.f32.mrf.mxu1 }
 0x24f   : > { %v5784_v18 = vadd.f32 %v3846_v3, %v1974_v33  ;;  %v3743_v27 = vadd.f32 %v3742_v23, %v3741_v61 }
 0x250   : > { %v3848_v49 = vpop.f32.mrf.mxu0  ;;  %v3744_v12 = vpop.f32.mrf.mxu1  ;;  %2374 = vmatmul.mubr.bf16.gmra.mxu1 %v5593_v54 }
 0x251   : > { %v3849_v44 = vadd.f32 %v3848_v49, %v3847_v6  ;;  %3553 = vmatprep.mubr.msk.bf16.mxu1 %vm5070_vm4, %v6279_v40  ;;  %v1985_v15 = vadd.f32 %v3743_v27, %v5716_v45 }
 0x252   : > { %v3850_v26 = vpop.f32.mrf.mxu0  ;;  %3595 = vmatmul.mubr.msk.bf16.gmra.mxu0 %vm5062_vm2, %v5600_v28  ;;  %v3745_v21 = vpop.f32.mrf.mxu1 }
 0x253   : > { %v5794_v11 = vadd.f32 %v3849_v44, %v1977_v17  ;;  %2534 = vmatprep.mubr.bf16.mxu0 %v6280_v48  ;;  %v3746_v32 = vadd.f32 %v3745_v21, %v3744_v12  ;;  %v6282_v17 = vld [vmem:[#allocation23_spill] sm:$0xff] }
 0x254   : > { %v3851_v59 = vpop.f32.mrf.mxu0  ;;  %v3747_v54 = vpop.f32.mrf.mxu1 }
 0x255   : > { %v3852_v29 = vadd.f32 %v3851_v59, %v3850_v26  ;;  %v1990_v60 = vadd.f32 %v3746_v32, %v5716_v45 }
 0x256   : > { %v3853_v58 = vpop.f32.mrf.mxu0  ;;  %v3748_v30 = vpop.f32.mrf.mxu1 }
 0x257   : > { %v5798_v22 = vadd.f32 %v3852_v29, %v1982_v52  ;;  %v3749_v16 = vadd.f32 %v3748_v30, %v3747_v54 }
 0x258   : > { %v3854_v39 = vpop.f32.mrf.mxu0  ;;  %v3750_v36 = vpop.f32.mrf.mxu1  ;;  %2382 = vmatmul.mubr.bf16.gmra.mxu1 %v6280_v48 }
 0x259   : > { %v3855_v28 = vadd.f32 %v3854_v39, %v3853_v58  ;;  %4272 = vmatprep.mubr.msk.bf16.mxu1 %vm5070_vm4, %v5515_v7  ;;  %v1993_v23 = vadd.f32 %v3749_v16, %v5716_v45 }
 0x25a   : > { %v3856_v25 = vpop.f32.mrf.mxu0  ;;  %3598 = vmatmul.mubr.msk.bf16.gmra.mxu0 %vm5062_vm2, %v5617_v10  ;;  %v3751_v9 = vpop.f32.mrf.mxu1 }
 0x25b   : > { %v5808_v19 = vadd.f32 %v3855_v28, %v1985_v15  ;;  %2542 = vmatprep.mubr.bf16.mxu0 %v6281_v46  ;;  %v3752_v14 = vadd.f32 %v3751_v9, %v3750_v36 }
 0x25c   : > { %v3857_v4 = vpop.f32.mrf.mxu0  ;;  %v3753_v57 = vpop.f32.mrf.mxu1 }
 0x25d   : > { %v3858_v24 = vadd.f32 %v3857_v4, %v3856_v25 }
 0x25e   : > { %v3859_v33 = vpop.f32.mrf.mxu0  ;;  %v3754_v61 = vpop.f32.mrf.mxu1 }
 0x25f   : > { %v5812_v3 = vadd.f32 %v3858_v24, %v1990_v60  ;;  %v3755_v10 = vadd.f32 %v3754_v61, %v3753_v57 }
 0x260   : > { %v3860_v6 = vpop.f32.mrf.mxu0  ;;  %v3756_v27 = vpop.f32.mrf.mxu1  ;;  %4273 = vmatmul.mubr.msk.bf16.vlgmr.msra.gmra.mxu1 %vm5070_vm4, %v5541_v43  ;;  %v1998_v43 = vadd.f32 %v3752_v14, %v5716_v45 }
 0x261   : > { %v3861_v7 = vadd.f32 %v3860_v6, %v3859_v33  ;;  %4276 = vmatprep.mubr.msk.bf16.mxu1 %vm5070_vm4, %v5571_v42  ;;  %v2001_v42 = vadd.f32 %v3755_v10, %v5716_v45 }
 0x262   : > { %v3862_v49 = vpop.f32.mrf.mxu0  ;;  %3601 = vmatmul.mubr.msk.bf16.gmra.mxu0 %vm5062_vm2, %v6282_v17  ;;  %v3757_v12 = vpop.f32.mrf.mxu1 }
 0x263   : > { %v5824_v44 = vadd.f32 %v3861_v7, %v1993_v23  ;;  %4256 = vmatprep.mubr.msk.bf16.mxu0 %vm5070_vm4, %v5192_v50  ;;  %v3758_v26 = vadd.f32 %v3757_v12, %v3756_v27 }
 0x264   : > { %v3863_v21 = vpop.f32.mrf.mxu0  ;;  %v3759_v32 = vpop.f32.mrf.mxu1 }
 0x265   : > { %v3864_v48 = vadd.f32 %v3863_v21, %v3862_v49 }
 0x266   : > { %v3865_v59 = vpop.f32.mrf.mxu0  ;;  %v3760_v52 = vpop.f32.mrf.mxu1 }
 0x267   : > { %v5830_v62 = vadd.f32 %v3864_v48, %v1998_v43  ;;  %v3761_v28 = vadd.f32 %v3760_v52, %v3759_v32 }
 0x268   : > { %v3866_v29 = vpop.f32.mrf.mxu0  ;;  %v3762_v58 = vpop.f32.mrf.mxu1  ;;  %4277 = vmatmul.mubr.msk.bf16.gmra.mxu1 %vm5070_vm4, %v5595_v1  ;;  %v2006_v1 = vadd.f32 %v3758_v26, %v5716_v45  ;;  %v6283_v26 = vld [vmem:[#allocation24_spill] sm:$0xff] }
 0x269   : > { %v3867_v54 = vadd.f32 %v3866_v29, %v3865_v59  ;;  %4280 = vmatprep.mubr.msk.bf16.mxu1 %vm5070_vm4, %v5619_v34  ;;  %v2009_v34 = vadd.f32 %v3761_v28, %v5716_v45 }
 0x26a   : > { %v3868_v50 = vpop.f32.mrf.mxu0  ;;  %4257 = vmatmul.mubr.msk.bf16.vlgmr.msra.gmra.mxu0 %vm5070_vm4, %v5232_v20  ;;  %v3763_v16 = vpop.f32.mrf.mxu1 }
 0x26b   : > { %v5842_v30 = vadd.f32 %v3867_v54, %v2001_v42  ;;  %4260 = vmatprep.mubr.msk.bf16.mxu0 %vm5070_vm4, %v5276_v41  ;;  %v3764_v39 = vadd.f32 %v3763_v16, %v3762_v58 }
 0x26c   : > { %v3869_v15 = vpop.f32.mrf.mxu0  ;;  %v3765_v25 = vpop.f32.mrf.mxu1 }
 0x26d   : > { %v3870_v36 = vadd.f32 %v3869_v15, %v3868_v50 }
 0x26e   : > { %v3871_v9 = vpop.f32.mrf.mxu0  ;;  %v3766_v46 = vpop.f32.mrf.mxu1 }
 0x26f   : > { %v5848_v20 = vadd.f32 %v3870_v36, %v2006_v1  ;;  %v3767_v10 = vadd.f32 %v3766_v46, %v3765_v25 }
 0x270   : > { %v3872_v14 = vpop.f32.mrf.mxu0  ;;  %v3768_v60 = vpop.f32.mrf.mxu1  ;;  %4281 = vmatmul.mubr.msk.bf16.gmra.mxu1 %vm5070_vm4, %v5637_v31  ;;  %v2014_v31 = vadd.f32 %v3764_v39, %v5716_v45 }
 0x271   : > { %v3873_v4 = vadd.f32 %v3872_v14, %v3871_v9  ;;  %4284 = vmatprep.mubr.msk.bf16.mxu1 %vm5070_vm4, %v6279_v40  ;;  %v2017_v40 = vadd.f32 %v3767_v10, %v5716_v45 }
 0x272   : > { %v3874_v41 = vpop.f32.mrf.mxu0  ;;  %4261 = vmatmul.mubr.msk.bf16.gmra.mxu0 %vm5070_vm4, %v5320_v13  ;;  %v3769_v57 = vpop.f32.mrf.mxu1 }
 0x273   : > { %v5860_v24 = vadd.f32 %v3873_v4, %v2009_v34  ;;  %4264 = vmatprep.mubr.msk.bf16.mxu0 %vm5070_vm4, %v5368_v63  ;;  %v3770_v33 = vadd.f32 %v3769_v57, %v3768_v60 }
 0x274   : > { %v3875_v61 = vpop.f32.mrf.mxu0  ;;  %v3771_v23 = vpop.f32.mrf.mxu1 }
 0x275   : > { %v3876_v6 = vadd.f32 %v3875_v61, %v3874_v41  ;;  %v2022_v59 = vadd.f32 %v3770_v33, %v5716_v45 }
 0x276   : > { %v3877_v7 = vpop.f32.mrf.mxu0  ;;  %v3772_v27 = vpop.f32.mrf.mxu1 }
 0x277   : > { %v5866_v13 = vadd.f32 %v3876_v6, %v2014_v31  ;;  %v3773_v52 = vadd.f32 %v3772_v27, %v3771_v23 }
 0x278   : > { %v3878_v49 = vpop.f32.mrf.mxu0  ;;  %v3774_v12 = vpop.f32.mrf.mxu1  ;;  %4285 = vmatmul.mubr.msk.bf16.gmra.mxu1 %vm5070_vm4, %v6283_v26 }
 0x279   : > { %v3879_v17 = vadd.f32 %v3878_v49, %v3877_v7 }
 0x27a   : > { %v3880_v63 = vpop.f32.mrf.mxu0  ;;  %4265 = vmatmul.mubr.msk.bf16.gmra.mxu0 %vm5070_vm4, %v5404_v53  ;;  %v3775_v43 = vpop.f32.mrf.mxu1  ;;  %v2025_v53 = vadd.f32 %v3773_v52, %v5716_v45 }
 0x27b   : > { %v5875_v21 = vadd.f32 %v3879_v17, %v2017_v40  ;;  %4268 = vmatprep.mubr.msk.bf16.mxu0 %vm5070_vm4, %v5455_v55  ;;  %v3776_v48 = vadd.f32 %v3775_v43, %v3774_v12 }
 0x27c   : > { %v3881_v32 = vpop.f32.mrf.mxu0  ;;  %v3777_v42 = vpop.f32.mrf.mxu1 }
 0x27d   : > { %v3882_v29 = vadd.f32 %v3881_v32, %v3880_v63  ;;  %v2030_v9 = vadd.f32 %v3776_v48, %v5716_v45 }
 0x27e   : > { %v3883_v54 = vpop.f32.mrf.mxu0  ;;  %v3778_v50 = vpop.f32.mrf.mxu1 }
 0x27f   : > { %v5881_v58 = vadd.f32 %v3882_v29, %v2022_v59  ;;  %v3779_v46 = vadd.f32 %v3778_v50, %v3777_v42 }
 0x280   : > { %v3884_v16 = vpop.f32.mrf.mxu0  ;;  %v3780_v15 = vpop.f32.mrf.mxu1 }
 0x281   : > { %v3885_v39 = vadd.f32 %v3884_v16, %v3883_v54  ;;  %v2033_v33 = vadd.f32 %v3779_v46, %v5716_v45 }
 0x282   : > { %v3886_v1 = vpop.f32.mrf.mxu0  ;;  %4269 = vmatmul.mubr.msk.bf16.gmra.mxu0 %vm5070_vm4, %v5483_v47  ;;  %v3781_v28 = vpop.f32.mrf.mxu1 }
 0x283   : > { %v5887_v55 = vadd.f32 %v3885_v39, %v2025_v53  ;;  %v3782_v36 = vadd.f32 %v3781_v28, %v3780_v15 }
 0x284   : > { %v3887_v25 = vpop.f32.mrf.mxu0  ;;  %v3783_v34 = vpop.f32.mrf.mxu1 }
 0x285   : > { %v3888_v14 = vadd.f32 %v3887_v25, %v3886_v1  ;;  %v2038_v7 = vadd.f32 %v3782_v36, %v5716_v45 }
 0x286   : > { %v3889_v4 = vpop.f32.mrf.mxu0  ;;  %v3784_v41 = vpop.f32.mrf.mxu1 }
 0x287   : > { %v5890_v60 = vadd.f32 %v3888_v14, %v2030_v9  ;;  %v3785_v27 = vadd.f32 %v3784_v41, %v3783_v34  ;;  %v4560_v34 = vld [vmem:[#allocation10 + $0x38] sm:$0xff]  }
 0x288   : > { %v3890_v57 = vpop.f32.mrf.mxu0  ;;  %v3786_v2 = vpop.f32.mrf.mxu1  ;;  %4288 = vmatprep.subr.bf16.mxu1 %v4560_v34 }
 0x289   : > { %v3891_v61 = vadd.f32 %v3890_v57, %v3889_v4  ;;  %v2041_v43 = vadd.f32 %v3785_v27, %v5716_v45  ;;  %4289 = vmatpush3.bf16.msra.mxu1 %v4560_v34 }
 0x28a   : > { %v3892_v47 = vpop.f32.mrf.mxu0  ;;  %v3787_v10 = vpop.f32.mrf.mxu1 }
 0x28b   : > { %v5893_v31 = vadd.f32 %v3891_v61, %v2033_v33  ;;  %v3788_v6 = vadd.f32 %v3787_v10, %v3786_v2 }
 0x28c   : > { %v3893_v23 = vpop.f32.mrf.mxu0  ;;  %v3789_v40 = vpop.f32.mrf.mxu1 }
 0x28d   : > { %v3894_v49 = vadd.f32 %v3893_v23, %v3892_v47  ;;  %v2046_v50 = vadd.f32 %v3788_v6, %v5716_v45  ;;  %v4561_v23 = vld [vmem:[#allocation10 + $0x30] sm:$0xff]  }
 0x28e   : > { %v3895_v17 = vpop.f32.mrf.mxu0  ;;  %v3790_v26 = vpop.f32.mrf.mxu1  ;;  %4290 = vmatprep.subr.bf16.mxu1 %v4561_v23 }
 0x28f   : > { %v5896_v12 = vadd.f32 %v3894_v49, %v2038_v7  ;;  %v3791_v16 = vadd.f32 %v3790_v26, %v3789_v40  ;;  %4291 = vmatpush3.bf16.msra.mxu1 %v4561_v23 }
 0x290   : > { %v3896_v63 = vpop.f32.mrf.mxu0  ;;  %v3792_v32 = vpop.f32.mrf.mxu1 }
 0x291   : > { %v3897_v48 = vadd.f32 %v3896_v63, %v3895_v17  ;;  %v2049_v25 = vadd.f32 %v3791_v16, %v5716_v45 }
 0x292   : > { %v3898_v59 = vpop.f32.mrf.mxu0  ;;  %v3793_v29 = vpop.f32.mrf.mxu1 }
 0x293   : > { %v5899_v52 = vadd.f32 %v3897_v48, %v2041_v43  ;;  %v3794_v42 = vadd.f32 %v3793_v29, %v3792_v32  ;;  %v4562_v43 = vld [vmem:[#allocation10 + $0x28] sm:$0xff]  }
 0x294   : > { %v3899_v54 = vpop.f32.mrf.mxu0  ;;  %v3795_v39 = vpop.f32.mrf.mxu1  ;;  %4292 = vmatprep.subr.bf16.mxu1 %v4562_v43 }
 0x295   : > { %v3900_v53 = vadd.f32 %v3899_v54, %v3898_v59  ;;  %v2054_v61 = vadd.f32 %v3794_v42, %v5716_v45  ;;  %4293 = vmatpush3.bf16.msra.mxu1 %v4562_v43 }
 0x296   : > { %v3901_v15 = vpop.f32.mrf.mxu0  ;;  %v3796_v28 = vpop.f32.mrf.mxu1 }
 0x297   : > { %v5902_v1 = vadd.f32 %v3900_v53, %v2046_v50  ;;  %v3797_v2 = vadd.f32 %v3796_v28, %v3795_v39 }
 0x298   : > { %v3902_v36 = vpop.f32.mrf.mxu0  ;;  %v3798_v46 = vpop.f32.mrf.mxu1 }
 0x299   : > { %v3903_v9 = vadd.f32 %v3902_v36, %v3901_v15  ;;  %v2057_v40 = vadd.f32 %v3797_v2, %v5716_v45  ;;  %v4563_v15 = vld [vmem:[#allocation10 + $0x20] sm:$0xff]  }
 0x29a   : > { %v3904_v14 = vpop.f32.mrf.mxu0  ;;  %v3799_v41 = vpop.f32.mrf.mxu1  ;;  %4294 = vmatprep.subr.bf16.mxu1 %v4563_v15 }
 0x29b   : > { %v5905_v4 = vadd.f32 %v3903_v9, %v2049_v25  ;;  %v3800_v57 = vadd.f32 %v3799_v41, %v3798_v46  ;;  %4295 = vmatpush3.bf16.msra.mxu1 %v4563_v15  ;;  %v4567_v15 = vld [vmem:[#allocation10] sm:$0xff]  }
 0x29c   : > { %v3905_v33 = vpop.f32.mrf.mxu0  ;;  %v3801_v10 = vpop.f32.mrf.mxu1 }
 0x29d   : > { %v3906_v47 = vadd.f32 %v3905_v33, %v3904_v14  ;;  %v2062_v42 = vadd.f32 %v3800_v57, %v5716_v45  ;;  %v4564_v33 = vld [vmem:[#allocation10 + $0x18] sm:$0xff]  }
 0x29e   : > { %v3907_v6 = vpop.f32.mrf.mxu0  ;;  %v3802_v27 = vpop.f32.mrf.mxu1  ;;  %4296 = vmatprep.subr.bf16.mxu1 %v4564_v33 }
 0x29f   : > { %v5908_v7 = vadd.f32 %v3906_v47, %v2054_v61  ;;  %v3803_v54 = vadd.f32 %v3802_v27, %v3801_v10  ;;  %4297 = vmatpush3.bf16.msra.mxu1 %v4564_v33 }
 0x2a0   : > { %v3908_v49 = vpop.f32.mrf.mxu0  ;;  %v3932_v26 = vpop.f32.mrf.mxu1 }
 0x2a1   : > { %v3909_v17 = vadd.f32 %v3908_v49, %v3907_v6  ;;  %v2065_v46 = vadd.f32 %v3803_v54, %v5716_v45  ;;  %v4565_v45 = vld [vmem:[#allocation10 + $0x10] sm:$0xff]  }
 0x2a2   : > { %v3910_v63 = vpop.f32.mrf.mxu0  ;;  %v3933_v32 = vpop.f32.mrf.mxu1  ;;  %4298 = vmatprep.subr.bf16.mxu1 %v4565_v45 }
 0x2a3   : > { %v5911_v48 = vadd.f32 %v3909_v17, %v2057_v40  ;;  %v3934_v59 = vadd.f32 %v3933_v32, %v3932_v26  ;;  %4299 = vmatpush3.bf16.msra.mxu1 %v4565_v45 }
 0x2a4   : > { %v3911_v29 = vpop.f32.mrf.mxu0  ;;  %v3935_v16 = vpop.f32.mrf.mxu1 }
 0x2a5   : > { %v3912_v50 = vadd.f32 %v3911_v29, %v3910_v63  ;;  %v2264_v53 = vadd.f32 %v3934_v59, %v5728_v37  ;;  %v4566_v59 = vld [vmem:[#allocation10 + $0x8] sm:$0xff]  }
 0x2a6   : > { %v3913_v39 = vpop.f32.mrf.mxu0  ;;  %v3936_v36 = vpop.f32.mrf.mxu1  ;;  %4300 = vmatprep.subr.bf16.mxu1 %v4566_v59 }
 0x2a7   : > { %v5915_v28 = vadd.f32 %v3912_v50, %v2062_v42  ;;  %v3937_v25 = vadd.f32 %v3936_v36, %v3935_v16  ;;  %4301 = vmatpush3.bf16.msra.mxu1 %v4566_v59 }
 0x2a8   : > { %v3914_v9 = vpop.f32.mrf.mxu0  ;;  %v3938_v34 = vpop.f32.mrf.mxu1  ;;  %4302 = vmatprep.subr.bf16.mxu1 %v4567_v15 }
 0x2a9   : > { %v3915_v14 = vadd.f32 %v3914_v9, %v3913_v39  ;;  %v2267_v41 = vadd.f32 %v3937_v25, %v5731_v51 }
 0x2aa   : > { %v4044_v57 = vpop.f32.mrf.mxu0  ;;  %v3939_v37 = vpop.f32.mrf.mxu1 }
 0x2ab   : > { %v5919_v61 = vadd.f32 %v3915_v14, %v2065_v46  ;;  %v3940_v2 = vadd.f32 %v3939_v37, %v3938_v34  ;;  %4303 = vmatpush3.bf16.msra.mxu1 %v4567_v15 }
 0x2ac   : > { %v4045_v47 = vpop.f32.mrf.mxu0  ;;  %v3941_v6 = vpop.f32.mrf.mxu1 }
 0x2ad   : > { %v4046_v10 = vadd.f32 %v4045_v47, %v4044_v57  ;;  %v2272_v23 = vadd.f32 %v3940_v2, %v5742_v5 }
 0x2ae   : > { %v4047_v27 = vpop.f32.mrf.mxu0  ;;  %v3942_v49 = vpop.f32.mrf.mxu1 }
 0x2af   : > { %v5922_v40 = vadd.f32 %v4046_v10, %v2264_v53  ;;  %v3943_v17 = vadd.f32 %v3942_v49, %v3941_v6 }
 0x2b0   : > { %v4048_v51 = vpop.f32.mrf.mxu0  ;;  %v3944_v63 = vpop.f32.mrf.mxu1 }
 0x2b1   : > { %v4049_v26 = vadd.f32 %v4048_v51, %v4047_v27  ;;  %v2275_v43 = vadd.f32 %v3943_v17, %v5752_v56 }
 0x2b2   : > { %v4050_v32 = vpop.f32.mrf.mxu0  ;;  %v3945_v29 = vpop.f32.mrf.mxu1 }
 0x2b3   : > { %v5925_v42 = vadd.f32 %v4049_v26, %v2267_v41  ;;  %v3946_v54 = vadd.f32 %v3945_v29, %v3944_v63 }
 0x2b4   : > { %v4051_v5 = vpop.f32.mrf.mxu0  ;;  %v3947_v16 = vpop.f32.mrf.mxu1 }
 0x2b5   : > { %v4052_v50 = vadd.f32 %v4051_v5, %v4050_v32  ;;  %v2280_v53 = vadd.f32 %v3946_v54, %v5756_v38 }
 0x2b6   : > { %v4053_v39 = vpop.f32.mrf.mxu0  ;;  %v3948_v36 = vpop.f32.mrf.mxu1 }
 0x2b7   : > { %v5928_v25 = vadd.f32 %v4052_v50, %v2272_v23  ;;  %v3949_v9 = vadd.f32 %v3948_v36, %v3947_v16 }
 0x2b8   : > { %v4054_v56 = vpop.f32.mrf.mxu0  ;;  %v3950_v14 = vpop.f32.mrf.mxu1 }
 0x2b9   : > { %v4055_v46 = vadd.f32 %v4054_v56, %v4053_v39  ;;  %v2283_v34 = vadd.f32 %v3949_v9, %v5766_v8 }
 0x2ba   : > { %v4056_v41 = vpop.f32.mrf.mxu0  ;;  %v3951_v57 = vpop.f32.mrf.mxu1 }
 0x2bb   : > { %v5931_v33 = vadd.f32 %v4055_v46, %v2275_v43  ;;  %v3952_v37 = vadd.f32 %v3951_v57, %v3950_v14 }
 0x2bc   : > { %v4057_v2 = vpop.f32.mrf.mxu0  ;;  %v3953_v47 = vpop.f32.mrf.mxu1 }
 0x2bd   : > { %v4058_v38 = vadd.f32 %v4057_v2, %v4056_v41  ;;  %v2288_v10 = vadd.f32 %v3952_v37, %v5770_v35 }
 0x2be   : > { %v4059_v6 = vpop.f32.mrf.mxu0  ;;  %v3954_v23 = vpop.f32.mrf.mxu1 }
 0x2bf   : > { %v5934_v27 = vadd.f32 %v4058_v38, %v2280_v53  ;;  %v3955_v45 = vadd.f32 %v3954_v23, %v3953_v47 }
 0x2c0   : > { %v4060_v49 = vpop.f32.mrf.mxu0  ;;  %v3956_v51 = vpop.f32.mrf.mxu1 }
 0x2c1   : > { %v4061_v17 = vadd.f32 %v4060_v49, %v4059_v6  ;;  %v2291_v8 = vadd.f32 %v3955_v45, %v5780_v0 }
 0x2c2   : > { %v4062_v26 = vpop.f32.mrf.mxu0  ;;  %v3957_v63 = vpop.f32.mrf.mxu1 }
 0x2c3   : > { %v5937_v43 = vadd.f32 %v4061_v17, %v2283_v34  ;;  %v3958_v32 = vadd.f32 %v3957_v63, %v3956_v51 }
 0x2c4   : > { %v4063_v59 = vpop.f32.mrf.mxu0  ;;  %v3959_v54 = vpop.f32.mrf.mxu1 }
 0x2c5   : > { %v4064_v29 = vadd.f32 %v4063_v59, %v4062_v26  ;;  %v2296_v35 = vadd.f32 %v3958_v32, %v5784_v18 }
 0x2c6   : > { %v4065_v5 = vpop.f32.mrf.mxu0  ;;  %v3960_v50 = vpop.f32.mrf.mxu1 }
 0x2c7   : > { %v5940_v16 = vadd.f32 %v4064_v29, %v2288_v10  ;;  %v3961_v53 = vadd.f32 %v3960_v50, %v3959_v54 }
 0x2c8   : > { %v4066_v39 = vpop.f32.mrf.mxu0  ;;  %v3962_v36 = vpop.f32.mrf.mxu1 }
 0x2c9   : > { %v4067_v15 = vadd.f32 %v4066_v39, %v4065_v5  ;;  %v2299_v0 = vadd.f32 %v3961_v53, %v5794_v11 }
 0x2ca   : > { %v4068_v9 = vpop.f32.mrf.mxu0  ;;  %v3963_v56 = vpop.f32.mrf.mxu1 }
 0x2cb   : > { %v5943_v46 = vadd.f32 %v4067_v15, %v2291_v8  ;;  %v3964_v14 = vadd.f32 %v3963_v56, %v3962_v36 }
 0x2cc   : > { %v4069_v34 = vpop.f32.mrf.mxu0  ;;  %v3965_v57 = vpop.f32.mrf.mxu1 }
 0x2cd   : > { %v4070_v41 = vadd.f32 %v4069_v34, %v4068_v9  ;;  %v2304_v18 = vadd.f32 %v3964_v14, %v5798_v22 }
 0x2ce   : > { %v4071_v37 = vpop.f32.mrf.mxu0  ;;  %v3966_v2 = vpop.f32.mrf.mxu1 }
 0x2cf   : > { %v5946_v38 = vadd.f32 %v4070_v41, %v2296_v35  ;;  %v3967_v47 = vadd.f32 %v3966_v2, %v3965_v57 }
 0x2d0   : > { %v4072_v10 = vpop.f32.mrf.mxu0  ;;  %v3968_v23 = vpop.f32.mrf.mxu1 }
 0x2d1   : > { %v4073_v6 = vadd.f32 %v4072_v10, %v4071_v37  ;;  %v2307_v11 = vadd.f32 %v3967_v47, %v5808_v19 }
 0x2d2   : > { %v4074_v45 = vpop.f32.mrf.mxu0  ;;  %v3969_v49 = vpop.f32.mrf.mxu1 }
 0x2d3   : > { %v5949_v17 = vadd.f32 %v4073_v6, %v2299_v0  ;;  %v3970_v51 = vadd.f32 %v3969_v49, %v3968_v23 }
 0x2d4   : > { %v4075_v8 = vpop.f32.mrf.mxu0  ;;  %v3971_v63 = vpop.f32.mrf.mxu1 }
 0x2d5   : > { %v4076_v26 = vadd.f32 %v4075_v8, %v4074_v45  ;;  %v2312_v22 = vadd.f32 %v3970_v51, %v5812_v3 }
 0x2d6   : > { %v4077_v32 = vpop.f32.mrf.mxu0  ;;  %v3972_v59 = vpop.f32.mrf.mxu1 }
 0x2d7   : > { %v5952_v29 = vadd.f32 %v4076_v26, %v2304_v18  ;;  %v3973_v54 = vadd.f32 %v3972_v59, %v3971_v63 }
 0x2d8   : > { %v4078_v35 = vpop.f32.mrf.mxu0  ;;  %v3974_v50 = vpop.f32.mrf.mxu1 }
 0x2d9   : > { %v4079_v5 = vadd.f32 %v4078_v35, %v4077_v32  ;;  %v2315_v19 = vadd.f32 %v3973_v54, %v5824_v44 }
 0x2da   : > { %v4080_v53 = vpop.f32.mrf.mxu0  ;;  %v3975_v39 = vpop.f32.mrf.mxu1 }
 0x2db   : > { %v5955_v15 = vadd.f32 %v4079_v5, %v2307_v11  ;;  %v3976_v36 = vadd.f32 %v3975_v39, %v3974_v50 }
 0x2dc   : > { %v4081_v0 = vpop.f32.mrf.mxu0  ;;  %v3977_v56 = vpop.f32.mrf.mxu1 }
 0x2dd   : > { %v4082_v9 = vadd.f32 %v4081_v0, %v4080_v53  ;;  %v2320_v3 = vadd.f32 %v3976_v36, %v5830_v62 }
 0x2de   : > { %v4083_v14 = vpop.f32.mrf.mxu0  ;;  %v3978_v34 = vpop.f32.mrf.mxu1 }
 0x2df   : > { %v5958_v41 = vadd.f32 %v4082_v9, %v2312_v22  ;;  %v3979_v57 = vadd.f32 %v3978_v34, %v3977_v56 }
 0x2e0   : > { %v4084_v18 = vpop.f32.mrf.mxu0  ;;  %v3980_v2 = vpop.f32.mrf.mxu1 }
 0x2e1   : > { %v4085_v37 = vadd.f32 %v4084_v18, %v4083_v14  ;;  %v2323_v44 = vadd.f32 %v3979_v57, %v5842_v30 }
 0x2e2   : > { %v4086_v47 = vpop.f32.mrf.mxu0  ;;  %v3981_v10 = vpop.f32.mrf.mxu1 }
 0x2e3   : > { %v5961_v6 = vadd.f32 %v4085_v37, %v2315_v19  ;;  %v3982_v23 = vadd.f32 %v3981_v10, %v3980_v2 }
 0x2e4   : > { %v4087_v11 = vpop.f32.mrf.mxu0  ;;  %v3983_v49 = vpop.f32.mrf.mxu1 }
 0x2e5   : > { %v4088_v45 = vadd.f32 %v4087_v11, %v4086_v47  ;;  %v2328_v62 = vadd.f32 %v3982_v23, %v5848_v20 }
 0x2e6   : > { %v4089_v51 = vpop.f32.mrf.mxu0  ;;  %v3984_v8 = vpop.f32.mrf.mxu1 }
 0x2e7   : > { %v5964_v26 = vadd.f32 %v4088_v45, %v2320_v3  ;;  %v3985_v5 = vadd.f32 %v3984_v8, %v3983_v49 }
 0x2e8   : > { %v4090_v63 = vpop.f32.mrf.mxu0  ;;  %v3986_v32 = vpop.f32.mrf.mxu1 }
 0x2e9   : > { %v4091_v22 = vadd.f32 %v4090_v63, %v4089_v51  ;;  %v2331_v0 = vadd.f32 %v3985_v5, %v5860_v24 }
 0x2ea   : > { %v4092_v59 = vpop.f32.mrf.mxu0  ;;  %v3987_v54 = vpop.f32.mrf.mxu1 }
 0x2eb   : > { %v5966_v30 = vadd.f32 %v4091_v22, %v2323_v44  ;;  %v3988_v9 = vadd.f32 %v3987_v54, %v3986_v32 }
 0x2ec   : > { %v4093_v35 = vpop.f32.mrf.mxu0  ;;  %v3989_v19 = vpop.f32.mrf.mxu1 }
 0x2ed   : > { %v4094_v50 = vadd.f32 %v4093_v35, %v4092_v59  ;;  %v2336_v37 = vadd.f32 %v3988_v9, %v5866_v13 }
 0x2ee   : > { %v4095_v53 = vpop.f32.mrf.mxu0  ;;  %v3990_v39 = vpop.f32.mrf.mxu1 }
 0x2ef   : > { %v5968_v36 = vadd.f32 %v4094_v50, %v2328_v62  ;;  %v3991_v2 = vadd.f32 %v3990_v39, %v3989_v19 }
 0x2f0   : > { %v4096_v20 = vpop.f32.mrf.mxu0  ;;  %v3992_v3 = vpop.f32.mrf.mxu1 }
 0x2f1   : > { %v4097_v56 = vadd.f32 %v4096_v20, %v4095_v53  ;;  %v2339_v24 = vadd.f32 %v3991_v2, %v5875_v21 }
 0x2f2   : > { %v4098_v14 = vpop.f32.mrf.mxu0  ;;  %v3993_v34 = vpop.f32.mrf.mxu1 }
 0x2f3   : > { %v5971_v57 = vadd.f32 %v4097_v56, %v2331_v0  ;;  %v3994_v49 = vadd.f32 %v3993_v34, %v3992_v3 }
 0x2f4   : > { %v4099_v18 = vpop.f32.mrf.mxu0  ;;  %v3995_v47 = vpop.f32.mrf.mxu1 }
 0x2f5   : > { %v4100_v44 = vadd.f32 %v4099_v18, %v4098_v14  ;;  %v2344_v13 = vadd.f32 %v3994_v49, %v5881_v58 }
 0x2f6   : > { %v4101_v10 = vpop.f32.mrf.mxu0  ;;  %v3996_v23 = vpop.f32.mrf.mxu1 }
 0x2f7   : > { %v5974_v11 = vadd.f32 %v4100_v44, %v2336_v37  ;;  %v3997_v59 = vadd.f32 %v3996_v23, %v3995_v47 }
 0x2f8   : > { %v4102_v45 = vpop.f32.mrf.mxu0  ;;  %v3998_v51 = vpop.f32.mrf.mxu1 }
 0x2f9   : > { %v4103_v62 = vadd.f32 %v4102_v45, %v4101_v10  ;;  %v2347_v21 = vadd.f32 %v3997_v59, %v5887_v55 }
 0x2fa   : > { %v4104_v8 = vpop.f32.mrf.mxu0  ;;  %v3999_v63 = vpop.f32.mrf.mxu1 }
 0x2fb   : > { %v5977_v22 = vadd.f32 %v4103_v62, %v2339_v24  ;;  %v4000_v39 = vadd.f32 %v3999_v63, %v3998_v51 }
 0x2fc   : > { %v4105_v32 = vpop.f32.mrf.mxu0  ;;  %v4001_v35 = vpop.f32.mrf.mxu1 }
 0x2fd   : > { %v4106_v54 = vadd.f32 %v4105_v32, %v4104_v8  ;;  %v2352_v58 = vadd.f32 %v4000_v39, %v5890_v60 }
 0x2fe   : > { %v4107_v5 = vpop.f32.mrf.mxu0  ;;  %v4002_v50 = vpop.f32.mrf.mxu1 }
 0x2ff   : > { %v5980_v19 = vadd.f32 %v4106_v54, %v2344_v13  ;;  %v4003_v34 = vadd.f32 %v4002_v50, %v4001_v35 }
 0x300   : > { %v4108_v53 = vpop.f32.mrf.mxu0  ;;  %v4004_v0 = vpop.f32.mrf.mxu1 }
 0x301   : > { %v4109_v20 = vadd.f32 %v4108_v53, %v4107_v5  ;;  %v2355_v55 = vadd.f32 %v4003_v34, %v5893_v31 }
 0x302   : > { %v4110_v9 = vpop.f32.mrf.mxu0  ;;  %v4005_v56 = vpop.f32.mrf.mxu1 }
 0x303   : > { %v5983_v3 = vadd.f32 %v4109_v20, %v2347_v21  ;;  %v4006_v23 = vadd.f32 %v4005_v56, %v4004_v0 }
 0x304   : > { %v4111_v14 = vpop.f32.mrf.mxu0  ;;  %v4007_v37 = vpop.f32.mrf.mxu1 }
 0x305   : > { %v4112_v18 = vadd.f32 %v4111_v14, %v4110_v9  ;;  %v2360_v60 = vadd.f32 %v4006_v23, %v5896_v12 }
 0x306   : > { %v4113_v2 = vpop.f32.mrf.mxu0  ;;  %v4008_v44 = vpop.f32.mrf.mxu1 }
 0x307   : > { %v5986_v47 = vadd.f32 %v4112_v18, %v2352_v58  ;;  %v4009_v63 = vadd.f32 %v4008_v44, %v4007_v37 }
 0x308   : > { %v4114_v10 = vpop.f32.mrf.mxu0  ;;  %v4010_v24 = vpop.f32.mrf.mxu1 }
 0x309   : > { %v4115_v45 = vadd.f32 %v4114_v10, %v4113_v2  ;;  %v2363_v31 = vadd.f32 %v4009_v63, %v5899_v52 }
 0x30a   : > { %v4116_v49 = vpop.f32.mrf.mxu0  ;;  %v4011_v62 = vpop.f32.mrf.mxu1 }
 0x30b   : > { %v5989_v51 = vadd.f32 %v4115_v45, %v2355_v55  ;;  %v4012_v50 = vadd.f32 %v4011_v62, %v4010_v24 }
 0x30c   : > { %v4117_v8 = vpop.f32.mrf.mxu0  ;;  %v4013_v13 = vpop.f32.mrf.mxu1 }
 0x30d   : > { %v4118_v32 = vadd.f32 %v4117_v8, %v4116_v49  ;;  %v2368_v12 = vadd.f32 %v4012_v50, %v5902_v1 }
 0x30e   : > { %v4119_v59 = vpop.f32.mrf.mxu0  ;;  %v4014_v54 = vpop.f32.mrf.mxu1 }
 0x30f   : > { %v5992_v35 = vadd.f32 %v4118_v32, %v2360_v60  ;;  %v4015_v56 = vadd.f32 %v4014_v54, %v4013_v13 }
 0x310   : > { %v4120_v5 = vpop.f32.mrf.mxu0  ;;  %v4016_v21 = vpop.f32.mrf.mxu1 }
 0x311   : > { %v4121_v53 = vadd.f32 %v4120_v5, %v4119_v59  ;;  %v2371_v52 = vadd.f32 %v4015_v56, %v5905_v4 }
 0x312   : > { %v4122_v39 = vpop.f32.mrf.mxu0  ;;  %v4017_v20 = vpop.f32.mrf.mxu1 }
 0x313   : > { %v5995_v0 = vadd.f32 %v4121_v53, %v2363_v31  ;;  %v4018_v44 = vadd.f32 %v4017_v20, %v4016_v21 }
 0x314   : > { %v4123_v9 = vpop.f32.mrf.mxu0  ;;  %v4019_v58 = vpop.f32.mrf.mxu1 }
 0x315   : > { %v4124_v14 = vadd.f32 %v4123_v9, %v4122_v39  ;;  %v2376_v1 = vadd.f32 %v4018_v44, %v5908_v7 }
 0x316   : > { %v4125_v34 = vpop.f32.mrf.mxu0  ;;  %v4020_v18 = vpop.f32.mrf.mxu1 }
 0x317   : > { %v5998_v37 = vadd.f32 %v4124_v14, %v2368_v12  ;;  %v4021_v62 = vadd.f32 %v4020_v18, %v4019_v58 }
 0x318   : > { %v4126_v2 = vpop.f32.mrf.mxu0  ;;  %v4022_v55 = vpop.f32.mrf.mxu1 }
 0x319   : > { %v4127_v10 = vadd.f32 %v4126_v2, %v4125_v34  ;;  %v2379_v59 = vadd.f32 %v4021_v62, %v5911_v48 }
 0x31a   : > { %v4128_v23 = vpop.f32.mrf.mxu0  ;;  %v4023_v45 = vpop.f32.mrf.mxu1 }
 0x31b   : > { %v6001_v24 = vadd.f32 %v4127_v10, %v2371_v52  ;;  %v4024_v54 = vadd.f32 %v4023_v45, %v4022_v55 }
 0x31c   : > { %v4129_v49 = vpop.f32.mrf.mxu0  ;;  %v6004_v60 = vpop.f32.mrf.mxu1 }
 0x31d   : > { %v4130_v8 = vadd.f32 %v4129_v49, %v4128_v23  ;;  %v2384_v20 = vadd.f32 %v4024_v54, %v5915_v28 }
 0x31e   : > { %v4131_v63 = vpop.f32.mrf.mxu0  ;;  %v6006_v32 = vpop.f32.mrf.mxu1 }
 0x31f   : > { %v6008_v13 = vadd.f32 %v4130_v8, %v2376_v1 }
 0x320   : > { %v4132_v4 = vpop.f32.mrf.mxu0  ;;  %v4274_v31 = vpop.f32.mrf.mxu1 }
 0x321   : > { %v4133_v5 = vadd.f32 %v4132_v4, %v4131_v63  ;;  %v2658_v7 = vadd.f32 %v4274_v31, %v5974_v11 }
 0x322   : > { %v4134_v50 = vpop.f32.mrf.mxu0  ;;  %v2649_v53 = vpop.f32.mrf.mxu1 }
 0x323   : > { %v6011_v21 = vadd.f32 %v4133_v5, %v2379_v59  ;;  %v2650_v56 = vadd.f32 %v2649_v53, %v5968_v36  ;;  %v2730_v18 = vmax.f32 %v2658_v7, 0.0 }
 0x324   : > { %v4135_v39 = vpop.f32.mrf.mxu0  ;;  %v4275_v12 = vpop.f32.mrf.mxu1 }
 0x325   : > { %v4136_v9 = vadd.f32 %v4135_v39, %v4134_v50  ;;  %v2661_v14 = vadd.f32 %v4275_v12, %v5977_v22  ;;  %v2728_v11 = vmax.f32 %v2650_v56, 0.0 }
 0x326   : > { %v4137_v58 = vpop.f32.mrf.mxu0  ;;  %v2652_v48 = vpop.f32.mrf.mxu1 }
 0x327   : > { %v6017_v34 = vadd.f32 %v4136_v9, %v2384_v20  ;;  %v2731_v2 = vmax.f32 %v2661_v14, 0.0  ;;  %v2653_v52 = vadd.f32 %v2652_v48, %v5971_v57 }
 0x328   : > { %v4138_v44 = vpop.f32.mrf.mxu0  ;;  %v4278_v10 = vpop.f32.mrf.mxu1 }
 0x329   : > { %v6020_v55 = vpack.c.bf16 %v2731_v2, %v2730_v18  ;;  %v2729_v28 = vmax.f32 %v2653_v52, 0.0  ;;  %v2674_v36 = vadd.f32 %v4278_v10, %v5986_v47 }
 0x32a   : > { %v4258_v23 = vpop.f32.mrf.mxu0  ;;  %v2665_v45 = vpop.f32.mrf.mxu1 }
 0x32b   : > { %v6022_v49 = vpack.c.bf16 %v2729_v28, %v2728_v11  ;;  %v2594_v1 = vadd.f32 %v4258_v23, %v5928_v25  ;;  %v2666_v8 = vadd.f32 %v2665_v45, %v5980_v19  ;;  %v2734_v5 = vmax.f32 %v2674_v36, 0.0 }
 0x32c   : > { %v2585_v22 = vpop.f32.mrf.mxu0  ;;  %v4279_v62 = vpop.f32.mrf.mxu1 }
 0x32d   : > { %v2677_v57 = vadd.f32 %v4279_v62, %v5989_v51  ;;  %v2586_v4 = vadd.f32 %v2585_v22, %v5922_v40  ;;  %v2714_v47 = vmax.f32 %v2594_v1, 0.0  ;;  %v2732_v20 = vmax.f32 %v2666_v8, 0.0 }
 0x32e   : > { %v4259_v63 = vpop.f32.mrf.mxu0  ;;  %v2668_v54 = vpop.f32.mrf.mxu1 }
 0x32f   : > { %v2597_v59 = vadd.f32 %v4259_v63, %v5931_v33  ;;  %v2735_v31 = vmax.f32 %v2677_v57, 0.0  ;;  %v2669_v50 = vadd.f32 %v2668_v54, %v5983_v3  ;;  %v2712_v12 = vmax.f32 %v2586_v4, 0.0 }
 0x330   : > { %v2588_v53 = vpop.f32.mrf.mxu0  ;;  %v4282_v39 = vpop.f32.mrf.mxu1 }
 0x331   : > { %v2715_v7 = vmax.f32 %v2597_v59, 0.0  ;;  %v2589_v25 = vadd.f32 %v2588_v53, %v5925_v42  ;;  %v6032_v19 = vpack.c.bf16 %v2735_v31, %v2734_v5  ;;  %v2733_v51 = vmax.f32 %v2669_v50, 0.0 }
 0x332   : > { %v4262_v9 = vpop.f32.mrf.mxu0  ;;  %v2681_v33 = vpop.f32.mrf.mxu1  ;;  %v2690_v48 = vadd.f32 %v4282_v39, %v5998_v37  ;;  %v4027_v42 = vadd.f32 %v6006_v32, %v6004_v60  ;;  %v4139_v37 = vadd.f32 %v4138_v44, %v4137_v58 }
 0x333   : > { %v2745_v40 = vpack.c.bf16 %v2715_v7, %v2714_v47  ;;  %v2713_v56 = vmax.f32 %v2589_v25, 0.0  ;;  %v6034_v14 = vpack.c.bf16 %v2733_v51, %v2732_v20  ;;  %v2610_v2 = vadd.f32 %v4262_v9, %v5940_v16 }
 0x334   : > { %v2601_v3 = vpop.f32.mrf.mxu0  ;;  %v4283_v52 = vpop.f32.mrf.mxu1  ;;  %v2682_v10 = vadd.f32 %v2681_v33, %v5992_v35  ;;  %v2738_v22 = vmax.f32 %v2690_v48, 0.0 }
 0x335   : > { %v2744_v18 = vpack.c.bf16 %v2713_v56, %v2712_v12  ;;  %v2693_v11 = vadd.f32 %v4283_v52, %v6001_v24  ;;  %v2602_v23 = vadd.f32 %v2601_v3, %v5934_v27  ;;  %v2718_v8 = vmax.f32 %v2610_v2, 0.0 }
 0x336   : > { %v4263_v28 = vpop.f32.mrf.mxu0  ;;  %v2684_v36 = vpop.f32.mrf.mxu1  ;;  %v2387_v24 = vadd.f32 %v4027_v42, %v5919_v61  ;;  %v2736_v57 = vmax.f32 %v2682_v10, 0.0 }
 0x337   : > { %v2613_v45 = vadd.f32 %v4263_v28, %v5943_v46  ;;  %4304 = vmatprep.mubr.bf16.mxu1 %v2744_v18  ;;  %v2739_v1 = vmax.f32 %v2693_v11, 0.0  ;;  %v2685_v16 = vadd.f32 %v2684_v36, %v5995_v0  ;;  %v2716_v4 = vmax.f32 %v2602_v23, 0.0 }
 0x338   : > { %v2604_v62 = vpop.f32.mrf.mxu0  ;;  %4305 = vmatmul.mubr.bf16.vlgmr.msra.gmra.mxu1 %v2745_v40  ;;  %v4286_v32 = vpop.f32.mrf.mxu1  ;;  %v2548_v31 = vadd.f32 %v4139_v37, %v2387_v24  ;;  %v826_v24 = vld [vmem:[%s5024_s17 + $0x8] sm:$0xff] }
 0x339   : > { %v2719_v60 = vmax.f32 %v2613_v45, 0.0  ;;  %v2605_v35 = vadd.f32 %v2604_v62, %v5937_v43  ;;  %v2757_v27 = vpack.c.bf16 %v2739_v1, %v2738_v22  ;;  %v2737_v63 = vmax.f32 %v2685_v16, 0.0  ;;  %v828_v62 = vld [vmem:[%s5024_s17 + $0x18] sm:$0xff] }
 0x33a   : > { %v4266_v46 = vpop.f32.mrf.mxu0  ;;  %v2697_v44 = vpop.f32.mrf.mxu1  ;;  %v2706_v0 = vadd.f32 %v4286_v32, %v6017_v34 }
 0x33b   : > { %v2747_v59 = vpack.c.bf16 %v2719_v60, %v2718_v8  ;;  %v2717_v58 = vmax.f32 %v2605_v35, 0.0  ;;  %v2756_v54 = vpack.c.bf16 %v2737_v63, %v2736_v57  ;;  %v2626_v53 = vadd.f32 %v4266_v46, %v5952_v29 }
 0x33c   : > { %v2617_v5 = vpop.f32.mrf.mxu0  ;;  %v4287_v43 = vpop.f32.mrf.mxu1  ;;  %v2698_v47 = vadd.f32 %v2697_v44, %v6008_v13  ;;  %v2742_v51 = vmax.f32 %v2706_v0, 0.0  ;;  %v829_v0 = vld [vmem:[%s5024_s17 + $0x20] sm:$0xff] }
 0x33d   : > { %v2746_v50 = vpack.c.bf16 %v2717_v58, %v2716_v4  ;;  %v2709_v61 = vadd.f32 %v4287_v43, %v2548_v31  ;;  %v2618_v25 = vadd.f32 %v2617_v5, %v5946_v38  ;;  %v2722_v40 = vmax.f32 %v2626_v53, 0.0  ;;  %v831_v4 = vld [vmem:[%s5024_s17 + $0x30] sm:$0xff]  ;;  %v832_v43 = vld [vmem:[%s5024_s17 + $0x38] sm:$0xff] }
 0x33e   : > { %v4267_v7 = vpop.f32.mrf.mxu0  ;;  %v2700_v20 = vpop.f32.mrf.mxu1  ;;  %v2740_v33 = vmax.f32 %v2698_v47, 0.0 }
 0x33f   : > { %v2629_v39 = vadd.f32 %v4267_v7, %v5955_v15  ;;  %4308 = vmatprep.mubr.bf16.mxu1 %v2746_v50  ;;  %v2743_v9 = vmax.f32 %v2709_v61, 0.0  ;;  %v2701_v34 = vadd.f32 %v2700_v20, %v6011_v21  ;;  %v2720_v18 = vmax.f32 %v2618_v25, 0.0 }
 0x340   : > { %v2620_v12 = vpop.f32.mrf.mxu0  ;;  %4309 = vmatmul.mubr.bf16.gmra.mxu1 %v2747_v59 }
 0x341   : > { %v2723_v56 = vmax.f32 %v2629_v39, 0.0  ;;  %v2621_v29 = vadd.f32 %v2620_v12, %v5949_v17  ;;  %v2759_v13 = vpack.c.bf16 %v2743_v9, %v2742_v51  ;;  %v2741_v48 = vmax.f32 %v2701_v34, 0.0  ;;  %v830_v39 = vld [vmem:[%s5024_s17 + $0x28] sm:$0xff]  ;;  %v835_v12 = vld [vmem:[%s5024_s17 + $0x50] sm:$0xff] }
 0x342   : > { %v4270_v3 = vpop.f32.mrf.mxu0 }
 0x343   : > { %v2749_v38 = vpack.c.bf16 %v2723_v56, %v2722_v40  ;;  %v2721_v2 = vmax.f32 %v2621_v29, 0.0  ;;  %v2758_v15 = vpack.c.bf16 %v2741_v48, %v2740_v33  ;;  %v2642_v10 = vadd.f32 %v4270_v3, %v5964_v26 }
 0x344   : > { %v2633_v52 = vpop.f32.mrf.mxu0 }
 0x345   : > { %v2748_v42 = vpack.c.bf16 %v2721_v2, %v2720_v18  ;;  %v2634_v21 = vadd.f32 %v2633_v52, %v5958_v41  ;;  %v2726_v17 = vmax.f32 %v2642_v10, 0.0  ;;  %v6065_v41 = vld [vmem:[%s6229_s7] ss:$0 sm:$0xff]  ;;  %v836_v2 = vld [vmem:[%s5024_s17 + $0x58] sm:$0xff] }
 0x346   : > { %v4271_v11 = vpop.f32.mrf.mxu0 }
 0x347   : > { %v2645_v28 = vadd.f32 %v4271_v11, %v5966_v30  ;;  %4312 = vmatprep.mubr.bf16.mxu1 %v2748_v42  ;;  %v2724_v37 = vmax.f32 %v2634_v21, 0.0  ;;  %v834_v11 = vld [vmem:[%s5024_s17 + $0x48] sm:$0xff] }
 0x348   : > { %v2636_v23 = vpop.f32.mrf.mxu0  ;;  %4313 = vmatmul.mubr.bf16.gmra.mxu1 %v2749_v38 }
 0x349   : > { %v2727_v45 = vmax.f32 %v2645_v28, 0.0  ;;  %v2637_v36 = vadd.f32 %v2636_v23, %v5961_v6  ;;  %v827_v6 = vld [vmem:[%s5024_s17 + $0x10] sm:$0xff] }
 0x34b   : > { %v2751_v22 = vpack.c.bf16 %v2727_v45, %v2726_v17  ;;  %v2725_v1 = vmax.f32 %v2637_v36, 0.0  ;;  %v839_v45 = vld [vmem:[%s5024_s17 + $0x70] sm:$0xff] }
 0x34d   : > { %v2750_v16 = vpack.c.bf16 %v2725_v1, %v2724_v37 }
 0x34f   : > { %4316 = vmatprep.mubr.bf16.mxu1 %v2750_v16  ;;  %v837_v16 = vld [vmem:[%s5024_s17 + $0x60] sm:$0xff] }
 0x350   : > { %4317 = vmatmul.mubr.bf16.gmra.mxu1 %v2751_v22 }
 0x351   : > { %4320 = vmatprep.mubr.bf16.mxu1 %v6022_v49 }
 0x358   : > { %4321 = vmatmul.mubr.bf16.gmra.mxu1 %v6020_v55  ;;  %v825_v55 = vld [vmem:[%s5024_s17] sm:$0xff] }
 0x359   : > { %4324 = vmatprep.mubr.bf16.mxu1 %v6034_v14 }
 0x360   : > { %4325 = vmatmul.mubr.bf16.gmra.mxu1 %v6032_v19 }
 0x361   : > { %4328 = vmatprep.mubr.bf16.mxu1 %v2756_v54 }
 0x368   : > { %4329 = vmatmul.mubr.bf16.gmra.mxu1 %v2757_v27 }
 0x369   : > { %4332 = vmatprep.mubr.bf16.mxu1 %v2758_v15 }
 0x370   : > { %4333 = vmatmul.mubr.bf16.gmra.mxu1 %v2759_v13  ;;  %v833_v13 = vld [vmem:[%s5024_s17 + $0x40] sm:$0xff] }
 0x3f8   : > { %v4306_v26 = vpop.f32.mrf.mxu1 }
 0x3f9   : > { %v2874_v30 = vadd.f32 %v4306_v26, %v6065_v41 }
 0x3fa   : > { %v2865_v49 = vpop.f32.mrf.mxu1 }
 0x3fb   : > { %v2994_v14 = vadd.f32 %v2874_v30, %v827_v6  ;;  %v2866_v19 = vadd.f32 %v6065_v41, %v2865_v49  ;;  %v840_v49 = vld [vmem:[%s5024_s17 + $0x78] sm:$0xff] }
 0x3fc   : > { %v4307_v8 = vpop.f32.mrf.mxu1 }
 0x3fd   : > { %v3026_v60 = vmax.f32 %v2994_v14, 0.0  ;;  %v2992_v35 = vadd.f32 %v2866_v19, %v825_v55  ;;  %v2877_v32 = vadd.f32 %v4307_v8, %v6065_v41 }
 0x3fe   : > { %v2868_v57 = vpop.f32.mrf.mxu1 }
 0x3ff   : > { %3058 = vst [vmem:[%s6076_s26 + $0x10] sm:$0xff] %v3026_v60  ;;  %v3024_v27 = vmax.f32 %v2992_v35, 0.0  ;;  %v2995_v63 = vadd.f32 %v2877_v32, %v828_v62  ;;  %v2869_v46 = vadd.f32 %v6065_v41, %v2868_v57  ;;  %v838_v60 = vld [vmem:[%s5024_s17 + $0x68] sm:$0xff] }
 0x400   : > { %v4310_v59 = vpop.f32.mrf.mxu1 }
 0x401   : > { %3056 = vst [vmem:[%s6076_s26] sm:$0xff] %v3024_v27  ;;  %v3027_v58 = vmax.f32 %v2995_v63, 0.0  ;;  %v2993_v44 = vadd.f32 %v2869_v46, %v826_v24  ;;  %v2890_v54 = vadd.f32 %v4310_v59, %v6065_v41  ;;  %v843_v27 = vld [vmem:[%s5024_s17 + $0x90] sm:$0xff] }
 0x402   : > { %v2881_v5 = vpop.f32.mrf.mxu1 }
 0x403   : > { %3059 = vst [vmem:[%s6076_s26 + $0x18] sm:$0xff] %v3027_v58  ;;  %v3025_v31 = vmax.f32 %v2993_v44, 0.0  ;;  %v2998_v50 = vadd.f32 %v2890_v54, %v831_v4  ;;  %v2882_v53 = vadd.f32 %v6065_v41, %v2881_v5  ;;  %v841_v58 = vld [vmem:[%s5024_s17 + $0x80] sm:$0xff] }
 0x404   : > { %v4311_v47 = vpop.f32.mrf.mxu1 }
 0x405   : > { %3057 = vst [vmem:[%s6076_s26 + $0x8] sm:$0xff] %v3025_v31  ;;  %v3030_v61 = vmax.f32 %v2998_v50, 0.0  ;;  %v2996_v7 = vadd.f32 %v2882_v53, %v829_v0  ;;  %v2893_v25 = vadd.f32 %v4311_v47, %v6065_v41  ;;  %v844_v31 = vld [vmem:[%s5024_s17 + $0x98] sm:$0xff] }
 0x406   : > { %v2884_v20 = vpop.f32.mrf.mxu1 }
 0x407   : > { %3062 = vst [vmem:[%s6076_s26 + $0x30] sm:$0xff] %v3030_v61  ;;  %v3028_v51 = vmax.f32 %v2996_v7, 0.0  ;;  %v2999_v9 = vadd.f32 %v2893_v25, %v832_v43  ;;  %v2885_v34 = vadd.f32 %v6065_v41, %v2884_v20  ;;  %v842_v61 = vld [vmem:[%s5024_s17 + $0x88] sm:$0xff] }
 0x408   : > { %v4314_v40 = vpop.f32.mrf.mxu1 }
 0x409   : > { %3060 = vst [vmem:[%s6076_s26 + $0x20] sm:$0xff] %v3028_v51  ;;  %v3031_v56 = vmax.f32 %v2999_v9, 0.0  ;;  %v2997_v29 = vadd.f32 %v2885_v34, %v830_v39  ;;  %v2906_v33 = vadd.f32 %v4314_v40, %v6065_v41  ;;  %v847_v51 = vld [vmem:[%s5024_s17 + $0xb0] sm:$0xff] }
 0x40a   : > { %v2897_v48 = vpop.f32.mrf.mxu1 }
 0x40b   : > { %3063 = vst [vmem:[%s6076_s26 + $0x38] sm:$0xff] %v3031_v56  ;;  %v3029_v3 = vmax.f32 %v2997_v29, 0.0  ;;  %v3002_v18 = vadd.f32 %v2906_v33, %v835_v12  ;;  %v2898_v38 = vadd.f32 %v6065_v41, %v2897_v48  ;;  %v845_v56 = vld [vmem:[%s5024_s17 + $0xa0] sm:$0xff] }
 0x40c   : > { %v4315_v15 = vpop.f32.mrf.mxu1 }
 0x40d   : > { %3061 = vst [vmem:[%s6076_s26 + $0x28] sm:$0xff] %v3029_v3  ;;  %v3034_v52 = vmax.f32 %v3002_v18, 0.0  ;;  %v3000_v42 = vadd.f32 %v2898_v38, %v833_v13  ;;  %v2909_v10 = vadd.f32 %v4315_v15, %v6065_v41  ;;  %v848_v3 = vld [vmem:[%s5024_s17 + $0xb8] sm:$0xff] }
 0x40e   : > { %v2900_v21 = vpop.f32.mrf.mxu1 }
 0x40f   : > { %3066 = vst [vmem:[%s6076_s26 + $0x50] sm:$0xff] %v3034_v52  ;;  %v3032_v28 = vmax.f32 %v3000_v42, 0.0  ;;  %v3003_v23 = vadd.f32 %v2909_v10, %v836_v2  ;;  %v2901_v17 = vadd.f32 %v6065_v41, %v2900_v21  ;;  %v846_v52 = vld [vmem:[%s5024_s17 + $0xa8] sm:$0xff] }
 0x410   : > { %v4318_v36 = vpop.f32.mrf.mxu1 }
 0x411   : > { %3064 = vst [vmem:[%s6076_s26 + $0x40] sm:$0xff] %v3032_v28  ;;  %v3035_v37 = vmax.f32 %v3003_v23, 0.0  ;;  %v3001_v22 = vadd.f32 %v2901_v17, %v834_v11  ;;  %v2922_v1 = vadd.f32 %v4318_v36, %v6065_v41  ;;  %v851_v28 = vld [vmem:[%s5024_s17 + $0xd0] sm:$0xff] }
 0x412   : > { %v2913_v6 = vpop.f32.mrf.mxu1 }
 0x413   : > { %3067 = vst [vmem:[%s6076_s26 + $0x58] sm:$0xff] %v3035_v37  ;;  %v3033_v26 = vmax.f32 %v3001_v22, 0.0  ;;  %v3006_v30 = vadd.f32 %v2922_v1, %v839_v45  ;;  %v2914_v55 = vadd.f32 %v6065_v41, %v2913_v6  ;;  %v849_v37 = vld [vmem:[%s5024_s17 + $0xc0] sm:$0xff] }
 0x414   : > { %v4319_v14 = vpop.f32.mrf.mxu1 }
 0x415   : > { %3065 = vst [vmem:[%s6076_s26 + $0x48] sm:$0xff] %v3033_v26  ;;  %v3038_v19 = vmax.f32 %v3006_v30, 0.0  ;;  %v3004_v62 = vadd.f32 %v2914_v55, %v837_v16  ;;  %v2925_v8 = vadd.f32 %v4319_v14, %v6065_v41  ;;  %v852_v26 = vld [vmem:[%s5024_s17 + $0xd8] sm:$0xff] }
 0x416   : > { %v2916_v35 = vpop.f32.mrf.mxu1 }
 0x417   : > { %3070 = vst [vmem:[%s6076_s26 + $0x70] sm:$0xff] %v3038_v19  ;;  %v3036_v32 = vmax.f32 %v3004_v62, 0.0  ;;  %v3007_v24 = vadd.f32 %v2925_v8, %v840_v49  ;;  %v2917_v57 = vadd.f32 %v6065_v41, %v2916_v35  ;;  %v850_v19 = vld [vmem:[%s5024_s17 + $0xc8] sm:$0xff] }
 0x418   : > { %v4322_v63 = vpop.f32.mrf.mxu1 }
 0x419   : > { %3068 = vst [vmem:[%s6076_s26 + $0x60] sm:$0xff] %v3036_v32  ;;  %v3039_v46 = vmax.f32 %v3007_v24, 0.0  ;;  %v3005_v4 = vadd.f32 %v2917_v57, %v838_v60  ;;  %v2938_v59 = vadd.f32 %v4322_v63, %v6065_v41  ;;  %v855_v32 = vld [vmem:[%s5024_s17 + $0xf0] sm:$0xff] }
 0x41a   : > { %v2929_v44 = vpop.f32.mrf.mxu1 }
 0x41b   : > { %3071 = vst [vmem:[%s6076_s26 + $0x78] sm:$0xff] %v3039_v46  ;;  %v3037_v54 = vmax.f32 %v3005_v4, 0.0  ;;  %v3010_v0 = vadd.f32 %v2938_v59, %v843_v27  ;;  %v2930_v5 = vadd.f32 %v6065_v41, %v2929_v44  ;;  %v853_v46 = vld [vmem:[%s5024_s17 + $0xe0] sm:$0xff] }
 0x41c   : > { %v4323_v50 = vpop.f32.mrf.mxu1 }
 0x41d   : > { %3069 = vst [vmem:[%s6076_s26 + $0x68] sm:$0xff] %v3037_v54  ;;  %v3042_v53 = vmax.f32 %v3010_v0, 0.0  ;;  %v3008_v43 = vadd.f32 %v2930_v5, %v841_v58  ;;  %v2941_v47 = vadd.f32 %v4323_v50, %v6065_v41  ;;  %v856_v54 = vld [vmem:[%s5024_s17 + $0xf8] sm:$0xff] }
 0x41e   : > { %v2932_v7 = vpop.f32.mrf.mxu1 }
 0x41f   : > { %3074 = vst [vmem:[%s6076_s26 + $0x90] sm:$0xff] %v3042_v53  ;;  %v3040_v25 = vmax.f32 %v3008_v43, 0.0  ;;  %v3011_v39 = vadd.f32 %v2941_v47, %v844_v31  ;;  %v2933_v20 = vadd.f32 %v6065_v41, %v2932_v7  ;;  %v854_v53 = vld [vmem:[%s5024_s17 + $0xe8] sm:$0xff] }
 0x420   : > { %v4326_v9 = vpop.f32.mrf.mxu1 }
 0x421   : > { %3072 = vst [vmem:[%s6076_s26 + $0x80] sm:$0xff] %v3040_v25  ;;  %v3043_v34 = vmax.f32 %v3011_v39, 0.0  ;;  %v3009_v12 = vadd.f32 %v2933_v20, %v842_v61  ;;  %v2954_v40 = vadd.f32 %v4326_v9, %v6065_v41 }
 0x422   : > { %v2945_v29 = vpop.f32.mrf.mxu1 }
 0x423   : > { %3075 = vst [vmem:[%s6076_s26 + $0x98] sm:$0xff] %v3043_v34  ;;  %v3041_v33 = vmax.f32 %v3009_v12, 0.0  ;;  %v3014_v13 = vadd.f32 %v2954_v40, %v847_v51  ;;  %v2946_v48 = vadd.f32 %v6065_v41, %v2945_v29 }
 0x424   : > { %v4327_v18 = vpop.f32.mrf.mxu1 }
 0x425   : > { %3073 = vst [vmem:[%s6076_s26 + $0x88] sm:$0xff] %v3041_v33  ;;  %v3046_v38 = vmax.f32 %v3014_v13, 0.0  ;;  %v3012_v2 = vadd.f32 %v2946_v48, %v845_v56  ;;  %v2957_v15 = vadd.f32 %v4327_v18, %v6065_v41 }
 0x426   : > { %v2948_v42 = vpop.f32.mrf.mxu1 }
 0x427   : > { %3078 = vst [vmem:[%s6076_s26 + $0xb0] sm:$0xff] %v3046_v38  ;;  %v3044_v10 = vmax.f32 %v3012_v2, 0.0  ;;  %v3015_v11 = vadd.f32 %v2957_v15, %v848_v3  ;;  %v2949_v21 = vadd.f32 %v6065_v41, %v2948_v42 }
 0x428   : > { %v4330_v23 = vpop.f32.mrf.mxu1 }
 0x429   : > { %3076 = vst [vmem:[%s6076_s26 + $0xa0] sm:$0xff] %v3044_v10  ;;  %v3047_v17 = vmax.f32 %v3015_v11, 0.0  ;;  %v3013_v45 = vadd.f32 %v2949_v21, %v846_v52  ;;  %v2970_v36 = vadd.f32 %v4330_v23, %v6065_v41 }
 0x42a   : > { %v2961_v22 = vpop.f32.mrf.mxu1 }
 0x42b   : > { %3079 = vst [vmem:[%s6076_s26 + $0xb8] sm:$0xff] %v3047_v17  ;;  %v3045_v1 = vmax.f32 %v3013_v45, 0.0  ;;  %v3018_v16 = vadd.f32 %v2970_v36, %v851_v28  ;;  %v2962_v6 = vadd.f32 %v6065_v41, %v2961_v22 }
 0x42c   : > { %v4331_v30 = vpop.f32.mrf.mxu1 }
 0x42d   : > { %3077 = vst [vmem:[%s6076_s26 + $0xa8] sm:$0xff] %v3045_v1  ;;  %v3050_v55 = vmax.f32 %v3018_v16, 0.0  ;;  %v3016_v49 = vadd.f32 %v2962_v6, %v849_v37  ;;  %v2973_v14 = vadd.f32 %v4331_v30, %v6065_v41 }
 0x42e   : > { %v2964_v62 = vpop.f32.mrf.mxu1 }
 0x42f   : > { %3082 = vst [vmem:[%s6076_s26 + $0xd0] sm:$0xff] %v3050_v55  ;;  %v3048_v8 = vmax.f32 %v3016_v49, 0.0  ;;  %v3019_v60 = vadd.f32 %v2973_v14, %v852_v26  ;;  %v2965_v35 = vadd.f32 %v6065_v41, %v2964_v62 }
 0x430   : > { %v4334_v24 = vpop.f32.mrf.mxu1 }
 0x431   : > { %3080 = vst [vmem:[%s6076_s26 + $0xc0] sm:$0xff] %v3048_v8  ;;  %v3051_v57 = vmax.f32 %v3019_v60, 0.0  ;;  %v3017_v27 = vadd.f32 %v2965_v35, %v850_v19  ;;  %v2986_v63 = vadd.f32 %v4334_v24, %v6065_v41 }
 0x432   : > { %v2977_v4 = vpop.f32.mrf.mxu1 }
 0x433   : > { %3083 = vst [vmem:[%s6076_s26 + $0xd8] sm:$0xff] %v3051_v57  ;;  %v3049_v59 = vmax.f32 %v3017_v27, 0.0  ;;  %v3022_v58 = vadd.f32 %v2986_v63, %v855_v32  ;;  %v2978_v44 = vadd.f32 %v6065_v41, %v2977_v4 }
 0x434   : > { %v4335_v0 = vpop.f32.mrf.mxu1 }
 0x435   : > { %3081 = vst [vmem:[%s6076_s26 + $0xc8] sm:$0xff] %v3049_v59  ;;  %v3054_v5 = vmax.f32 %v3022_v58, 0.0  ;;  %v3020_v31 = vadd.f32 %v2978_v44, %v853_v46  ;;  %v2989_v50 = vadd.f32 %v4335_v0, %v6065_v41 }
 0x436   : > { %v2980_v43 = vpop.f32.mrf.mxu1 }
 0x437   : > { %3086 = vst [vmem:[%s6076_s26 + $0xf0] sm:$0xff] %v3054_v5  ;;  %v3052_v47 = vmax.f32 %v3020_v31, 0.0  ;;  %v3023_v61 = vadd.f32 %v2989_v50, %v856_v54  ;;  %v2981_v7 = vadd.f32 %v6065_v41, %v2980_v43 }
 0x439   : > { %3084 = vst [vmem:[%s6076_s26 + $0xe0] sm:$0xff] %v3052_v47  ;;  %v3055_v25 = vmax.f32 %v3023_v61, 0.0  ;;  %v3021_v39 = vadd.f32 %v2981_v7, %v854_v53 }
 0x43b   : > { %3087 = vst [vmem:[%s6076_s26 + $0xf8] sm:$0xff] %v3055_v25  ;;  %v3053_v20 = vmax.f32 %v3021_v39, 0.0 }
 0x43d   : > { %3085 = vst [vmem:[%s6076_s26 + $0xe8] sm:$0xff] %v3053_v20 }
 0x43e   : > { %4715 = shalt.err (!%p4712_p9)
}
 0x43f   : > { %s4716_s29 = scalar_lea.hbm %s6170_s4, 4096  ;;  %s4720_s16 = scalar_lea.hbm %s6230_s8, 8192 }
 0x440   : > { %p4717_p0 = scmp.ne.s32.totalorder %s6170_s4, %s4716_s29  ;;  %p4721_p2 = scmp.lt.s32.totalorder %s6170_s4, %s6230_s8 }
 0x441   : > { %p4722_p3 = scmp.lt.s32.totalorder %s4720_s16, %s4716_s29 }
 0x442   : > { %p4718_p8 = pnand %p4717_p0, %p4961_p13 }
 0x443   : > { %p4723_p4 = por %p4722_p3, %p4721_p2 }
 0x444   : > { %p4719_p5 = pneg %p4718_p8 }
 0x446   : > { %p4724_p11 = pnand %p4723_p4, %p4719_p5 }
 0x448   : > { %4727 = shalt.err (!%p4724_p11)
}
 0x449   : > { %s4809_s13 = smov 128   ;;  %s4810_s2 = smov 8  }
 0x44a   : > { %4371 = dma.vmem_to_hbm [thread:$0]  (%p4961_p13), %s6172_s20, 4096, %s6170_s4, %s3089_s25, %s4809_s13, %s4809_s13, %s4810_s2  }
 0x44b PF: > { %s6284_s24 = sld [smem:[#allocation17_spill]] }
 0x44c   : > { %s6286_s21 = sld [smem:[#allocation19_spill]] }
 0x451   : > { %s3120_s26 = sand.u32 1, %s6284_s24  }
 0x452   : > { %p6287_p10 = scmp.ge.s32.totalorder %s6286_s21, 2  ;;  %s3121_s14 = scalar_lea.sflag [#allocation4], %s3120_s26 }
 0x454   : > { %p4391_p7 = pnand %p6287_p10, %p4901_p6 }
 0x456   : > { %p4392_p1 = pneg %p4391_p7 }
 0x458   : > { %4769 = dma.done.wait (%p4392_p1), %s3121_s14, 4096  }
 0x459   : > { %4771 = vsyncadd (%p4392_p1), %s3121_s14, 4294963200  ;;  %s28_s10 = sadd.s32 1, %s6286_s21   ;;  %s6288_s23 = sld [smem:[#allocation18_spill]] }
 0x45a   : > { %p25_p12 = scmp.ge.s32.totalorder %s28_s10, 4   ;;  %s6289_s29 = sld [smem:[#allocation22_spill]] }
 0x45b   : > { %s6290_s12 = sld [smem:[#allocation21_spill]]  ;;  %s6291_s27 = smov %s4778_s28 }
 0x45c   : > { %s6293_s30 = smov %s4790_s9 }
 0x45d   :  { %27 = sbr.rel (!%p25_p12) target bundleno = 14 (0xe), region = 123 }
 0x45f   : > { %s6292_s28 = smov %s6288_s23 }
 0x461   : > { %s6294_s9 = smov %s6290_s12 }
 0x462   :  { %3126 = vsyncpa [#allocation3], 1 }
 0x463   :  { %3128 = vsyncpa [#allocation3 + $0x1], 1 }
 0x464   :  { %3129 = vsyncpa [#allocation6], 1 }
 0x465   :  { %3131 = vsyncpa [#allocation6 + $0x1], 1 }
 0x466   :  { %3132 = vsyncpa [#allocation9], 1 }
 0x467   :  { %3133 = vsyncpa [#allocation4], 1 }
 0x468   :  { %3135 = vsyncpa [#allocation4 + $0x1], 1 }

</bundles_post_ra>
